<compile_context>
chip_gen: v5e
topology: v5e:2x2
jax: 0.10.0
libtpu: 0.0.40
codegen_flags: <defaults>
</compile_context>

<pallas_src>
import functools

import jax
import jax.numpy as jnp
from jax.experimental import pallas as pl
from jax.experimental.pallas import tpu as pltpu

# ---- scaled-down MAE ViT-base analogue -------------------------------------
IMG_SIZE = 32            # stands in for 224
PATCH = 8                # stands in for 16
IN_CHANS = 3
EMBED_DIM = 64           # stands in for 768
DEPTH = 2                # stands in for 12
NUM_HEADS = 4            # stands in for 12
MLP_RATIO = 4
HEAD_DIM = EMBED_DIM // NUM_HEADS
GRID = IMG_SIZE // PATCH             # 4 patches per side
NUM_PATCHES = GRID * GRID            # 16
SEQ = NUM_PATCHES + 1                # 17 (with cls token)
SEQ_PAD = 24                         # padded to a sublane multiple of 8
CPP = IN_CHANS * PATCH * PATCH       # 192 (flattened patch)
LN_EPS = 1e-6
ATT_SCALE = 1.0 / (HEAD_DIM ** 0.5)
NEG_INF = -1e30


# ---------------------------------------------------------------------------
# Fused Pallas kernel: one grid step == one transformer layer.
# Tokens (B*SEQ_PAD, D) live in the resident output block across all steps.
# ---------------------------------------------------------------------------
def _fused_encoder_kernel(
        pm_ref, pw_ref, bias_ref,                     # patch-embed (used at step 0)
        g1_ref, be1_ref,                              # LN1
        wq_ref, bq_ref, wk_ref, bk_ref, wv_ref, bv_ref,   # QKV (lane-aligned splits)
        wo_ref, bo_ref,                               # attn out-proj
        g2_ref, be2_ref,                              # LN2
        w1_ref, b1_ref, w2_ref, b2_ref,               # MLP
        o_ref):                                       # resident token buffer / output
    batch = pm_ref.shape[0] // SEQ_PAD                # static python int

    # --- depth step 0: fused patch-embed + cls token + positional embedding ---
    @pl.when(pl.program_id(0) == 0)
    def _init():
        # cls / padding rows of pm are zero, so they contribute nothing to the
        # matmul; bias_ref carries cls_token+pos_embed (row 0) and
        # patch_bias+pos_embed (patch rows), zeros for the padded rows.
        o_ref[...] = (
            jnp.dot(pm_ref[...], pw_ref[...], preferred_element_type=jnp.float32)
            + bias_ref[...]
        )

    x = o_ref[...]                                    # (B*S_PAD, D), f32

    # --- LayerNorm 1 ----------------------------------------------------------
    mu = jnp.mean(x, axis=-1, keepdims=True)
    var = jnp.mean(jnp.square(x - mu), axis=-1, keepdims=True)
    h = (x - mu) * jax.lax.rsqrt(var + LN_EPS) * g1_ref[0] + be1_ref[0]

    # --- Multi-head self-attention ---------------------------------------------
    # Scale folded into q once (saves an (S,S) multiply per head).
    q = (jnp.dot(h, wq_ref[0], preferred_element_type=jnp.float32) + bq_ref[0]) * ATT_SCALE
    k = jnp.dot(h, wk_ref[0], preferred_element_type=jnp.float32) + bk_ref[0]
    v = jnp.dot(h, wv_ref[0], preferred_element_type=jnp.float32) + bv_ref[0]

    q3 = q.reshape(batch, SEQ_PAD, EMBED_DIM)         # major-dim split: layout-free
    k3 = k.reshape(batch, SEQ_PAD, EMBED_DIM)
    v3 = v.reshape(batch, SEQ_PAD, EMBED_DIM)

    # -inf bias on padded key columns so they never influence valid rows.
    col = jax.lax.broadcasted_iota(jnp.int32, (SEQ_PAD, SEQ_PAD), 1)
    key_bias = jnp.where(col < SEQ, 0.0, NEG_INF).astype(jnp.float32)

    wo = wo_ref[0]                                    # (D, D)
    proj = jnp.zeros_like(x)                          # accumulated head @ wo[head]
    for hd in range(NUM_HEADS):
        sl = slice(hd * HEAD_DIM, (hd + 1) * HEAD_DIM)
        s = jnp.einsum('bqd,bkd->bqk', q3[:, :, sl], k3[:, :, sl],
                       preferred_element_type=jnp.float32) + key_bias
        m = jnp.max(s, axis=-1, keepdims=True)
        p = jnp.exp(s - m)
        p = p * pl.reciprocal(jnp.sum(p, axis=-1, keepdims=True), approx=True)
        oh = jnp.einsum('bqk,bkd->bqd', p, v3[:, :, sl],
                        preferred_element_type=jnp.float32)   # (B, S_PAD, HEAD_DIM)
        # fold the head-concat + output projection into an accumulation
        proj = proj + jnp.dot(oh.reshape(batch * SEQ_PAD, HEAD_DIM), wo[sl, :],
                              preferred_element_type=jnp.float32)

    x = x + proj + bo_ref[0]

    # --- LayerNorm 2 + MLP -------------------------------------------------------
    mu2 = jnp.mean(x, axis=-1, keepdims=True)
    var2 = jnp.mean(jnp.square(x - mu2), axis=-1, keepdims=True)
    h2 = (x - mu2) * jax.lax.rsqrt(var2 + LN_EPS) * g2_ref[0] + be2_ref[0]

    z = jnp.dot(h2, w1_ref[0], preferred_element_type=jnp.float32) + b1_ref[0]
    # TODO(synk): PyTorch nn.GELU is exact erf-GELU; tanh approximation used here
    # since erf has no reliable Pallas/Mosaic lowering.
    z = 0.5 * z * (1.0 + jnp.tanh(0.7978845608028654 * (z + 0.044715 * z * z * z)))
    z = jnp.dot(z, w2_ref[0], preferred_element_type=jnp.float32) + b2_ref[0]

    o_ref[...] = x + z


# ---------------------------------------------------------------------------
# Pallas wrapper: one pallas_call for the whole encoder.
# ---------------------------------------------------------------------------
def vit_encoder_pallas(patch_mat, patch_w, init_bias, layers):
    bs = patch_mat.shape[0]

    def const_spec(a):          # 2-D arrays, resident / constant over depth
        return pl.BlockSpec(a.shape, lambda d: (0, 0))

    def layer_spec(a):          # 3-D (DEPTH, r, c) arrays, streamed per layer
        return pl.BlockSpec((1,) + a.shape[1:], lambda d: (d, 0, 0))

    layer_args = [layers['g1'], layers['be1'],
                  layers['wq'], layers['bq'],
                  layers['wk'], layers['bk'],
                  layers['wv'], layers['bv'],
                  layers['wo'], layers['bo'],
                  layers['g2'], layers['be2'],
                  layers['w_fc1'], layers['b_fc1'],
                  layers['w_fc2'], layers['b_fc2']]

    return pl.pallas_call(
        _fused_encoder_kernel,
        out_shape=jax.ShapeDtypeStruct((bs, EMBED_DIM), jnp.float32),
        grid=(DEPTH,),
        in_specs=[const_spec(patch_mat), const_spec(patch_w), const_spec(init_bias)]
                 + [layer_spec(a) for a in layer_args],
        out_specs=pl.BlockSpec((bs, EMBED_DIM), lambda d: (0, 0)),
        compiler_params=pltpu.CompilerParams(dimension_semantics=("arbitrary",)),
    )(patch_mat, patch_w, init_bias, *layer_args)


# ---------------------------------------------------------------------------
# Parameters (deterministic synthetic init — no checkpoint load)
# ---------------------------------------------------------------------------
def init_params(key):
    keys = iter(jax.random.split(key, 64))

    def nrm(shape, std=0.02):
        return std * jax.random.normal(next(keys), shape, jnp.float32)

    def stack(shape):
        return jnp.stack([nrm(shape) for _ in range(DEPTH)], axis=0)

    return {
        'patch_w': nrm((EMBED_DIM, IN_CHANS, PATCH, PATCH)),   # conv-style (D, C, P, P)
        'patch_b': nrm((EMBED_DIM,)),
        'cls_token': nrm((1, 1, EMBED_DIM)),
        'pos_embed': nrm((1, SEQ, EMBED_DIM)),
        'layers': {
            'g1': jnp.ones((DEPTH, 1, EMBED_DIM), jnp.float32),
            'be1': jnp.zeros((DEPTH, 1, EMBED_DIM), jnp.float32),
            'wq': stack((EMBED_DIM, EMBED_DIM)), 'bq': stack((1, EMBED_DIM)),
            'wk': stack((EMBED_DIM, EMBED_DIM)), 'bk': stack((1, EMBED_DIM)),
            'wv': stack((EMBED_DIM, EMBED_DIM)), 'bv': stack((1, EMBED_DIM)),
            'wo': stack((EMBED_DIM, EMBED_DIM)), 'bo': stack((1, EMBED_DIM)),
            'g2': jnp.ones((DEPTH, 1, EMBED_DIM), jnp.float32),
            'be2': jnp.zeros((DEPTH, 1, EMBED_DIM), jnp.float32),
            'w_fc1': stack((EMBED_DIM, MLP_RATIO * EMBED_DIM)),
            'b_fc1': stack((1, MLP_RATIO * EMBED_DIM)),
            'w_fc2': stack((MLP_RATIO * EMBED_DIM, EMBED_DIM)),
            'b_fc2': stack((1, EMBED_DIM)),
        },
    }


# ---------------------------------------------------------------------------
# Forward pass (mirrors ViTMAEBackbone.forward)
# ---------------------------------------------------------------------------
def vit_mae_backbone_forward(x, mask, params):
    B, C, H, W = x.shape

    # F.interpolate(x, size=(224,224), mode='bilinear', align_corners=False) analogue.
    x_res = jax.image.resize(x, (B, C, IMG_SIZE, IMG_SIZE), method='bilinear')

    # stride-P conv == matmul over flattened non-overlapping patches
    xp = x_res.reshape(B, C, GRID, PATCH, GRID, PATCH)
    xp = xp.transpose(0, 2, 4, 1, 3, 5).reshape(B, NUM_PATCHES, CPP)

    # pad each image's patch rows to SEQ_PAD: row 0 (cls) and rows SEQ.. are zero
    patch_rows = jnp.zeros((B, SEQ_PAD, CPP), jnp.float32)
    patch_rows = patch_rows.at[:, 1:SEQ, :].set(xp)
    patch_mat = patch_rows.reshape(B * SEQ_PAD, CPP)

    # fold cls token + pos embedding + patch-embed bias into one additive term
    bias = jnp.zeros((SEQ_PAD, EMBED_DIM), jnp.float32)
    bias = bias.at[0, :].set(params['cls_token'][0, 0] + params['pos_embed'][0, 0])
    bias = bias.at[1:SEQ, :].set(params['patch_b'][None, :] + params['pos_embed'][0, 1:])
    init_bias = jnp.broadcast_to(bias[None], (B, SEQ_PAD, EMBED_DIM)
                                 ).reshape(B * SEQ_PAD, EMBED_DIM)

    # conv weight (D, C, P, P) -> matmul weight (C*P*P, D)
    w_mat = params['patch_w'].reshape(EMBED_DIM, CPP).T

    # one fused pallas_call: patch embed + all transformer blocks
    tokens = vit_encoder_pallas(patch_mat, w_mat, init_bias, params['layers'])

    # drop cls + padding tokens, (B, N, D) -> (B, D, Hp, Wp)
    tokens = tokens.reshape(B, SEQ_PAD, EMBED_DIM)
    feats = tokens[:, 1:SEQ, :]
    features = feats.transpose(0, 2, 1).reshape(B, EMBED_DIM, GRID, GRID)

    # F.interpolate(mask, size=(Hp, Wp)) with default mode='nearest'
    idx_h = jnp.floor(jnp.arange(GRID) * (H / GRID)).astype(jnp.int32)
    idx_w = jnp.floor(jnp.arange(GRID) * (W / GRID)).astype(jnp.int32)
    mask_out = mask[:, idx_h][:, :, idx_w].astype(jnp.bool_)

    return {'0': (features, mask_out)}


# ---------------------------------------------------------------------------
if __name__ == "__main__":
    key = jax.random.PRNGKey(0)
    kx, km, kp = jax.random.split(key, 3)

    x = jax.random.normal(kx, (2, 3, 16, 16), jnp.float32)          # NCHW image
    mask = jax.random.bernoulli(km, 0.3, (2, 16, 16))               # padding mask

    params = init_params(kp)

    fwd = jax.jit(functools.partial(vit_mae_backbone_forward, params=params))
    out = fwd(x, mask)
    features, mask_out = out['0']
    jax.block_until_ready(features)
    jax.block_until_ready(mask_out)

    assert features.shape == (2, EMBED_DIM, GRID, GRID)
    assert features.dtype == jnp.float32
    assert mask_out.shape == (2, GRID, GRID)
    assert mask_out.dtype == jnp.bool_
    assert bool(jnp.all(jnp.isfinite(features)))

    print("KERNEL_OK")
</pallas_src>

<mosaic_0001>
module attributes {stable_mosaic.version = 11 : i64} {
  func.func @_fused_encoder_kernel(%arg0: i32, %arg1: memref<48x192xf32, #tpu.memory_space<vmem>>, %arg2: memref<192x64xf32, #tpu.memory_space<vmem>>, %arg3: memref<48x64xf32, #tpu.memory_space<vmem>>, %arg4: memref<1x1x64xf32, #tpu.memory_space<vmem>>, %arg5: memref<1x1x64xf32, #tpu.memory_space<vmem>>, %arg6: memref<1x64x64xf32, #tpu.memory_space<vmem>>, %arg7: memref<1x1x64xf32, #tpu.memory_space<vmem>>, %arg8: memref<1x64x64xf32, #tpu.memory_space<vmem>>, %arg9: memref<1x1x64xf32, #tpu.memory_space<vmem>>, %arg10: memref<1x64x64xf32, #tpu.memory_space<vmem>>, %arg11: memref<1x1x64xf32, #tpu.memory_space<vmem>>, %arg12: memref<1x64x64xf32, #tpu.memory_space<vmem>>, %arg13: memref<1x1x64xf32, #tpu.memory_space<vmem>>, %arg14: memref<1x1x64xf32, #tpu.memory_space<vmem>>, %arg15: memref<1x1x64xf32, #tpu.memory_space<vmem>>, %arg16: memref<1x64x256xf32, #tpu.memory_space<vmem>>, %arg17: memref<1x1x256xf32, #tpu.memory_space<vmem>>, %arg18: memref<1x256x64xf32, #tpu.memory_space<vmem>>, %arg19: memref<1x1x64xf32, #tpu.memory_space<vmem>>, %arg20: memref<48x64xf32, #tpu.memory_space<vmem>>) attributes {dimension_semantics = [#tpu.dimension_semantics<arbitrary>], iteration_bounds = array<i64: 2>, scalar_prefetch = 0 : i64, scratch_operands = 0 : i64, tpu.core_type = #tpu.core_type<tc>, window_params = [{pipeline_mode = #tpu.pipeline_mode<synchronous>, transform_indices = @transform_0, window_bounds = array<i64: 48, 192>}, {pipeline_mode = #tpu.pipeline_mode<synchronous>, transform_indices = @transform_1, window_bounds = array<i64: 192, 64>}, {pipeline_mode = #tpu.pipeline_mode<synchronous>, transform_indices = @transform_2, window_bounds = array<i64: 48, 64>}, {transform_indices = @transform_3, window_bounds = array<i64: 1, 1, 64>}, {transform_indices = @transform_4, window_bounds = array<i64: 1, 1, 64>}, {transform_indices = @transform_5, window_bounds = array<i64: 1, 64, 64>}, {transform_indices = @transform_6, window_bounds = array<i64: 1, 1, 64>}, {transform_indices = @transform_7, window_bounds = array<i64: 1, 64, 64>}, {transform_indices = @transform_8, window_bounds = array<i64: 1, 1, 64>}, {transform_indices = @transform_9, window_bounds = array<i64: 1, 64, 64>}, {transform_indices = @transform_10, window_bounds = array<i64: 1, 1, 64>}, {transform_indices = @transform_11, window_bounds = array<i64: 1, 64, 64>}, {transform_indices = @transform_12, window_bounds = array<i64: 1, 1, 64>}, {transform_indices = @transform_13, window_bounds = array<i64: 1, 1, 64>}, {transform_indices = @transform_14, window_bounds = array<i64: 1, 1, 64>}, {transform_indices = @transform_15, window_bounds = array<i64: 1, 64, 256>}, {transform_indices = @transform_16, window_bounds = array<i64: 1, 1, 256>}, {transform_indices = @transform_17, window_bounds = array<i64: 1, 256, 64>}, {transform_indices = @transform_18, window_bounds = array<i64: 1, 1, 64>}, {pipeline_mode = #tpu.pipeline_mode<synchronous>, transform_indices = @transform_19, window_bounds = array<i64: 48, 64>}]} {
    %c0_i32 = arith.constant 0 : i32
    %0 = arith.cmpi eq, %arg0, %c0_i32 : i32
    %1 = arith.extui %0 : i1 to i32
    %c0_i32_0 = arith.constant 0 : i32
    %2 = arith.cmpi ne, %1, %c0_i32_0 : i32
    scf.if %2 {
      %c0_94 = arith.constant 0 : index
      %c0_95 = arith.constant 0 : index
      %213 = vector.load %arg1[%c0_94, %c0_95] : memref<48x192xf32, #tpu.memory_space<vmem>>, vector<48x192xf32>
      %c0_96 = arith.constant 0 : index
      %c0_97 = arith.constant 0 : index
      %214 = vector.load %arg2[%c0_96, %c0_97] : memref<192x64xf32, #tpu.memory_space<vmem>>, vector<192x64xf32>
      %cst_98 = arith.constant dense<0.000000e+00> : vector<48x64xf32>
      %215 = tpu.matmul %213, %214, %cst_98 {dimension_numbers = #tpu.dot_dimension_numbers<[1], [0], [0], [1], [0, 0, 1, 1], [], []>} : vector<48x192xf32>, vector<192x64xf32>, vector<48x64xf32> -> vector<48x64xf32>
      %c0_99 = arith.constant 0 : index
      %c0_100 = arith.constant 0 : index
      %216 = vector.load %arg3[%c0_99, %c0_100] : memref<48x64xf32, #tpu.memory_space<vmem>>, vector<48x64xf32>
      %217 = arith.addf %215, %216 : vector<48x64xf32>
      %c0_101 = arith.constant 0 : index
      %c0_102 = arith.constant 0 : index
      %218 = vector.load %arg20[%c0_101, %c0_102] : memref<48x64xf32, #tpu.memory_space<vmem>>, vector<48x64xf32>
      tpu.vector_store %arg20[%c0_101, %c0_102], %217 {strides = array<i32>} : memref<48x64xf32, #tpu.memory_space<vmem>>, vector<48x64xf32>,
    } else {
    }
    %c0 = arith.constant 0 : index
    %c0_1 = arith.constant 0 : index
    %3 = vector.load %arg20[%c0, %c0_1] : memref<48x64xf32, #tpu.memory_space<vmem>>, vector<48x64xf32>
    %cst = arith.constant dense<0.000000e+00> : vector<48xf32>
    %4 = vector.multi_reduction <add>, %3, %cst [1] : vector<48x64xf32> to vector<48xf32>
    %5 = vector.shape_cast %4 : vector<48xf32> to vector<48x1xf32>
    %cst_2 = arith.constant 6.400000e+01 : f32
    %6 = vector.broadcast %cst_2 : f32 to vector<48x1xf32>
    %7 = arith.divf %5, %6 : vector<48x1xf32>
    %8 = vector.broadcast %7 : vector<48x1xf32> to vector<48x64xf32>
    %9 = arith.subf %3, %8 : vector<48x64xf32>
    %10 = arith.mulf %9, %9 : vector<48x64xf32>
    %cst_3 = arith.constant dense<0.000000e+00> : vector<48xf32>
    %11 = vector.multi_reduction <add>, %10, %cst_3 [1] : vector<48x64xf32> to vector<48xf32>
    %12 = vector.shape_cast %11 : vector<48xf32> to vector<48x1xf32>
    %cst_4 = arith.constant 6.400000e+01 : f32
    %13 = vector.broadcast %cst_4 : f32 to vector<48x1xf32>
    %14 = arith.divf %12, %13 : vector<48x1xf32>
    %15 = vector.broadcast %7 : vector<48x1xf32> to vector<48x64xf32>
    %16 = arith.subf %3, %15 : vector<48x64xf32>
    %cst_5 = arith.constant 9.99999997E-7 : f32
    %17 = vector.broadcast %cst_5 : f32 to vector<48x1xf32>
    %18 = arith.addf %14, %17 : vector<48x1xf32>
    %19 = math.rsqrt %18 : vector<48x1xf32>
    %20 = vector.broadcast %19 : vector<48x1xf32> to vector<48x64xf32>
    %21 = arith.mulf %16, %20 : vector<48x64xf32>
    %c0_6 = arith.constant 0 : index
    %c0_7 = arith.constant 0 : index
    %c0_8 = arith.constant 0 : index
    %22 = vector.load %arg4[%c0_6, %c0_7, %c0_8] : memref<1x1x64xf32, #tpu.memory_space<vmem>>, vector<1x1x64xf32>
    %23 = vector.shape_cast %22 : vector<1x1x64xf32> to vector<1x64xf32>
    %24 = vector.broadcast %23 : vector<1x64xf32> to vector<48x64xf32>
    %25 = arith.mulf %21, %24 : vector<48x64xf32>
    %c0_9 = arith.constant 0 : index
    %c0_10 = arith.constant 0 : index
    %c0_11 = arith.constant 0 : index
    %26 = vector.load %arg5[%c0_9, %c0_10, %c0_11] : memref<1x1x64xf32, #tpu.memory_space<vmem>>, vector<1x1x64xf32>
    %27 = vector.shape_cast %26 : vector<1x1x64xf32> to vector<1x64xf32>
    %28 = vector.broadcast %27 : vector<1x64xf32> to vector<48x64xf32>
    %29 = arith.addf %25, %28 : vector<48x64xf32>
    %c0_12 = arith.constant 0 : index
    %c0_13 = arith.constant 0 : index
    %c0_14 = arith.constant 0 : index
    %30 = vector.load %arg6[%c0_12, %c0_13, %c0_14] : memref<1x64x64xf32, #tpu.memory_space<vmem>>, vector<1x64x64xf32>
    %31 = vector.shape_cast %30 : vector<1x64x64xf32> to vector<64x64xf32>
    %cst_15 = arith.constant dense<0.000000e+00> : vector<48x64xf32>
    %32 = tpu.matmul %29, %31, %cst_15 {dimension_numbers = #tpu.dot_dimension_numbers<[1], [0], [0], [1], [0, 0, 1, 1], [], []>} : vector<48x64xf32>, vector<64x64xf32>, vector<48x64xf32> -> vector<48x64xf32>
    %c0_16 = arith.constant 0 : index
    %c0_17 = arith.constant 0 : index
    %c0_18 = arith.constant 0 : index
    %33 = vector.load %arg7[%c0_16, %c0_17, %c0_18] : memref<1x1x64xf32, #tpu.memory_space<vmem>>, vector<1x1x64xf32>
    %34 = vector.shape_cast %33 : vector<1x1x64xf32> to vector<1x64xf32>
    %35 = vector.broadcast %34 : vector<1x64xf32> to vector<48x64xf32>
    %36 = arith.addf %32, %35 : vector<48x64xf32>
    %cst_19 = arith.constant 2.500000e-01 : f32
    %37 = vector.broadcast %cst_19 : f32 to vector<48x64xf32>
    %38 = arith.mulf %36, %37 : vector<48x64xf32>
    %c0_20 = arith.constant 0 : index
    %c0_21 = arith.constant 0 : index
    %c0_22 = arith.constant 0 : index
    %39 = vector.load %arg8[%c0_20, %c0_21, %c0_22] : memref<1x64x64xf32, #tpu.memory_space<vmem>>, vector<1x64x64xf32>
    %40 = vector.shape_cast %39 : vector<1x64x64xf32> to vector<64x64xf32>
    %cst_23 = arith.constant dense<0.000000e+00> : vector<48x64xf32>
    %41 = tpu.matmul %29, %40, %cst_23 {dimension_numbers = #tpu.dot_dimension_numbers<[1], [0], [0], [1], [0, 0, 1, 1], [], []>} : vector<48x64xf32>, vector<64x64xf32>, vector<48x64xf32> -> vector<48x64xf32>
    %c0_24 = arith.constant 0 : index
    %c0_25 = arith.constant 0 : index
    %c0_26 = arith.constant 0 : index
    %42 = vector.load %arg9[%c0_24, %c0_25, %c0_26] : memref<1x1x64xf32, #tpu.memory_space<vmem>>, vector<1x1x64xf32>
    %43 = vector.shape_cast %42 : vector<1x1x64xf32> to vector<1x64xf32>
    %44 = vector.broadcast %43 : vector<1x64xf32> to vector<48x64xf32>
    %45 = arith.addf %41, %44 : vector<48x64xf32>
    %c0_27 = arith.constant 0 : index
    %c0_28 = arith.constant 0 : index
    %c0_29 = arith.constant 0 : index
    %46 = vector.load %arg10[%c0_27, %c0_28, %c0_29] : memref<1x64x64xf32, #tpu.memory_space<vmem>>, vector<1x64x64xf32>
    %47 = vector.shape_cast %46 : vector<1x64x64xf32> to vector<64x64xf32>
    %cst_30 = arith.constant dense<0.000000e+00> : vector<48x64xf32>
    %48 = tpu.matmul %29, %47, %cst_30 {dimension_numbers = #tpu.dot_dimension_numbers<[1], [0], [0], [1], [0, 0, 1, 1], [], []>} : vector<48x64xf32>, vector<64x64xf32>, vector<48x64xf32> -> vector<48x64xf32>
    %c0_31 = arith.constant 0 : index
    %c0_32 = arith.constant 0 : index
    %c0_33 = arith.constant 0 : index
    %49 = vector.load %arg11[%c0_31, %c0_32, %c0_33] : memref<1x1x64xf32, #tpu.memory_space<vmem>>, vector<1x1x64xf32>
    %50 = vector.shape_cast %49 : vector<1x1x64xf32> to vector<1x64xf32>
    %51 = vector.broadcast %50 : vector<1x64xf32> to vector<48x64xf32>
    %52 = arith.addf %48, %51 : vector<48x64xf32>
    %53 = vector.shape_cast %38 : vector<48x64xf32> to vector<2x24x64xf32>
    %54 = vector.shape_cast %45 : vector<48x64xf32> to vector<2x24x64xf32>
    %55 = vector.shape_cast %52 : vector<48x64xf32> to vector<2x24x64xf32>
    %56 = tpu.iota {dimensions = array<i32: 1>} : vector<24x24xi32>
    %c17_i32 = arith.constant 17 : i32
    %57 = vector.broadcast %c17_i32 : i32 to vector<24x24xi32>
    %58 = arith.cmpi slt, %56, %57 : vector<24x24xi32>
    %cst_34 = arith.constant 0.000000e+00 : f32
    %cst_35 = arith.constant -1.000000e+30 : f32
    %59 = vector.broadcast %cst_34 : f32 to vector<24x24xf32>
    %60 = vector.broadcast %cst_35 : f32 to vector<24x24xf32>
    %61 = arith.select %58, %59, %60 : vector<24x24xi1>, vector<24x24xf32>
    %c0_36 = arith.constant 0 : index
    %c0_37 = arith.constant 0 : index
    %c0_38 = arith.constant 0 : index
    %62 = vector.load %arg12[%c0_36, %c0_37, %c0_38] : memref<1x64x64xf32, #tpu.memory_space<vmem>>, vector<1x64x64xf32>
    %63 = vector.shape_cast %62 : vector<1x64x64xf32> to vector<64x64xf32>
    %cst_39 = arith.constant 0.000000e+00 : f32
    %64 = vector.broadcast %cst_39 : f32 to vector<48x64xf32>
    %65 = vector.extract_strided_slice %53 {offsets = [0, 0, 0], sizes = [2, 24, 16], strides = [1, 1, 1]} : vector<2x24x64xf32> to vector<2x24x16xf32>
    %66 = vector.extract_strided_slice %54 {offsets = [0, 0, 0], sizes = [2, 24, 16], strides = [1, 1, 1]} : vector<2x24x64xf32> to vector<2x24x16xf32>
    "tpu.trace_start"() <{level = 10 : i32, message = "bqd,bkd->bqk"}> : () -> ()
    %cst_40 = arith.constant dense<0.000000e+00> : vector<2x24x24xf32>
    %67 = tpu.matmul %65, %66, %cst_40 {dimension_numbers = #tpu.dot_dimension_numbers<[2], [2], [1], [1], [0, 0, 0, 1, 1, 1], [0], [0]>} : vector<2x24x16xf32>, vector<2x24x16xf32>, vector<2x24x24xf32> -> vector<2x24x24xf32>
    "tpu.trace_stop"() : () -> ()
    %68 = vector.shape_cast %61 : vector<24x24xf32> to vector<1x24x24xf32>
    %69 = vector.broadcast %68 : vector<1x24x24xf32> to vector<2x24x24xf32>
    %70 = arith.addf %67, %69 : vector<2x24x24xf32>
    %cst_41 = arith.constant dense<0xFF800000> : vector<2x24xf32>
    %71 = vector.multi_reduction <maximumf>, %70, %cst_41 [2] : vector<2x24x24xf32> to vector<2x24xf32>
    %72 = vector.shape_cast %71 : vector<2x24xf32> to vector<2x24x1xf32>
    %73 = vector.broadcast %72 : vector<2x24x1xf32> to vector<2x24x24xf32>
    %74 = arith.subf %70, %73 : vector<2x24x24xf32>
    %75 = math.exp %74 : vector<2x24x24xf32>
    %cst_42 = arith.constant dense<0.000000e+00> : vector<2x24xf32>
    %76 = vector.multi_reduction <add>, %75, %cst_42 [2] : vector<2x24x24xf32> to vector<2x24xf32>
    %77 = vector.shape_cast %76 : vector<2x24xf32> to vector<2x24x1xf32>
    %78 = tpu.reciprocal %77 {approx = true} : vector<2x24x1xf32> -> vector<2x24x1xf32>
    %79 = vector.broadcast %78 : vector<2x24x1xf32> to vector<2x24x24xf32>
    %80 = arith.mulf %75, %79 : vector<2x24x24xf32>
    %81 = vector.extract_strided_slice %55 {offsets = [0, 0, 0], sizes = [2, 24, 16], strides = [1, 1, 1]} : vector<2x24x64xf32> to vector<2x24x16xf32>
    "tpu.trace_start"() <{level = 10 : i32, message = "bqk,bkd->bqd"}> : () -> ()
    %cst_43 = arith.constant dense<0.000000e+00> : vector<2x24x16xf32>
    %82 = tpu.matmul %80, %81, %cst_43 {dimension_numbers = #tpu.dot_dimension_numbers<[2], [1], [1], [2], [0, 0, 0, 1, 1, 2], [0], [0]>} : vector<2x24x24xf32>, vector<2x24x16xf32>, vector<2x24x16xf32> -> vector<2x24x16xf32>
    "tpu.trace_stop"() : () -> ()
    %83 = vector.shape_cast %82 : vector<2x24x16xf32> to vector<48x16xf32>
    %84 = vector.extract_strided_slice %63 {offsets = [0, 0], sizes = [16, 64], strides = [1, 1]} : vector<64x64xf32> to vector<16x64xf32>
    %cst_44 = arith.constant dense<0.000000e+00> : vector<48x64xf32>
    %85 = tpu.matmul %83, %84, %cst_44 {dimension_numbers = #tpu.dot_dimension_numbers<[1], [0], [0], [1], [0, 0, 1, 1], [], []>} : vector<48x16xf32>, vector<16x64xf32>, vector<48x64xf32> -> vector<48x64xf32>
    %86 = arith.addf %64, %85 : vector<48x64xf32>
    %87 = vector.extract_strided_slice %53 {offsets = [0, 0, 16], sizes = [2, 24, 16], strides = [1, 1, 1]} : vector<2x24x64xf32> to vector<2x24x16xf32>
    %88 = vector.extract_strided_slice %54 {offsets = [0, 0, 16], sizes = [2, 24, 16], strides = [1, 1, 1]} : vector<2x24x64xf32> to vector<2x24x16xf32>
    "tpu.trace_start"() <{level = 10 : i32, message = "bqd,bkd->bqk"}> : () -> ()
    %cst_45 = arith.constant dense<0.000000e+00> : vector<2x24x24xf32>
    %89 = tpu.matmul %87, %88, %cst_45 {dimension_numbers = #tpu.dot_dimension_numbers<[2], [2], [1], [1], [0, 0, 0, 1, 1, 1], [0], [0]>} : vector<2x24x16xf32>, vector<2x24x16xf32>, vector<2x24x24xf32> -> vector<2x24x24xf32>
    "tpu.trace_stop"() : () -> ()
    %90 = vector.shape_cast %61 : vector<24x24xf32> to vector<1x24x24xf32>
    %91 = vector.broadcast %90 : vector<1x24x24xf32> to vector<2x24x24xf32>
    %92 = arith.addf %89, %91 : vector<2x24x24xf32>
    %cst_46 = arith.constant dense<0xFF800000> : vector<2x24xf32>
    %93 = vector.multi_reduction <maximumf>, %92, %cst_46 [2] : vector<2x24x24xf32> to vector<2x24xf32>
    %94 = vector.shape_cast %93 : vector<2x24xf32> to vector<2x24x1xf32>
    %95 = vector.broadcast %94 : vector<2x24x1xf32> to vector<2x24x24xf32>
    %96 = arith.subf %92, %95 : vector<2x24x24xf32>
    %97 = math.exp %96 : vector<2x24x24xf32>
    %cst_47 = arith.constant dense<0.000000e+00> : vector<2x24xf32>
    %98 = vector.multi_reduction <add>, %97, %cst_47 [2] : vector<2x24x24xf32> to vector<2x24xf32>
    %99 = vector.shape_cast %98 : vector<2x24xf32> to vector<2x24x1xf32>
    %100 = tpu.reciprocal %99 {approx = true} : vector<2x24x1xf32> -> vector<2x24x1xf32>
    %101 = vector.broadcast %100 : vector<2x24x1xf32> to vector<2x24x24xf32>
    %102 = arith.mulf %97, %101 : vector<2x24x24xf32>
    %103 = vector.extract_strided_slice %55 {offsets = [0, 0, 16], sizes = [2, 24, 16], strides = [1, 1, 1]} : vector<2x24x64xf32> to vector<2x24x16xf32>
    "tpu.trace_start"() <{level = 10 : i32, message = "bqk,bkd->bqd"}> : () -> ()
    %cst_48 = arith.constant dense<0.000000e+00> : vector<2x24x16xf32>
    %104 = tpu.matmul %102, %103, %cst_48 {dimension_numbers = #tpu.dot_dimension_numbers<[2], [1], [1], [2], [0, 0, 0, 1, 1, 2], [0], [0]>} : vector<2x24x24xf32>, vector<2x24x16xf32>, vector<2x24x16xf32> -> vector<2x24x16xf32>
    "tpu.trace_stop"() : () -> ()
    %105 = vector.shape_cast %104 : vector<2x24x16xf32> to vector<48x16xf32>
    %106 = vector.extract_strided_slice %63 {offsets = [16, 0], sizes = [16, 64], strides = [1, 1]} : vector<64x64xf32> to vector<16x64xf32>
    %cst_49 = arith.constant dense<0.000000e+00> : vector<48x64xf32>
    %107 = tpu.matmul %105, %106, %cst_49 {dimension_numbers = #tpu.dot_dimension_numbers<[1], [0], [0], [1], [0, 0, 1, 1], [], []>} : vector<48x16xf32>, vector<16x64xf32>, vector<48x64xf32> -> vector<48x64xf32>
    %108 = arith.addf %86, %107 : vector<48x64xf32>
    %109 = vector.extract_strided_slice %53 {offsets = [0, 0, 32], sizes = [2, 24, 16], strides = [1, 1, 1]} : vector<2x24x64xf32> to vector<2x24x16xf32>
    %110 = vector.extract_strided_slice %54 {offsets = [0, 0, 32], sizes = [2, 24, 16], strides = [1, 1, 1]} : vector<2x24x64xf32> to vector<2x24x16xf32>
    "tpu.trace_start"() <{level = 10 : i32, message = "bqd,bkd->bqk"}> : () -> ()
    %cst_50 = arith.constant dense<0.000000e+00> : vector<2x24x24xf32>
    %111 = tpu.matmul %109, %110, %cst_50 {dimension_numbers = #tpu.dot_dimension_numbers<[2], [2], [1], [1], [0, 0, 0, 1, 1, 1], [0], [0]>} : vector<2x24x16xf32>, vector<2x24x16xf32>, vector<2x24x24xf32> -> vector<2x24x24xf32>
    "tpu.trace_stop"() : () -> ()
    %112 = vector.shape_cast %61 : vector<24x24xf32> to vector<1x24x24xf32>
    %113 = vector.broadcast %112 : vector<1x24x24xf32> to vector<2x24x24xf32>
    %114 = arith.addf %111, %113 : vector<2x24x24xf32>
    %cst_51 = arith.constant dense<0xFF800000> : vector<2x24xf32>
    %115 = vector.multi_reduction <maximumf>, %114, %cst_51 [2] : vector<2x24x24xf32> to vector<2x24xf32>
    %116 = vector.shape_cast %115 : vector<2x24xf32> to vector<2x24x1xf32>
    %117 = vector.broadcast %116 : vector<2x24x1xf32> to vector<2x24x24xf32>
    %118 = arith.subf %114, %117 : vector<2x24x24xf32>
    %119 = math.exp %118 : vector<2x24x24xf32>
    %cst_52 = arith.constant dense<0.000000e+00> : vector<2x24xf32>
    %120 = vector.multi_reduction <add>, %119, %cst_52 [2] : vector<2x24x24xf32> to vector<2x24xf32>
    %121 = vector.shape_cast %120 : vector<2x24xf32> to vector<2x24x1xf32>
    %122 = tpu.reciprocal %121 {approx = true} : vector<2x24x1xf32> -> vector<2x24x1xf32>
    %123 = vector.broadcast %122 : vector<2x24x1xf32> to vector<2x24x24xf32>
    %124 = arith.mulf %119, %123 : vector<2x24x24xf32>
    %125 = vector.extract_strided_slice %55 {offsets = [0, 0, 32], sizes = [2, 24, 16], strides = [1, 1, 1]} : vector<2x24x64xf32> to vector<2x24x16xf32>
    "tpu.trace_start"() <{level = 10 : i32, message = "bqk,bkd->bqd"}> : () -> ()
    %cst_53 = arith.constant dense<0.000000e+00> : vector<2x24x16xf32>
    %126 = tpu.matmul %124, %125, %cst_53 {dimension_numbers = #tpu.dot_dimension_numbers<[2], [1], [1], [2], [0, 0, 0, 1, 1, 2], [0], [0]>} : vector<2x24x24xf32>, vector<2x24x16xf32>, vector<2x24x16xf32> -> vector<2x24x16xf32>
    "tpu.trace_stop"() : () -> ()
    %127 = vector.shape_cast %126 : vector<2x24x16xf32> to vector<48x16xf32>
    %128 = vector.extract_strided_slice %63 {offsets = [32, 0], sizes = [16, 64], strides = [1, 1]} : vector<64x64xf32> to vector<16x64xf32>
    %cst_54 = arith.constant dense<0.000000e+00> : vector<48x64xf32>
    %129 = tpu.matmul %127, %128, %cst_54 {dimension_numbers = #tpu.dot_dimension_numbers<[1], [0], [0], [1], [0, 0, 1, 1], [], []>} : vector<48x16xf32>, vector<16x64xf32>, vector<48x64xf32> -> vector<48x64xf32>
    %130 = arith.addf %108, %129 : vector<48x64xf32>
    %131 = vector.extract_strided_slice %53 {offsets = [0, 0, 48], sizes = [2, 24, 16], strides = [1, 1, 1]} : vector<2x24x64xf32> to vector<2x24x16xf32>
    %132 = vector.extract_strided_slice %54 {offsets = [0, 0, 48], sizes = [2, 24, 16], strides = [1, 1, 1]} : vector<2x24x64xf32> to vector<2x24x16xf32>
    "tpu.trace_start"() <{level = 10 : i32, message = "bqd,bkd->bqk"}> : () -> ()
    %cst_55 = arith.constant dense<0.000000e+00> : vector<2x24x24xf32>
    %133 = tpu.matmul %131, %132, %cst_55 {dimension_numbers = #tpu.dot_dimension_numbers<[2], [2], [1], [1], [0, 0, 0, 1, 1, 1], [0], [0]>} : vector<2x24x16xf32>, vector<2x24x16xf32>, vector<2x24x24xf32> -> vector<2x24x24xf32>
    "tpu.trace_stop"() : () -> ()
    %134 = vector.shape_cast %61 : vector<24x24xf32> to vector<1x24x24xf32>
    %135 = vector.broadcast %134 : vector<1x24x24xf32> to vector<2x24x24xf32>
    %136 = arith.addf %133, %135 : vector<2x24x24xf32>
    %cst_56 = arith.constant dense<0xFF800000> : vector<2x24xf32>
    %137 = vector.multi_reduction <maximumf>, %136, %cst_56 [2] : vector<2x24x24xf32> to vector<2x24xf32>
    %138 = vector.shape_cast %137 : vector<2x24xf32> to vector<2x24x1xf32>
    %139 = vector.broadcast %138 : vector<2x24x1xf32> to vector<2x24x24xf32>
    %140 = arith.subf %136, %139 : vector<2x24x24xf32>
    %141 = math.exp %140 : vector<2x24x24xf32>
    %cst_57 = arith.constant dense<0.000000e+00> : vector<2x24xf32>
    %142 = vector.multi_reduction <add>, %141, %cst_57 [2] : vector<2x24x24xf32> to vector<2x24xf32>
    %143 = vector.shape_cast %142 : vector<2x24xf32> to vector<2x24x1xf32>
    %144 = tpu.reciprocal %143 {approx = true} : vector<2x24x1xf32> -> vector<2x24x1xf32>
    %145 = vector.broadcast %144 : vector<2x24x1xf32> to vector<2x24x24xf32>
    %146 = arith.mulf %141, %145 : vector<2x24x24xf32>
    %147 = vector.extract_strided_slice %55 {offsets = [0, 0, 48], sizes = [2, 24, 16], strides = [1, 1, 1]} : vector<2x24x64xf32> to vector<2x24x16xf32>
    "tpu.trace_start"() <{level = 10 : i32, message = "bqk,bkd->bqd"}> : () -> ()
    %cst_58 = arith.constant dense<0.000000e+00> : vector<2x24x16xf32>
    %148 = tpu.matmul %146, %147, %cst_58 {dimension_numbers = #tpu.dot_dimension_numbers<[2], [1], [1], [2], [0, 0, 0, 1, 1, 2], [0], [0]>} : vector<2x24x24xf32>, vector<2x24x16xf32>, vector<2x24x16xf32> -> vector<2x24x16xf32>
    "tpu.trace_stop"() : () -> ()
    %149 = vector.shape_cast %148 : vector<2x24x16xf32> to vector<48x16xf32>
    %150 = vector.extract_strided_slice %63 {offsets = [48, 0], sizes = [16, 64], strides = [1, 1]} : vector<64x64xf32> to vector<16x64xf32>
    %cst_59 = arith.constant dense<0.000000e+00> : vector<48x64xf32>
    %151 = tpu.matmul %149, %150, %cst_59 {dimension_numbers = #tpu.dot_dimension_numbers<[1], [0], [0], [1], [0, 0, 1, 1], [], []>} : vector<48x16xf32>, vector<16x64xf32>, vector<48x64xf32> -> vector<48x64xf32>
    %152 = arith.addf %130, %151 : vector<48x64xf32>
    %153 = arith.addf %3, %152 : vector<48x64xf32>
    %c0_60 = arith.constant 0 : index
    %c0_61 = arith.constant 0 : index
    %c0_62 = arith.constant 0 : index
    %154 = vector.load %arg13[%c0_60, %c0_61, %c0_62] : memref<1x1x64xf32, #tpu.memory_space<vmem>>, vector<1x1x64xf32>
    %155 = vector.shape_cast %154 : vector<1x1x64xf32> to vector<1x64xf32>
    %156 = vector.broadcast %155 : vector<1x64xf32> to vector<48x64xf32>
    %157 = arith.addf %153, %156 : vector<48x64xf32>
    %cst_63 = arith.constant dense<0.000000e+00> : vector<48xf32>
    %158 = vector.multi_reduction <add>, %157, %cst_63 [1] : vector<48x64xf32> to vector<48xf32>
    %159 = vector.shape_cast %158 : vector<48xf32> to vector<48x1xf32>
    %cst_64 = arith.constant 6.400000e+01 : f32
    %160 = vector.broadcast %cst_64 : f32 to vector<48x1xf32>
    %161 = arith.divf %159, %160 : vector<48x1xf32>
    %162 = vector.broadcast %161 : vector<48x1xf32> to vector<48x64xf32>
    %163 = arith.subf %157, %162 : vector<48x64xf32>
    %164 = arith.mulf %163, %163 : vector<48x64xf32>
    %cst_65 = arith.constant dense<0.000000e+00> : vector<48xf32>
    %165 = vector.multi_reduction <add>, %164, %cst_65 [1] : vector<48x64xf32> to vector<48xf32>
    %166 = vector.shape_cast %165 : vector<48xf32> to vector<48x1xf32>
    %cst_66 = arith.constant 6.400000e+01 : f32
    %167 = vector.broadcast %cst_66 : f32 to vector<48x1xf32>
    %168 = arith.divf %166, %167 : vector<48x1xf32>
    %169 = vector.broadcast %161 : vector<48x1xf32> to vector<48x64xf32>
    %170 = arith.subf %157, %169 : vector<48x64xf32>
    %cst_67 = arith.constant 9.99999997E-7 : f32
    %171 = vector.broadcast %cst_67 : f32 to vector<48x1xf32>
    %172 = arith.addf %168, %171 : vector<48x1xf32>
    %173 = math.rsqrt %172 : vector<48x1xf32>
    %174 = vector.broadcast %173 : vector<48x1xf32> to vector<48x64xf32>
    %175 = arith.mulf %170, %174 : vector<48x64xf32>
    %c0_68 = arith.constant 0 : index
    %c0_69 = arith.constant 0 : index
    %c0_70 = arith.constant 0 : index
    %176 = vector.load %arg14[%c0_68, %c0_69, %c0_70] : memref<1x1x64xf32, #tpu.memory_space<vmem>>, vector<1x1x64xf32>
    %177 = vector.shape_cast %176 : vector<1x1x64xf32> to vector<1x64xf32>
    %178 = vector.broadcast %177 : vector<1x64xf32> to vector<48x64xf32>
    %179 = arith.mulf %175, %178 : vector<48x64xf32>
    %c0_71 = arith.constant 0 : index
    %c0_72 = arith.constant 0 : index
    %c0_73 = arith.constant 0 : index
    %180 = vector.load %arg15[%c0_71, %c0_72, %c0_73] : memref<1x1x64xf32, #tpu.memory_space<vmem>>, vector<1x1x64xf32>
    %181 = vector.shape_cast %180 : vector<1x1x64xf32> to vector<1x64xf32>
    %182 = vector.broadcast %181 : vector<1x64xf32> to vector<48x64xf32>
    %183 = arith.addf %179, %182 : vector<48x64xf32>
    %c0_74 = arith.constant 0 : index
    %c0_75 = arith.constant 0 : index
    %c0_76 = arith.constant 0 : index
    %184 = vector.load %arg16[%c0_74, %c0_75, %c0_76] : memref<1x64x256xf32, #tpu.memory_space<vmem>>, vector<1x64x256xf32>
    %185 = vector.shape_cast %184 : vector<1x64x256xf32> to vector<64x256xf32>
    %cst_77 = arith.constant dense<0.000000e+00> : vector<48x256xf32>
    %186 = tpu.matmul %183, %185, %cst_77 {dimension_numbers = #tpu.dot_dimension_numbers<[1], [0], [0], [1], [0, 0, 1, 1], [], []>} : vector<48x64xf32>, vector<64x256xf32>, vector<48x256xf32> -> vector<48x256xf32>
    %c0_78 = arith.constant 0 : index
    %c0_79 = arith.constant 0 : index
    %c0_80 = arith.constant 0 : index
    %187 = vector.load %arg17[%c0_78, %c0_79, %c0_80] : memref<1x1x256xf32, #tpu.memory_space<vmem>>, vector<1x1x256xf32>
    %188 = vector.shape_cast %187 : vector<1x1x256xf32> to vector<1x256xf32>
    %189 = vector.broadcast %188 : vector<1x256xf32> to vector<48x256xf32>
    %190 = arith.addf %186, %189 : vector<48x256xf32>
    %cst_81 = arith.constant 5.000000e-01 : f32
    %191 = vector.broadcast %cst_81 : f32 to vector<48x256xf32>
    %192 = arith.mulf %191, %190 : vector<48x256xf32>
    %cst_82 = arith.constant 4.471500e-02 : f32
    %193 = vector.broadcast %cst_82 : f32 to vector<48x256xf32>
    %194 = arith.mulf %193, %190 : vector<48x256xf32>
    %195 = arith.mulf %194, %190 : vector<48x256xf32>
    %196 = arith.mulf %195, %190 : vector<48x256xf32>
    %197 = arith.addf %190, %196 : vector<48x256xf32>
    %cst_83 = arith.constant 0.797884583 : f32
    %198 = vector.broadcast %cst_83 : f32 to vector<48x256xf32>
    %199 = arith.mulf %198, %197 : vector<48x256xf32>
    %200 = math.tanh %199 : vector<48x256xf32>
    %cst_84 = arith.constant 1.000000e+00 : f32
    %201 = vector.broadcast %cst_84 : f32 to vector<48x256xf32>
    %202 = arith.addf %201, %200 : vector<48x256xf32>
    %203 = arith.mulf %192, %202 : vector<48x256xf32>
    %c0_85 = arith.constant 0 : index
    %c0_86 = arith.constant 0 : index
    %c0_87 = arith.constant 0 : index
    %204 = vector.load %arg18[%c0_85, %c0_86, %c0_87] : memref<1x256x64xf32, #tpu.memory_space<vmem>>, vector<1x256x64xf32>
    %205 = vector.shape_cast %204 : vector<1x256x64xf32> to vector<256x64xf32>
    %cst_88 = arith.constant dense<0.000000e+00> : vector<48x64xf32>
    %206 = tpu.matmul %203, %205, %cst_88 {dimension_numbers = #tpu.dot_dimension_numbers<[1], [0], [0], [1], [0, 0, 1, 1], [], []>} : vector<48x256xf32>, vector<256x64xf32>, vector<48x64xf32> -> vector<48x64xf32>
    %c0_89 = arith.constant 0 : index
    %c0_90 = arith.constant 0 : index
    %c0_91 = arith.constant 0 : index
    %207 = vector.load %arg19[%c0_89, %c0_90, %c0_91] : memref<1x1x64xf32, #tpu.memory_space<vmem>>, vector<1x1x64xf32>
    %208 = vector.shape_cast %207 : vector<1x1x64xf32> to vector<1x64xf32>
    %209 = vector.broadcast %208 : vector<1x64xf32> to vector<48x64xf32>
    %210 = arith.addf %206, %209 : vector<48x64xf32>
    %211 = arith.addf %157, %210 : vector<48x64xf32>
    %c0_92 = arith.constant 0 : index
    %c0_93 = arith.constant 0 : index
    %212 = vector.load %arg20[%c0_92, %c0_93] : memref<48x64xf32, #tpu.memory_space<vmem>>, vector<48x64xf32>
    tpu.vector_store %arg20[%c0_92, %c0_93], %211 {strides = array<i32>} : memref<48x64xf32, #tpu.memory_space<vmem>>, vector<48x64xf32>,
    return
  }
  func.func @transform_0(%arg0: i32) -> (i32, i32) {
    %c0_i32 = arith.constant 0 : i32
    %c0_i32_0 = arith.constant 0 : i32
    %c0_i32_1 = arith.constant 0 : i32
    return %c0_i32, %c0_i32_0 : i32, i32
  }
  func.func @transform_1(%arg0: i32) -> (i32, i32) {
    %c0_i32 = arith.constant 0 : i32
    %c0_i32_0 = arith.constant 0 : i32
    %c0_i32_1 = arith.constant 0 : i32
    return %c0_i32, %c0_i32_0 : i32, i32
  }
  func.func @transform_2(%arg0: i32) -> (i32, i32) {
    %c0_i32 = arith.constant 0 : i32
    %c0_i32_0 = arith.constant 0 : i32
    %c0_i32_1 = arith.constant 0 : i32
    return %c0_i32, %c0_i32_0 : i32, i32
  }
  func.func @transform_3(%arg0: i32) -> (i32, i32, i32) {
    %c0_i32 = arith.constant 0 : i32
    %c0_i32_0 = arith.constant 0 : i32
    %c0_i32_1 = arith.constant 0 : i32
    return %arg0, %c0_i32, %c0_i32_0 : i32, i32, i32
  }
  func.func @transform_4(%arg0: i32) -> (i32, i32, i32) {
    %c0_i32 = arith.constant 0 : i32
    %c0_i32_0 = arith.constant 0 : i32
    %c0_i32_1 = arith.constant 0 : i32
    return %arg0, %c0_i32, %c0_i32_0 : i32, i32, i32
  }
  func.func @transform_5(%arg0: i32) -> (i32, i32, i32) {
    %c0_i32 = arith.constant 0 : i32
    %c0_i32_0 = arith.constant 0 : i32
    %c0_i32_1 = arith.constant 0 : i32
    return %arg0, %c0_i32, %c0_i32_0 : i32, i32, i32
  }
  func.func @transform_6(%arg0: i32) -> (i32, i32, i32) {
    %c0_i32 = arith.constant 0 : i32
    %c0_i32_0 = arith.constant 0 : i32
    %c0_i32_1 = arith.constant 0 : i32
    return %arg0, %c0_i32, %c0_i32_0 : i32, i32, i32
  }
  func.func @transform_7(%arg0: i32) -> (i32, i32, i32) {
    %c0_i32 = arith.constant 0 : i32
    %c0_i32_0 = arith.constant 0 : i32
    %c0_i32_1 = arith.constant 0 : i32
    return %arg0, %c0_i32, %c0_i32_0 : i32, i32, i32
  }
  func.func @transform_8(%arg0: i32) -> (i32, i32, i32) {
    %c0_i32 = arith.constant 0 : i32
    %c0_i32_0 = arith.constant 0 : i32
    %c0_i32_1 = arith.constant 0 : i32
    return %arg0, %c0_i32, %c0_i32_0 : i32, i32, i32
  }
  func.func @transform_9(%arg0: i32) -> (i32, i32, i32) {
    %c0_i32 = arith.constant 0 : i32
    %c0_i32_0 = arith.constant 0 : i32
    %c0_i32_1 = arith.constant 0 : i32
    return %arg0, %c0_i32, %c0_i32_0 : i32, i32, i32
  }
  func.func @transform_10(%arg0: i32) -> (i32, i32, i32) {
    %c0_i32 = arith.constant 0 : i32
    %c0_i32_0 = arith.constant 0 : i32
    %c0_i32_1 = arith.constant 0 : i32
    return %arg0, %c0_i32, %c0_i32_0 : i32, i32, i32
  }
  func.func @transform_11(%arg0: i32) -> (i32, i32, i32) {
    %c0_i32 = arith.constant 0 : i32
    %c0_i32_0 = arith.constant 0 : i32
    %c0_i32_1 = arith.constant 0 : i32
    return %arg0, %c0_i32, %c0_i32_0 : i32, i32, i32
  }
  func.func @transform_12(%arg0: i32) -> (i32, i32, i32) {
    %c0_i32 = arith.constant 0 : i32
    %c0_i32_0 = arith.constant 0 : i32
    %c0_i32_1 = arith.constant 0 : i32
    return %arg0, %c0_i32, %c0_i32_0 : i32, i32, i32
  }
  func.func @transform_13(%arg0: i32) -> (i32, i32, i32) {
    %c0_i32 = arith.constant 0 : i32
    %c0_i32_0 = arith.constant 0 : i32
    %c0_i32_1 = arith.constant 0 : i32
    return %arg0, %c0_i32, %c0_i32_0 : i32, i32, i32
  }
  func.func @transform_14(%arg0: i32) -> (i32, i32, i32) {
    %c0_i32 = arith.constant 0 : i32
    %c0_i32_0 = arith.constant 0 : i32
    %c0_i32_1 = arith.constant 0 : i32
    return %arg0, %c0_i32, %c0_i32_0 : i32, i32, i32
  }
  func.func @transform_15(%arg0: i32) -> (i32, i32, i32) {
    %c0_i32 = arith.constant 0 : i32
    %c0_i32_0 = arith.constant 0 : i32
    %c0_i32_1 = arith.constant 0 : i32
    return %arg0, %c0_i32, %c0_i32_0 : i32, i32, i32
  }
  func.func @transform_16(%arg0: i32) -> (i32, i32, i32) {
    %c0_i32 = arith.constant 0 : i32
    %c0_i32_0 = arith.constant 0 : i32
    %c0_i32_1 = arith.constant 0 : i32
    return %arg0, %c0_i32, %c0_i32_0 : i32, i32, i32
  }
  func.func @transform_17(%arg0: i32) -> (i32, i32, i32) {
    %c0_i32 = arith.constant 0 : i32
    %c0_i32_0 = arith.constant 0 : i32
    %c0_i32_1 = arith.constant 0 : i32
    return %arg0, %c0_i32, %c0_i32_0 : i32, i32, i32
  }
  func.func @transform_18(%arg0: i32) -> (i32, i32, i32) {
    %c0_i32 = arith.constant 0 : i32
    %c0_i32_0 = arith.constant 0 : i32
    %c0_i32_1 = arith.constant 0 : i32
    return %arg0, %c0_i32, %c0_i32_0 : i32, i32, i32
  }
  func.func @transform_19(%arg0: i32) -> (i32, i32) {
    %c0_i32 = arith.constant 0 : i32
    %c0_i32_0 = arith.constant 0 : i32
    %c0_i32_1 = arith.constant 0 : i32
    return %c0_i32, %c0_i32_0 : i32, i32
  }
}

</mosaic_0001>

<bundles_post_ra>
// kernel: vit_mae_backbone_forward.1
= control target key start
LH: loop header
LB: loop body
LE: loop exit
PB: predicated region body
PF: predicated region fallthrough
CT: control target
= control target key end

     0   :  { %s4878_s0 = inlined_call_operand.vmem [shape: f32[48,192], index: 0, kind: input, shape index: {}]   ;;  %s4879_s1 = inlined_call_operand.vmem [shape: f32[192,64], index: 1, kind: input, shape index: {}]   ;;  %s4880_s2 = inlined_call_operand.vmem [shape: f32[48,64], index: 2, kind: input, shape index: {}]   ;;  %s4881_s3 = inlined_call_operand.vmem [shape: f32[2,1,64], index: 3, kind: input, shape index: {}, may-alias: {3,13}]   ;;  %s4882_s4 = inlined_call_operand.vmem [shape: f32[2,1,64], index: 4, kind: input, shape index: {}, may-alias: {4,14}]   ;;  %s4883_s5 = inlined_call_operand.vmem [shape: f32[2,64,64], index: 5, kind: input, shape index: {}]   ;;  %s4884_s6 = inlined_call_operand.vmem [shape: f32[2,1,64], index: 6, kind: input, shape index: {}]   ;;  %s4885_s7 = inlined_call_operand.vmem [shape: f32[2,64,64], index: 7, kind: input, shape index: {}]   ;;  %s4886_s8 = inlined_call_operand.vmem [shape: f32[2,1,64], index: 8, kind: input, shape index: {}]   ;;  %s4887_s9 = inlined_call_operand.vmem [shape: f32[2,64,64], index: 9, kind: input, shape index: {}]   ;;  %s4888_s10 = inlined_call_operand.vmem [shape: f32[2,1,64], index: 10, kind: input, shape index: {}]   ;;  %s4889_s11 = inlined_call_operand.vmem [shape: f32[2,64,64], index: 11, kind: input, shape index: {}]   ;;  %s4890_s12 = inlined_call_operand.vmem [shape: f32[2,1,64], index: 12, kind: input, shape index: {}]   ;;  %s4891_s13 = inlined_call_operand.vmem [shape: f32[2,1,64], index: 13, kind: input, shape index: {}, may-alias: {3,13}]   ;;  %s4892_s14 = inlined_call_operand.vmem [shape: f32[2,1,64], index: 14, kind: input, shape index: {}, may-alias: {4,14}]   ;;  %s4893_s15 = inlined_call_operand.vmem [shape: f32[2,64,256], index: 15, kind: input, shape index: {}]   ;;  %s4894_s16 = inlined_call_operand.vmem [shape: f32[2,1,256], index: 16, kind: input, shape index: {}]   ;;  %s4895_s17 = inlined_call_operand.vmem [shape: f32[2,256,64], index: 17, kind: input, shape index: {}]   ;;  %s4896_s18 = inlined_call_operand.vmem [shape: f32[2,1,64], index: 18, kind: input, shape index: {}]   ;;  %s4897_s19 = inlined_call_operand.vmem [shape: f32[48,64], index: 19, kind: output, shape index: {}]  }
   0x1   :  { %4904 = sst [smem:[#allocation3_spill]] %s4878_s0  ;;  %s3728_s0 = smov 0  }
   0x2   :  { %4905 = sst [smem:[#allocation4_spill]] %s4879_s1 }
   0x3   :  { %4906 = sst [smem:[#allocation5_spill]] %s4880_s2 }
   0x4   :  { %4907 = sst [smem:[#allocation6_spill]] %s4881_s3 }
   0x5   :  { %4908 = sst [smem:[#allocation7_spill]] %s4882_s4 }
   0x6   :  { %4909 = sst [smem:[#allocation8_spill]] %s4883_s5 }
   0x7   :  { %4910 = sst [smem:[#allocation9_spill]] %s4884_s6 }
   0x8   :  { %4911 = sst [smem:[#allocation10_spill]] %s4885_s7 }
   0x9   :  { %4912 = sst [smem:[#allocation11_spill]] %s4886_s8 }
   0xa   :  { %4913 = sst [smem:[#allocation12_spill]] %s4887_s9 }
   0xb   :  { %4914 = sst [smem:[#allocation13_spill]] %s4897_s19 }
   0xc LB: > { %4915 = sst [smem:[#allocation2_spill]] %s3621_s0  ;;  %s3218_s30 = sadd.s32 4294967295, %s3621_s0   ;;  %s3621_s0 = sphi %s3728_s0, %s29_s0  }
   0xd   : > { %p3221_p0 = scmp.ge.s32.totalorder %s3621_s0, 1  ;;  %p663_p1 = scmp.lt.s32.totalorder %s3621_s0, 3 }
   0xf   : > { %p664_p2 = pnand %p3221_p0, %p663_p1 }
  0x10   : > { %p770_p3 = scmp.lt.s32.totalorder (!%p664_p2), %s3218_s30, 1  ;;  %s4919_s5 = sld [smem:[#allocation8_spill]] (!%p664_p2) }
  0x11   : > { %667 = sbr.rel (%p664_p2) target bundleno = 2904 (0xb58), region = 96  ;;  %s4920_s7 = sld [smem:[#allocation10_spill]] (!%p664_p2) }
  0x12   : > { %s4922_s9 = sld [smem:[#allocation12_spill]] (!%p664_p2)  ;;  %p3235_p4 = scmp.ne.s32.totalorder (!%p664_p2), %s3218_s30, 0 }
  0x16   : > { %s3736_s20 = scalar_select %p770_p3, %s3218_s30, 1 }
  0x17   : > { %s4923_s27 = sld [smem:[#allocation4_spill]] (!%p3235_p4) }
  0x18   : > { %s3370_s3 = sshll.u32 %s3736_s20, 6  ;;  %s3374_s8 = sshll.u32 %s3736_s20, 7 }
  0x19   : > { %s3754_s1 = scalar_lea.vmem %s4919_s5, %s3370_s3  ;;  %s3759_s22 = scalar_lea.vmem %s4920_s7, %s3370_s3 }
  0x1a   : > { %s3768_s26 = scalar_lea.vmem %s4922_s9, %s3370_s3  ;;  %s3777_s6 = scalar_lea.vmem %s4889_s11, %s3370_s3 }
  0x1b   : > { %s3795_s29 = scalar_lea.vmem %s4893_s15, %s3374_s8  ;;  %s3232_s5 = sshll.u32 %s3736_s20, 1 }
  0x1c   : > { %s3801_s19 = scalar_lea.vmem %s4894_s16, %s3232_s5  ;;  %s3375_s0 = sshll.u32 %s3736_s20, 8 }
  0x1d   : > { %s3807_s23 = scalar_lea.vmem %s4895_s17, %s3375_s0  ;;  %s830_s9 = scalar_lea.vmem %s4896_s18, %s3736_s20 }
  0x1e   : > { %834 = sbr.rel (%p3235_p4) target bundleno = 228 (0xe4), region = 100  ;;  %s4924_s25 = sld [smem:[#allocation3_spill]] (!%p3235_p4) }
  0x1f   : > { %s4925_s21 = sld [smem:[#allocation5_spill]] (!%p3235_p4) }
  0x20   : > { %s4926_s4 = sld [smem:[#allocation13_spill]] (!%p3235_p4) }
  0x23   : > { %v862_v0 = vld [vmem:[%s4923_s27 + $0x78] sm:$0xff]  ;;  %v861_v1 = vld [vmem:[%s4923_s27 + $0x70] sm:$0xff]  ;;  %v860_v3 = vld [vmem:[%s4923_s27 + $0x68] sm:$0xff]  ;;  %vm877_vm0 = vcmask 523264  }
  0x24   : > { %3376 = vmatpush.msra.mxu2 %v862_v0  ;;  %896 = vmatpush.msra.mxu0 %v862_v0  ;;  %v870_v2 = vld [vmem:[%s4923_s27 + $0xb8] sm:$0xff]  ;;  %v869_v4 = vld [vmem:[%s4923_s27 + $0xb0] sm:$0xff]  ;;  %v868_v5 = vld [vmem:[%s4923_s27 + $0xa8] sm:$0xff] }
  0x25   : > { %939 = vmatpush.msra.mxu1 %v870_v2  ;;  %3392 = vmatpush.msra.mxu3 %v870_v2  ;;  %v859_v6 = vld [vmem:[%s4923_s27 + $0x60] sm:$0xff]  ;;  %v858_v8 = vld [vmem:[%s4923_s27 + $0x58] sm:$0xff]  ;;  %v857_v10 = vld [vmem:[%s4923_s27 + $0x50] sm:$0xff] }
  0x26   : > { %3377 = vmatpush.msra.mxu2 %v861_v1  ;;  %897 = vmatpush.msra.mxu0 %v861_v1  ;;  %v867_v7 = vld [vmem:[%s4923_s27 + $0xa0] sm:$0xff]  ;;  %v866_v9 = vld [vmem:[%s4923_s27 + $0x98] sm:$0xff]  ;;  %v865_v11 = vld [vmem:[%s4923_s27 + $0x90] sm:$0xff] }
  0x27   : > { %940 = vmatpush.msra.mxu1 %v869_v4  ;;  %3393 = vmatpush.msra.mxu3 %v869_v4  ;;  %v856_v12 = vld [vmem:[%s4923_s27 + $0x48] sm:$0xff]  ;;  %v855_v14 = vld [vmem:[%s4923_s27 + $0x40] sm:$0xff]  ;;  %v854_v16 = vld [vmem:[%s4923_s27 + $0x38] sm:$0xff] }
  0x28   : > { %3378 = vmatpush.msra.mxu2 %v860_v3  ;;  %898 = vmatpush.msra.mxu0 %v860_v3  ;;  %v864_v13 = vld [vmem:[%s4923_s27 + $0x88] sm:$0xff]  ;;  %v863_v15 = vld [vmem:[%s4923_s27 + $0x80] sm:$0xff]  ;;  %v853_v18 = vld [vmem:[%s4923_s27 + $0x30] sm:$0xff] }
  0x29   : > { %941 = vmatpush.msra.mxu1 %v868_v5  ;;  %3394 = vmatpush.msra.mxu3 %v868_v5  ;;  %v836_v17 = vld [vmem:[%s4924_s25 + $0x8] sm:$0xff]  ;;  %v851_v21 = vld [vmem:[%s4923_s27 + $0x20] sm:$0xff]  ;;  %v850_v22 = vld [vmem:[%s4923_s27 + $0x18] sm:$0xff] }
  0x2a   : > { %3379 = vmatpush.msra.mxu2 %v859_v6  ;;  %899 = vmatpush.msra.mxu0 %v859_v6  ;;  %v844_v19 = vld [vmem:[%s4924_s25 + $0x48] sm:$0xff]  ;;  %v838_v23 = vld [vmem:[%s4924_s25 + $0x18] sm:$0xff]  ;;  %v849_v24 = vld [vmem:[%s4923_s27 + $0x10] sm:$0xff] }
  0x2b   : > { %942 = vmatpush.msra.mxu1 %v867_v7  ;;  %3395 = vmatpush.msra.mxu3 %v867_v7  ;;  %v852_v20 = vld [vmem:[%s4923_s27 + $0x28] sm:$0xff]  ;;  %v846_v25 = vld [vmem:[%s4924_s25 + $0x58] sm:$0xff]  ;;  %v847_v27 = vld [vmem:[%s4923_s27] sm:$0xff] }
  0x2c   : > { %3380 = vmatpush.msra.mxu2 %v858_v8  ;;  %900 = vmatpush.msra.mxu0 %v858_v8  ;;  %v848_v26 = vld [vmem:[%s4923_s27 + $0x8] sm:$0xff]  ;;  %v839_v28 = vld [vmem:[%s4924_s25 + $0x20] sm:$0xff]  ;;  %v841_v31 = vld [vmem:[%s4924_s25 + $0x30] sm:$0xff] }
  0x2d   : > { %943 = vmatpush.msra.mxu1 %v866_v9  ;;  %3396 = vmatpush.msra.mxu3 %v866_v9  ;;  %v835_v29 = vld [vmem:[%s4924_s25] sm:$0xff]  ;;  %v840_v30 = vld [vmem:[%s4924_s25 + $0x28] sm:$0xff]  ;;  %v837_v32 = vld [vmem:[%s4924_s25 + $0x10] sm:$0xff] }
  0x2e   : > { %3381 = vmatpush.msra.mxu2 %v857_v10  ;;  %901 = vmatpush.msra.mxu0 %v857_v10  ;;  %v842_v33 = vld [vmem:[%s4924_s25 + $0x38] sm:$0xff]  ;;  %v843_v34 = vld [vmem:[%s4924_s25 + $0x40] sm:$0xff]  ;;  %v845_v35 = vld [vmem:[%s4924_s25 + $0x50] sm:$0xff] }
  0x2f   : > { %944 = vmatpush.msra.mxu1 %v865_v11  ;;  %3397 = vmatpush.msra.mxu3 %v865_v11  ;;  %v871_v38 = vld [vmem:[%s4925_s21] sm:$0xff]  ;;  %v873_v42 = vld [vmem:[%s4925_s21 + $0x10] sm:$0xff]  ;;  %v872_v45 = vld [vmem:[%s4925_s21 + $0x8] sm:$0xff] }
  0x30   : > { %3382 = vmatpush.msra.mxu2 %v856_v12  ;;  %902 = vmatpush.msra.mxu0 %v856_v12  ;;  %v874_v51 = vld [vmem:[%s4925_s21 + $0x18] sm:$0xff]  ;;  %v875_v56 = vld [vmem:[%s4925_s21 + $0x20] sm:$0xff]  ;;  %v876_v61 = vld [vmem:[%s4925_s21 + $0x28] sm:$0xff] }
  0x31   : > { %945 = vmatpush.msra.mxu1 %v864_v13  ;;  %3398 = vmatpush.msra.mxu3 %v864_v13 }
  0x32   : > { %3383 = vmatpush.msra.mxu2 %v855_v14  ;;  %903 = vmatpush.msra.mxu0 %v855_v14 }
  0x33   : > { %946 = vmatpush.msra.mxu1 %v863_v15  ;;  %3399 = vmatpush.msra.mxu3 %v863_v15 }
  0x34   : > { %3384 = vmatpush.msra.mxu2 %v854_v16  ;;  %904 = vmatpush.msra.mxu0 %v854_v16 }
  0x35   : > { %3236 = vmatmul.msk.f32.vlgmr.msra.gmra.mxu1 %vm877_vm0, %v836_v17  ;;  %3240 = vmatmul.msk.f32.vlgmr.msra.gmra.mxu3 %vm877_vm0, %v844_v19 }
  0x36   : > { %3385 = vmatpush.msra.mxu2 %v853_v18  ;;  %905 = vmatpush.msra.mxu0 %v853_v18 }
  0x38   : > { %3386 = vmatpush.msra.mxu2 %v852_v20  ;;  %906 = vmatpush.msra.mxu0 %v852_v20 }
  0x3a   : > { %3387 = vmatpush.msra.mxu2 %v851_v21  ;;  %907 = vmatpush.msra.mxu0 %v851_v21 }
  0x3c   : > { %3388 = vmatpush.msra.mxu2 %v850_v22  ;;  %908 = vmatpush.msra.mxu0 %v850_v22 }
  0x3d   : > { %3237 = vmatmul.msk.f32.gmra.mxu1 %vm877_vm0, %v838_v23  ;;  %3241 = vmatmul.msk.f32.gmra.mxu3 %vm877_vm0, %v846_v25 }
  0x3e   : > { %3389 = vmatpush.msra.mxu2 %v849_v24  ;;  %909 = vmatpush.msra.mxu0 %v849_v24 }
  0x40   : > { %3390 = vmatpush.msra.mxu2 %v848_v26  ;;  %910 = vmatpush.msra.mxu0 %v848_v26 }
  0x42   : > { %3391 = vmatpush.msra.mxu2 %v847_v27  ;;  %911 = vmatpush.msra.mxu0 %v847_v27 }
  0x43   : > { %918 = vmatmul.f32.vlgmr.msra.gmra.mxu2 %v839_v28  ;;  %912 = vmatmul.f32.vlgmr.msra.gmra.mxu0 %v835_v29 }
  0x45   : > { %3238 = vmatmul.msk.f32.gmra.mxu1 %vm877_vm0, %v840_v30 }
  0x4b   : > { %921 = vmatmul.f32.gmra.mxu2 %v841_v31  ;;  %915 = vmatmul.f32.gmra.mxu0 %v837_v32 }
  0x4d   : > { %3239 = vmatmul.msk.f32.gmra.mxu1 %vm877_vm0, %v842_v33 }
  0x53   : > { %924 = vmatmul.f32.gmra.mxu2 %v843_v34 }
  0x5b   : > { %927 = vmatmul.f32.gmra.mxu2 %v845_v35 }
  0xb2   : > { %v948_v36 = vpop.f32.mrf.mxu1 }
  0xb8   : > { %v960_v57 = vpop.f32.mrf.mxu3 }
  0xba   : > { %v951_v37 = vpop.f32.mrf.mxu1 }
  0xc0   : > { %v913_v39 = vpop.f32.mrf.mxu0  ;;  %v963_v63 = vpop.f32.mrf.mxu3 }
  0xc1   : > { %v914_v40 = vadd.f32 %v913_v39, %v871_v38 }
  0xc2   : > { %v954_v43 = vpop.f32.mrf.mxu1 }
  0xc3   : > { %v949_v41 = vadd.f32 %v948_v36, %v914_v40 }
  0xc5   : > { %966 = vst.msk [vmem:[%s4926_s4] sm:$0xff] %vm877_vm0, %v949_v41 }
  0xc6   : > { %v919_v44 = vpop.f32.mrf.mxu2 }
  0xc7   : > { %v920_v46 = vadd.f32 %v919_v44, %v873_v42 }
  0xc8   : > { %v916_v47 = vpop.f32.mrf.mxu0 }
  0xc9   : > { %v955_v48 = vadd.f32 %v954_v43, %v920_v46  ;;  %v917_v49 = vadd.f32 %v916_v47, %v872_v45 }
  0xca   : > { %v957_v53 = vpop.f32.mrf.mxu1 }
  0xcb   : > { %968 = vst.msk [vmem:[%s4926_s4 + $0x10] sm:$0xff] %vm877_vm0, %v955_v48  ;;  %v952_v50 = vadd.f32 %v951_v37, %v917_v49 }
  0xcd   : > { %967 = vst.msk [vmem:[%s4926_s4 + $0x8] sm:$0xff] %vm877_vm0, %v952_v50 }
  0xce   : > { %v922_v52 = vpop.f32.mrf.mxu2 }
  0xcf   : > { %v923_v54 = vadd.f32 %v922_v52, %v874_v51 }
  0xd1   : > { %v958_v55 = vadd.f32 %v957_v53, %v923_v54 }
  0xd3   : > { %969 = vst.msk [vmem:[%s4926_s4 + $0x18] sm:$0xff] %vm877_vm0, %v958_v55 }
  0xd6   : > { %v925_v58 = vpop.f32.mrf.mxu2 }
  0xd7   : > { %v926_v59 = vadd.f32 %v925_v58, %v875_v56 }
  0xd9   : > { %v961_v60 = vadd.f32 %v960_v57, %v926_v59 }
  0xdb   : > { %970 = vst.msk [vmem:[%s4926_s4 + $0x20] sm:$0xff] %vm877_vm0, %v961_v60 }
  0xde   : > { %v928_v62 = vpop.f32.mrf.mxu2 }
  0xdf   : > { %v929_v0 = vadd.f32 %v928_v62, %v876_v61 }
  0xe1   : > { %v964_v1 = vadd.f32 %v963_v63, %v929_v0 }
  0xe3   : > { %971 = vst.msk [vmem:[%s4926_s4 + $0x28] sm:$0xff] %vm877_vm0, %v964_v1 }
  0xe4 PF: > { %s4927_s3 = sld [smem:[#allocation13_spill]]  ;;  %vm978_vm1 = vcmask 523264   ;;  %v3623_v10 = vmov 64.0   ;;  %v1145_v41 = vld [vmem:[%s3754_s1 + $0x38] sm:$0xff]  ;;  %v1144_v44 = vld [vmem:[%s3754_s1 + $0x30] sm:$0xff]  ;;  %v1143_v47 = vld [vmem:[%s3754_s1 + $0x28] sm:$0xff] }
  0xe5   : > { %3463 = vrcp.f32 %v3623_v10  ;;  %v1216_v42 = vld [vmem:[%s3759_s22 + $0x38] sm:$0xff]  ;;  %1176 = vmatpush.msra.mxu0 %v1145_v41  ;;  %v1215_v45 = vld [vmem:[%s3759_s22 + $0x30] sm:$0xff]  ;;  %v1214_v48 = vld [vmem:[%s3759_s22 + $0x28] sm:$0xff]  ;;  %s4930_s4 = sld [smem:[#allocation7_spill]]  ;;  %s3626_s24 = smov 96  }
  0xe6   : > { %v1263_v43 = vld [vmem:[%s3768_s26 + $0x38] sm:$0xff]  ;;  %1229 = vmatpush.msra.mxu1 %v1216_v42  ;;  %v1262_v46 = vld [vmem:[%s3768_s26 + $0x30] sm:$0xff]  ;;  %v1261_v49 = vld [vmem:[%s3768_s26 + $0x28] sm:$0xff]  ;;  %s4932_s28 = sld [smem:[#allocation11_spill]]  ;;  %s3627_s8 = smov 80  }
  0xe7   : > { %1276 = vmatpush.msra.mxu2 %v1263_v43  ;;  %1177 = vmatpush.msra.mxu0 %v1144_v44  ;;  %v1142_v50 = vld [vmem:[%s3754_s1 + $0x20] sm:$0xff]  ;;  %v1141_v53 = vld [vmem:[%s3754_s1 + $0x18] sm:$0xff]  ;;  %v1140_v56 = vld [vmem:[%s3754_s1 + $0x10] sm:$0xff] }
  0xe8   : > { %1230 = vmatpush.msra.mxu1 %v1215_v45  ;;  %v1213_v51 = vld [vmem:[%s3759_s22 + $0x20] sm:$0xff]  ;;  %v1212_v54 = vld [vmem:[%s3759_s22 + $0x18] sm:$0xff]  ;;  %v1211_v57 = vld [vmem:[%s3759_s22 + $0x10] sm:$0xff] }
  0xe9   : > { %1277 = vmatpush.msra.mxu2 %v1262_v46  ;;  %1178 = vmatpush.msra.mxu0 %v1143_v47  ;;  %v1260_v52 = vld [vmem:[%s3768_s26 + $0x20] sm:$0xff]  ;;  %v1259_v55 = vld [vmem:[%s3768_s26 + $0x18] sm:$0xff]  ;;  %v1258_v58 = vld [vmem:[%s3768_s26 + $0x10] sm:$0xff] }
  0xea   : > { %v972_v2 = vld [vmem:[%s4927_s3] sm:$0xff]  ;;  %v974_v3 = vld [vmem:[%s4927_s3 + $0x10] sm:$0xff]  ;;  %v973_v6 = vld [vmem:[%s4927_s3 + $0x8] sm:$0xff]  ;;  %1231 = vmatpush.msra.mxu1 %v1214_v48 }
  0xeb   : > { %v979_v4 = vsel %vm978_vm1, %v972_v2, 0.0  ;;  %v985_v5 = vsel %vm978_vm1, %v974_v3, 0.0  ;;  %v982_v7 = vsel %vm978_vm1, %v973_v6, 0.0  ;;  %v975_v8 = vld [vmem:[%s4927_s3 + $0x18] sm:$0xff]  ;;  %v3464_v11 = vpop.eup %3463  ;;  %v3998_v26 = vld [vmem:[%s4927_s3 + $0x20] sm:$0xff]  ;;  %v4021_v39 = vld [vmem:[%s4927_s3 + $0x28] sm:$0xff]  ;;  %1278 = vmatpush.msra.mxu2 %v1261_v49  ;;  %1179 = vmatpush.msra.mxu0 %v1142_v50  ;;  %s4931_s2 = scalar_lea.vmem %s4930_s4, %s3736_s20 }
  0xec   : > { %980 = vadd.xlane.f32.xlu0 %v979_v4  ;;  %986 = vadd.xlane.f32.xlu1 %v985_v5  ;;  %v988_v9 = vsel %vm978_vm1, %v975_v8, 0.0  ;;  %v998_v12 = vmul.f32 64.0, %v3464_v11  ;;  %vm1002_vm2 = vweird.f32 %v3464_v11  ;;  %v991_v29 = vsel %vm978_vm1, %v3998_v26, 0.0  ;;  %v1139_v59 = vld [vmem:[%s3754_s1 + $0x8] sm:$0xff]  ;;  %v1138_v62 = vld [vmem:[%s3754_s1] sm:$0xff]  ;;  %s4933_s5 = scalar_lea.vmem %s4932_s28, %s3736_s20  ;;  %s3624_s1 = smov 112  }
  0xed   : > { %v994_v40 = vsel %vm978_vm1, %v4021_v39, 0.0  ;;  %1232 = vmatpush.msra.mxu1 %v1213_v51  ;;  %1279 = vmatpush.msra.mxu2 %v1260_v52  ;;  %v1210_v60 = vld [vmem:[%s3759_s22 + $0x8] sm:$0xff]  ;;  %v1209_v63 = vld [vmem:[%s3759_s22] sm:$0xff] }
  0xee   : > { %v999_v13 = vsub.f32 1.0, %v998_v12  ;;  %1180 = vmatpush.msra.mxu0 %v1141_v53  ;;  %v1257_v61 = vld [vmem:[%s3768_s26 + $0x8] sm:$0xff]  ;;  %v1256_v0 = vld [vmem:[%s3768_s26] sm:$0xff]  ;;  %s4928_s26 = sld [smem:[#allocation6_spill]] }
  0xef   : > { %1233 = vmatpush.msra.mxu1 %v1212_v54  ;;  %1280 = vmatpush.msra.mxu2 %v1259_v55 }
  0xf0   : > { %v1000_v14 = vmul.f32 %v3464_v11, %v999_v13  ;;  %1181 = vmatpush.msra.mxu0 %v1140_v56 }
  0xf1   : > { %1234 = vmatpush.msra.mxu1 %v1211_v57  ;;  %1281 = vmatpush.msra.mxu2 %v1258_v58 }
  0xf2   : > { %v1001_v15 = vadd.f32 %v3464_v11, %v1000_v14  ;;  %1182 = vmatpush.msra.mxu0 %v1139_v59 }
  0xf3   : > { %1235 = vmatpush.msra.mxu1 %v1210_v60  ;;  %1282 = vmatpush.msra.mxu2 %v1257_v61 }
  0xf4   : > { %983 = vadd.xlane.f32.xlu0 %v982_v7  ;;  %v3985_v16 = vsel %vm1002_vm2, %v3464_v11, %v1001_v15  ;;  %1183 = vmatpush.msra.mxu0 %v1138_v62  ;;  %s4929_s7 = scalar_lea.vmem %s4928_s26, %s3736_s20 }
  0xf5   : > { %1236 = vmatpush.msra.mxu1 %v1209_v63  ;;  %1283 = vmatpush.msra.mxu2 %v1256_v0 }
  0xfc   : > { %989 = vadd.xlane.f32.xlu0 %v988_v9 }
 0x15f   : > { %v981_v17 = vpop.xlane.xlu0 %980  ;;  %v987_v21 = vpop.xlane.xlu1 %986 }
 0x160   : > { %v1004_v18 = vmul.f32 %v3985_v16, %v981_v17  ;;  %v1006_v25 = vmul.f32 %v3985_v16, %v987_v21 }
 0x162   : > { %v3988_v19 = vsub.f32 %v972_v2, %v1004_v18  ;;  %v4002_v28 = vsub.f32 %v974_v3, %v1006_v25 }
 0x164   : > { %v1016_v20 = vmul.f32 %v3988_v19, %v3988_v19  ;;  %v1018_v33 = vmul.f32 %v4002_v28, %v4002_v28 }
 0x166   : > { %v1022_v22 = vsel %vm978_vm1, %v1016_v20, 0.0  ;;  %v1028_v36 = vsel %vm978_vm1, %v1018_v33, 0.0 }
 0x167   : > { %1023 = vadd.xlane.f32.xlu1 %v1022_v22  ;;  %v984_v23 = vpop.xlane.xlu0 %983 }
 0x168   : > { %v1005_v24 = vmul.f32 %v3985_v16, %v984_v23 }
 0x16a   : > { %v4000_v27 = vsub.f32 %v973_v6, %v1005_v24 }
 0x16c   : > { %v1017_v30 = vmul.f32 %v4000_v27, %v4000_v27 }
 0x16e   : > { %v1025_v31 = vsel %vm978_vm1, %v1017_v30, 0.0  ;;  %v4065_v30 = vld [vmem:[%s4929_s7] ss:$0 sm:$0xff]  ;;  %s4934_s7 = sld [smem:[#allocation9_spill]] }
 0x16f   : > { %992 = vadd.xlane.f32.xlu1 %v991_v29  ;;  %1026 = vadd.xlane.f32.xlu2 %v1025_v31  ;;  %v990_v32 = vpop.xlane.xlu0 %989 }
 0x170   : > { %v1007_v34 = vmul.f32 %v3985_v16, %v990_v32 }
 0x172   : > { %v4012_v35 = vsub.f32 %v975_v8, %v1007_v34  ;;  %v4073_v34 = vld [vmem:[%s4931_s2] ss:$0 sm:$0xff]  ;;  %s4936_s2 = scalar_lea.vmem %s4888_s10, %s3736_s20 }
 0x174   : > { %v1019_v37 = vmul.f32 %v4012_v35, %v4012_v35  ;;  %s4935_s0 = scalar_lea.vmem %s4934_s7, %s3736_s20  ;;  %s4939_s7 = scalar_lea.vmem %s4892_s14, %s3736_s20 }
 0x176   : > { %v1031_v38 = vsel %vm978_vm1, %v1019_v37, 0.0 }
 0x177   : > { %1029 = vadd.xlane.f32.xlu2 %v1028_v36  ;;  %1032 = vadd.xlane.f32.xlu0 %v1031_v38 }
 0x17f   : > { %995 = vadd.xlane.f32.xlu2 %v994_v40 }
 0x1da   : > { %v1024_v1 = vpop.xlane.xlu1 %1023 }
 0x1db   : > { %v1040_v2 = vmul.f32 %v1024_v1, %v3985_v16 }
 0x1dd   : > { %v1046_v3 = vadd.f32 1e-06, %v1040_v2 }
 0x1df   : > { %3465 = vrsqrt.f32 %v1046_v3  ;;  %vm1058_vm4 = vweird.f32 %v1046_v3 }
 0x1e2   : > { %v993_v4 = vpop.xlane.xlu1 %992  ;;  %v1027_v5 = vpop.xlane.xlu2 %1026 }
 0x1e3   : > { %v1008_v6 = vmul.f32 %v3985_v16, %v993_v4  ;;  %v1041_v7 = vmul.f32 %v1027_v5, %v3985_v16 }
 0x1e5   : > { %v3466_v8 = vpop.eup %3465  ;;  %v4053_v9 = vsub.f32 %v3998_v26, %v1008_v6  ;;  %v1047_v10 = vadd.f32 1e-06, %v1041_v7 }
 0x1e6   : > { %v1053_v11 = vmul.f32 %v3466_v8, %v1046_v3  ;;  %vm1059_vm3 = vweird.f32 %v3466_v8 }
 0x1e7   : > { %3467 = vrsqrt.f32 %v1047_v10  ;;  %v1020_v12 = vmul.f32 %v4053_v9, %v4053_v9  ;;  %vm1060_vm5 = vmor %vm1058_vm4, %vm1059_vm3  ;;  %vm1068_vm7 = vweird.f32 %v1047_v10 }
 0x1e8   : > { %v1054_v13 = vmul.f32 %v3466_v8, %v1053_v11 }
 0x1e9   : > { %v1034_v14 = vsel %vm978_vm1, %v1020_v12, 0.0 }
 0x1ea   : > { %v1055_v15 = vmul.f32 0.5, %v1054_v13  ;;  %1035 = vadd.xlane.f32.xlu1 %v1034_v14  ;;  %v1030_v17 = vpop.xlane.xlu2 %1029  ;;  %v1033_v18 = vpop.xlane.xlu0 %1032 }
 0x1eb   : > { %v1042_v20 = vmul.f32 %v1030_v17, %v3985_v16  ;;  %v1043_v21 = vmul.f32 %v1033_v18, %v3985_v16 }
 0x1ec   : > { %v1056_v22 = vsub.f32 1.5, %v1055_v15  ;;  %v4112_v15 = vld [vmem:[%s4933_s5] ss:$0 sm:$0xff]  ;;  %s4937_s5 = scalar_lea.vmem %s4890_s12, %s3736_s20 }
 0x1ed   : > { %v3468_v23 = vpop.eup %3467  ;;  %v1048_v24 = vadd.f32 1e-06, %v1042_v20  ;;  %v1049_v25 = vadd.f32 1e-06, %v1043_v21 }
 0x1ee   : > { %v1057_v26 = vmul.f32 %v3466_v8, %v1056_v22  ;;  %v1063_v29 = vmul.f32 %v3468_v23, %v1047_v10  ;;  %vm1069_vm6 = vweird.f32 %v3468_v23 }
 0x1ef   : > { %3469 = vrsqrt.f32 %v1048_v24  ;;  %vm1070_vm8 = vmor %vm1068_vm7, %vm1069_vm6  ;;  %vm1088_vm9 = vweird.f32 %v1049_v25  ;;  %vm1078_vm12 = vweird.f32 %v1048_v24  ;;  %vm1315_vm6 = vcmask 130048  }
 0x1f0   : > { %v1061_v31 = vsel %vm1060_vm5, %v3466_v8, %v1057_v26  ;;  %v1064_v32 = vmul.f32 %v3468_v23, %v1063_v29  ;;  %3471 = vrsqrt.f32 %v1049_v25 }
 0x1f1   : > { %v1112_v33 = vmul.f32 %v1061_v31, %v3988_v19 }
 0x1f2   : > { %v1065_v36 = vmul.f32 0.5, %v1064_v32  ;;  %v996_v37 = vpop.xlane.xlu2 %995 }
 0x1f3   : > { %v1009_v38 = vmul.f32 %v3985_v16, %v996_v37  ;;  %v1122_v40 = vmul.f32 %v4065_v30, %v1112_v33 }
 0x1f4   : > { %v1066_v41 = vsub.f32 1.5, %v1065_v36 }
 0x1f5   : > { %v3470_v42 = vpop.eup %3469  ;;  %v4078_v43 = vsub.f32 %v4021_v39, %v1009_v38  ;;  %v1132_v19 = vadd.f32 %v4073_v34, %v1122_v40 }
 0x1f6   : > { %v3472_v44 = vpop.eup %3471  ;;  %v1067_v45 = vmul.f32 %v3468_v23, %v1066_v41  ;;  %v1073_v46 = vmul.f32 %v3470_v42, %v1048_v24  ;;  %vm1079_vm11 = vweird.f32 %v3470_v42 }
 0x1f7   : > { %3242 = vmatmul.msk.f32.vlgmr.msra.gmra.mxu0 %vm978_vm1, %v1132_v19  ;;  %3248 = vmatmul.msk.f32.vlgmr.msra.gmra.mxu1 %vm978_vm1, %v1132_v19  ;;  %v1021_v47 = vmul.f32 %v4078_v43, %v4078_v43  ;;  %v1083_v48 = vmul.f32 %v3472_v44, %v1049_v25  ;;  %vm1089_vm10 = vweird.f32 %v3472_v44  ;;  %vm1080_vm14 = vmor %vm1078_vm12, %vm1079_vm11 }
 0x1f8   : > { %v1071_v49 = vsel %vm1070_vm8, %v3468_v23, %v1067_v45  ;;  %v1074_v50 = vmul.f32 %v3470_v42, %v1073_v46  ;;  %3254 = vmatmul.msk.f32.vlgmr.msra.gmra.mxu2 %vm978_vm1, %v1132_v19  ;;  %vm1090_vm13 = vmor %vm1088_vm9, %vm1089_vm10  ;;  %vm1404_vm8 = vcmask 195584  }
 0x1f9   : > { %v1037_v39 = vsel %vm978_vm1, %v1021_v47, 0.0  ;;  %v1113_v51 = vmul.f32 %v1071_v49, %v4000_v27  ;;  %v1084_v52 = vmul.f32 %v3472_v44, %v1083_v48 }
 0x1fa   : > { %v1075_v53 = vmul.f32 0.5, %v1074_v50  ;;  %1038 = vadd.xlane.f32.xlu2 %v1037_v39 }
 0x1fb   : > { %v1123_v54 = vmul.f32 %v4065_v30, %v1113_v51  ;;  %v1085_v55 = vmul.f32 0.5, %v1084_v52 }
 0x1fc   : > { %v1076_v56 = vsub.f32 1.5, %v1075_v53 }
 0x1fd   : > { %v1133_v57 = vadd.f32 %v4073_v34, %v1123_v54  ;;  %v1086_v58 = vsub.f32 1.5, %v1085_v55 }
 0x1fe   : > { %v1077_v59 = vmul.f32 %v3470_v42, %v1076_v56 }
 0x1ff   : > { %3243 = vmatmul.msk.f32.gmra.mxu0 %vm978_vm1, %v1133_v57  ;;  %3249 = vmatmul.msk.f32.gmra.mxu1 %vm978_vm1, %v1133_v57  ;;  %v1087_v27 = vmul.f32 %v3472_v44, %v1086_v58 }
 0x200   : > { %v1081_v60 = vsel %vm1080_vm14, %v3470_v42, %v1077_v59  ;;  %3255 = vmatmul.msk.f32.gmra.mxu2 %vm978_vm1, %v1133_v57 }
 0x201   : > { %v1091_v61 = vsel %vm1090_vm13, %v3472_v44, %v1087_v27  ;;  %v1114_v62 = vmul.f32 %v1081_v60, %v4002_v28 }
 0x202   : > { %v1115_v0 = vmul.f32 %v1091_v61, %v4012_v35 }
 0x203   : > { %v1124_v63 = vmul.f32 %v4065_v30, %v1114_v62 }
 0x204   : > { %v1125_v2 = vmul.f32 %v4065_v30, %v1115_v0 }
 0x205   : > { %v1134_v1 = vadd.f32 %v4073_v34, %v1124_v63 }
 0x206   : > { %v1135_v3 = vadd.f32 %v4073_v34, %v1125_v2 }
 0x207   : > { %3244 = vmatmul.msk.f32.gmra.mxu0 %vm978_vm1, %v1134_v1  ;;  %3250 = vmatmul.msk.f32.gmra.mxu1 %vm978_vm1, %v1134_v1 }
 0x208   : > { %3256 = vmatmul.msk.f32.gmra.mxu2 %vm978_vm1, %v1134_v1 }
 0x20f   : > { %3245 = vmatmul.msk.f32.gmra.mxu0 %vm978_vm1, %v1135_v3  ;;  %3251 = vmatmul.msk.f32.gmra.mxu1 %vm978_vm1, %v1135_v3 }
 0x210   : > { %3257 = vmatmul.msk.f32.gmra.mxu2 %vm978_vm1, %v1135_v3 }
 0x25d   : > { %v1036_v28 = vpop.xlane.xlu1 %1035 }
 0x25e   : > { %v1044_v35 = vmul.f32 %v1036_v28, %v3985_v16 }
 0x260   : > { %v1050_v4 = vadd.f32 1e-06, %v1044_v35 }
 0x262   : > { %3473 = vrsqrt.f32 %v1050_v4  ;;  %vm1098_vm15 = vweird.f32 %v1050_v4 }
 0x268   : > { %v3474_v5 = vpop.eup %3473 }
 0x269   : > { %v1093_v6 = vmul.f32 %v3474_v5, %v1050_v4  ;;  %vm1099_vm0 = vweird.f32 %v3474_v5 }
 0x26a   : > { %vm1100_vm2 = vmor %vm1098_vm15, %vm1099_vm0 }
 0x26b   : > { %v1094_v7 = vmul.f32 %v3474_v5, %v1093_v6 }
 0x26d   : > { %v1095_v8 = vmul.f32 0.5, %v1094_v7  ;;  %v1039_v10 = vpop.xlane.xlu2 %1038 }
 0x26e   : > { %v1045_v11 = vmul.f32 %v1039_v10, %v3985_v16  ;;  %v1303_v10 = vlaneseq }
 0x26f   : > { %v1096_v12 = vsub.f32 1.5, %v1095_v8 }
 0x270   : > { %v1051_v13 = vadd.f32 1e-06, %v1045_v11 }
 0x271   : > { %v1097_v14 = vmul.f32 %v3474_v5, %v1096_v12 }
 0x272   : > { %3475 = vrsqrt.f32 %v1051_v13  ;;  %vm1108_vm3 = vweird.f32 %v1051_v13 }
 0x273   : > { %v1101_v17 = vsel %vm1100_vm2, %v3474_v5, %v1097_v14 }
 0x274   : > { %v1185_v18 = vpop.f32.mrf.mxu0  ;;  %v1238_v20 = vpop.f32.mrf.mxu1  ;;  %v1116_v21 = vmul.f32 %v1101_v17, %v4053_v9  ;;  %v4129_v9 = vld [vmem:[%s4935_s0] ss:$0 sm:$0xff] }
 0x275   : > { %v4116_v22 = vadd.f32 %v4112_v15, %v1238_v20  ;;  %v1186_v51 = vadd.f32 %v4129_v9, %v1185_v18 }
 0x276   : > { %v1126_v23 = vmul.f32 %v4065_v30, %v1116_v21 }
 0x277   : > { %1547 = vrot.lane.b32.xlu2 %v4116_v22, %s3624_s1  ;;  %v4178_v55 = vmul.f32 0.25, %v1186_v51 }
 0x278   : > { %v3476_v24 = vpop.eup %3475  ;;  %v1136_v25 = vadd.f32 %v4073_v34, %v1126_v23 }
 0x279   : > { %v1103_v26 = vmul.f32 %v3476_v24, %v1051_v13  ;;  %vm1109_vm4 = vweird.f32 %v3476_v24 }
 0x27a   : > { %3246 = vmatmul.msk.f32.gmra.mxu0 %vm978_vm1, %v1136_v25  ;;  %3252 = vmatmul.msk.f32.gmra.mxu1 %vm978_vm1, %v1136_v25  ;;  %vm1110_vm5 = vmor %vm1108_vm3, %vm1109_vm4 }
 0x27b   : > { %v1104_v29 = vmul.f32 %v3476_v24, %v1103_v26  ;;  %v4131_v31 = vpop.f32.mrf.mxu2  ;;  %3258 = vmatmul.msk.f32.gmra.mxu2 %vm978_vm1, %v1136_v25  ;;  %v3625_v25 = vmov -1e+30  }
 0x27c   : > { %v1188_v32 = vpop.f32.mrf.mxu0  ;;  %v1241_v33 = vpop.f32.mrf.mxu1 }
 0x27d   : > { %v1105_v36 = vmul.f32 0.5, %v1104_v29  ;;  %v1189_v37 = vadd.f32 %v4129_v9, %v1188_v32  ;;  %v4136_v38 = vadd.f32 %v4112_v15, %v1241_v33 }
 0x27f   : > { %v1106_v40 = vsub.f32 1.5, %v1105_v36  ;;  %v4138_v41 = vmul.f32 0.25, %v1189_v37  ;;  %1549 = vrot.lane.b32.xlu1 %v4136_v38, %s3624_s1 }
 0x281   : > { %v1107_v42 = vmul.f32 %v3476_v24, %v1106_v40  ;;  %1543 = vrot.lane.b32.xlu2 %v4138_v41, %s3624_s1 }
 0x283   : > { %v1111_v19 = vsel %vm1110_vm5, %v3476_v24, %v1107_v42  ;;  %v1288_v44 = vpop.f32.mrf.mxu2 }
 0x284   : > { %v1191_v45 = vpop.f32.mrf.mxu0  ;;  %v1244_v46 = vpop.f32.mrf.mxu1  ;;  %v1117_v47 = vmul.f32 %v1111_v19, %v4078_v43 }
 0x285   : > { %v1192_v48 = vadd.f32 %v4129_v9, %v1191_v45  ;;  %v4147_v49 = vadd.f32 %v4112_v15, %v1244_v46 }
 0x286   : > { %v1127_v50 = vmul.f32 %v4065_v30, %v1117_v47  ;;  %v4167_v30 = vld [vmem:[%s4936_s2] ss:$0 sm:$0xff] }
 0x287   : > { %v4150_v39 = vmul.f32 0.25, %v1192_v48  ;;  %3260 = vmatpush.xpose.msk.msrb.mxu0 %vm1315_vm6, %v4147_v49  ;;  %3400 = vmatpush.xpose.msk.msrb.mxu1 %vm1315_vm6, %v4147_v49  ;;  %v1289_v53 = vadd.f32 %v4167_v30, %v1288_v44  ;;  %v4252_v23 = vadd.f32 %v4167_v30, %v4131_v31 }
 0x288   : > { %1551 = vrot.lane.b32.xlu0 %v4147_v49, %s3624_s1  ;;  %v1137_v43 = vadd.f32 %v4073_v34, %v1127_v50 }
 0x289   : > { %1545 = vrot.lane.b32.xlu1 %v4150_v39, %s3624_s1 }
 0x28a   : > { %3247 = vmatmul.msk.f32.gmra.mxu0 %vm978_vm1, %v1137_v43  ;;  %3253 = vmatmul.msk.f32.gmra.mxu1 %vm978_vm1, %v1137_v43 }
 0x28b   : > { %v1291_v52 = vpop.f32.mrf.mxu2  ;;  %3259 = vmatmul.msk.f32.gmra.mxu2 %vm978_vm1, %v1137_v43  ;;  %3261 = vmatpush.xpose.msk.msrb.mxu0 %vm1315_vm6, %v4136_v38 }
 0x28c   : > { %v1292_v34 = vadd.f32 %v4167_v30, %v1291_v52  ;;  %3401 = vmatpush.xpose.msk.msrb.mxu1 %vm1315_vm6, %v4136_v38  ;;  %v1194_v54 = vpop.f32.mrf.mxu0  ;;  %v1247_v58 = vpop.f32.mrf.mxu1 }
 0x28d   : > { %v1195_v57 = vadd.f32 %v4129_v9, %v1194_v54  ;;  %v4198_v27 = vadd.f32 %v4112_v15, %v1247_v58 }
 0x28e   : > { %v4182_v56 = vpack.i.bf16 %v1289_v53, %v1292_v34 }
 0x28f   : > { %3262 = vmatpush.xpose.msk.msrb.mxu0 %vm1315_vm6, %v4116_v22  ;;  %v4195_v59 = vmul.f32 0.25, %v1195_v57 }
 0x290   : > { %3402 = vmatpush.xpose.msk.msrb.mxu1 %vm1315_vm6, %v4116_v22  ;;  %1541 = vrot.lane.b32.xlu0 %v4178_v55, %s3624_s1 }
 0x291   : > { %3420 = vrot.lane.b32.xlu1 %v4182_v56, %s3624_s1 }
 0x292   : > { %3263 = vmatmul.msk.f32.vlgmr.msrb.gmra.mxu0 %vm1315_vm6, %v4178_v55 }
 0x293   : > { %3264 = vmatmul.msk.f32.vlgmr.msrb.gmra.mxu1 %vm1315_vm6, %v4138_v41  ;;  %v1294_v2 = vpop.f32.mrf.mxu2 }
 0x294   : > { %v4244_v20 = vadd.f32 %v4167_v30, %v1294_v2 }
 0x298   : > { %1591 = vrot.lane.b32.xlu0 %v4195_v59, %s3624_s1 }
 0x299   : > { %1597 = vrot.lane.b32.xlu1 %v4198_v27, %s3624_s1 }
 0x29b   : > { %3265 = vmatmul.msk.f32.gmra.mxu1 %vm1315_vm6, %v4150_v39 }
 0x2d1   : > { %v1548_v28 = vpop.permute.xlu2 %1547 }
 0x2db   : > { %v1544_v8 = vpop.permute.xlu2 %1543 }
 0x2f1   : > { %v1550_v3 = vpop.permute.xlu1 %1549 }
 0x2f7   : > { %v1197_v60 = vpop.f32.mrf.mxu0  ;;  %v1250_v61 = vpop.f32.mrf.mxu1 }
 0x2f8   : > { %v1198_v62 = vadd.f32 %v4129_v9, %v1197_v60  ;;  %v4208_v63 = vadd.f32 %v4112_v15, %v1250_v61 }
 0x2fa   : > { %v4210_v0 = vmul.f32 0.25, %v1198_v62  ;;  %v1552_v1 = vpop.permute.xlu0 %1551  ;;  %1599 = vrot.lane.b32.xlu2 %v4208_v63, %s3624_s1 }
 0x2fb   : > { %3278 = vmatpush.xpose.msk.msra.mxu1 %vm1315_vm6, %v1552_v1  ;;  %v1546_v6 = vpop.permute.xlu1 %1545 }
 0x2fc   : > { %1593 = vrot.lane.b32.xlu0 %v4210_v0, %s3624_s1 }
 0x2fe   : > { %v1297_v4 = vpop.f32.mrf.mxu2 }
 0x2ff   : > { %3279 = vmatpush.xpose.msk.msra.mxu1 %vm1315_vm6, %v1550_v3  ;;  %v4231_v12 = vadd.f32 %v4167_v30, %v1297_v4 }
 0x302   : > { %v1542_v35 = vpop.permute.xlu0 %1541 }
 0x303   : > { %3280 = vmatpush.xpose.msk.msra.mxu1 %vm1315_vm6, %v1548_v28  ;;  %v3421_v18 = vpop.permute.xlu1 %3420 }
 0x304   : > { %v3422_v21 = vunpack.i.l.bf16 %v3421_v18  ;;  %v3423_v24 = vunpack.i.h.bf16 %v3421_v18 }
 0x306   : > { %3281 = vmatmul.msk.f32.vlgmr.msra.gmra.mxu1 %vm1315_vm6, %v1542_v35 }
 0x307   : > { %v1253_v5 = vpop.f32.mrf.mxu1  ;;  %v1200_v33 = vpop.f32.mrf.mxu0 }
 0x308   : > { %v4221_v7 = vadd.f32 %v4112_v15, %v1253_v5  ;;  %v1304_v15 = vand.u32 127, %v1303_v10  ;;  %v1201_v37 = vadd.f32 %v4129_v9, %v1200_v33 }
 0x30a   : > { %3266 = vmatpush.xpose.msk.msra.mxu3 %vm1315_vm6, %v4221_v7  ;;  %1601 = vrot.lane.b32.xlu0 %v4221_v7, %s3624_s1  ;;  %vm1305_vm7 = vcmp.lt.s32.totalorder %v1304_v15, 17  ;;  %v4268_v42 = vmul.f32 0.25, %v1201_v37  ;;  %v1592_v9 = vpop.permute.xlu0 %1591 }
 0x30b   : > { %v4255_v26 = vsel %vm1305_vm7, 0.0, %v3625_v25  ;;  %v1598_v43 = vpop.permute.xlu1 %1597 }
 0x30e   : > { %v1300_v11 = vpop.f32.mrf.mxu2  ;;  %3282 = vmatmul.msk.f32.gmra.mxu1 %vm1315_vm6, %v1544_v8  ;;  %3267 = vmatpush.xpose.msk.msra.mxu3 %vm1315_vm6, %v4208_v63 }
 0x30f   : > { %v4234_v13 = vadd.f32 %v4167_v30, %v1300_v11  ;;  %v1351_v19 = vpop.f32.mrf.mxu0 }
 0x310   : > { %v1354_v14 = vpop.f32.mrf.mxu1  ;;  %v1352_v44 = vadd.f32 %v1351_v19, %v4255_v26 }
 0x311   : > { %1528 = vmatpush.msra.mxu0 %v4234_v13  ;;  %v4239_v17 = vpack.i.bf16 %v4231_v12, %v4234_v13  ;;  %v1355_v36 = vadd.f32 %v1354_v14, %v4255_v26 }
 0x312   : > { %3268 = vmatpush.xpose.msk.msra.mxu3 %vm1315_vm6, %v4198_v27  ;;  %v1405_v45 = vsel %vm1404_vm8, %v1352_v44, -inf }
 0x313   : > { %1529 = vmatpush.msra.mxu0 %v4231_v12  ;;  %v1408_v40 = vsel %vm1404_vm8, %v1355_v36, -inf }
 0x315   : > { %1530 = vmatpush.msra.mxu0 %v4244_v20  ;;  %3269 = vmatmul.msk.f32.vlgmr.msra.gmra.mxu3 %vm1315_vm6, %v4195_v59 }
 0x316   : > { %1493 = vmatpush.msrb.mxu3 %v1292_v34  ;;  %3283 = vmatmul.msk.f32.gmra.mxu1 %vm1315_vm6, %v1546_v6 }
 0x317   : > { %1741 = vmatpush.msrb.mxu0 %v3422_v21 }
 0x318   : > { %1494 = vmatpush.msrb.mxu3 %v1289_v53  ;;  %v1357_v29 = vpop.f32.mrf.mxu1 }
 0x319   : > { %v4259_v32 = vadd.f32 %v1357_v29, %v4255_v26  ;;  %1742 = vmatpush.msrb.mxu0 %v3423_v24 }
 0x31a   : > { %1495 = vmatpush.msrb.mxu3 %v4252_v23 }
 0x31b   : > { %v1411_v31 = vsel %vm1404_vm8, %v4259_v32, -inf }
 0x31c   : > { %3403 = vmatpush.msra.mxu3 %v3422_v21  ;;  %1412 = vmax.xlane.f32.xlu1 %v1411_v31 }
 0x31d   : > { %3270 = vmatmul.msk.f32.gmra.mxu3 %vm1315_vm6, %v4210_v0 }
 0x31e   : > { %3404 = vmatpush.msra.mxu3 %v3423_v24 }
 0x323   : > { %1409 = vmax.xlane.f32.xlu2 %v1408_v40 }
 0x325   : > { %3271 = vmatmul.msk.f32.gmra.mxu3 %vm1315_vm6, %v4268_v42 }
 0x334   : > { %1406 = vmax.xlane.f32.xlu0 %v1405_v45 }
 0x335   : > { %1595 = vrot.lane.b32.xlu1 %v4268_v42, %s3624_s1 }
 0x33b   : > { %1710 = vrot.lane.b32.xlu2 %v4252_v23, %s3624_s1 }
 0x354   : > { %v1600_v48 = vpop.permute.xlu2 %1599 }
 0x36e   : > { %v1594_v46 = vpop.permute.xlu0 %1593 }
 0x37c   : > { %v1602_v47 = vpop.permute.xlu0 %1601 }
 0x37d   : > { %3284 = vmatpush.xpose.msk.msrb.mxu2 %vm1315_vm6, %v1602_v47 }
 0x381   : > { %3285 = vmatpush.xpose.msk.msrb.mxu2 %vm1315_vm6, %v1600_v48 }
 0x383   : > { %v4280_v50 = vpop.f32.mrf.mxu1 }
 0x385   : > { %3286 = vmatpush.xpose.msk.msrb.mxu2 %vm1315_vm6, %v1598_v43 }
 0x388   : > { %3287 = vmatmul.msk.f32.vlgmr.msrb.gmra.mxu2 %vm1315_vm6, %v1592_v9 }
 0x38b   : > { %v1585_v51 = vpop.f32.mrf.mxu1 }
 0x38c   : > { %v1586_v30 = vadd.f32 %v1585_v51, %v4255_v26 }
 0x38e   : > { %v1644_v52 = vsel %vm1404_vm8, %v1586_v30, -inf }
 0x38f   : > { %1645 = vmax.xlane.f32.xlu0 %v1644_v52  ;;  %v1413_v60 = vpop.xlane.xlu1 %1412 }
 0x390   : > { %3288 = vmatmul.msk.f32.gmra.mxu2 %vm1315_vm6, %v1594_v46  ;;  %v1425_v8 = vsub.f32 %v4259_v32, %v1413_v60 }
 0x392   : > { %v1433_v10 = vmul.f32 1.442695, %v1425_v8 }
 0x393   : > { %v1588_v34 = vpop.f32.mrf.mxu1 }
 0x394   : > { %v1589_v53 = vadd.f32 %v1588_v34, %v4255_v26 }
 0x396   : > { %v1410_v54 = vpop.xlane.xlu2 %1409  ;;  %v1647_v57 = vsel %vm1404_vm8, %v1589_v53, -inf }
 0x397   : > { %1648 = vmax.xlane.f32.xlu2 %v1647_v57  ;;  %v1424_v2 = vsub.f32 %v1355_v36, %v1410_v54 }
 0x398   : > { %v1395_v32 = vpop.f32.mrf.mxu3 }
 0x399   : > { %v1431_v28 = vmul.f32 1.442695, %v1424_v2  ;;  %v1396_v36 = vadd.f32 %v1395_v32, %v4255_v26  ;;  %v4325_v2 = vadd.f32 %v4280_v50, %v4255_v26 }
 0x39b   : > { %v1414_v19 = vsel %vm1404_vm8, %v1396_v36, -inf }
 0x39e   : > { %v1711_v58 = vpop.permute.xlu2 %1710 }
 0x39f   : > { %1743 = vmatpush.msrb.mxu0 %v1711_v58  ;;  %3405 = vmatpush.msra.mxu3 %v1711_v58 }
 0x3a3   : > { %1917 = vrot.lane.b32.xlu0 %v4147_v49, %s3626_s24 }
 0x3a7   : > { %v1596_v61 = vpop.permute.xlu1 %1595  ;;  %v1407_v62 = vpop.xlane.xlu0 %1406 }
 0x3a8   : > { %3289 = vmatmul.msk.f32.gmra.mxu2 %vm1315_vm6, %v1596_v61  ;;  %v1423_v1 = vsub.f32 %v1352_v44, %v1407_v62 }
 0x3aa   : > { %v1429_v3 = vmul.f32 1.442695, %v1423_v1 }
 0x3ac   : > { %3477 = vpow2.f32 %v1429_v3  ;;  %v1641_v3 = vsel %vm1404_vm8, %v4325_v2, -inf }
 0x3ad   : > { %3479 = vpow2.f32 %v1431_v28 }
 0x3ae   : > { %3481 = vpow2.f32 %v1433_v10 }
 0x3af   : > { %1915 = vrot.lane.b32.xlu2 %v4136_v38, %s3626_s24 }
 0x3b2   : > { %v3478_v35 = vpop.eup %3477 }
 0x3b3   : > { %v1441_v4 = vsel %vm1404_vm8, %v3478_v35, 0.0  ;;  %v3480_v5 = vpop.eup %3479 }
 0x3b4   : > { %1442 = vadd.xlane.f32.xlu1 %v1441_v4  ;;  %v1444_v6 = vsel %vm1404_vm8, %v3480_v5, 0.0  ;;  %v3482_v11 = vpop.eup %3481 }
 0x3b5   : > { %v1447_v14 = vsel %vm1404_vm8, %v3482_v11, 0.0 }
 0x3bc   : > { %1445 = vadd.xlane.f32.xlu1 %v1444_v6 }
 0x3d8   : > { %1448 = vadd.xlane.f32.xlu2 %v1447_v14 }
 0x3f0   : > { %1909 = vrot.lane.b32.xlu2 %v4138_v41, %s3626_s24 }
 0x402   : > { %v1646_v15 = vpop.xlane.xlu0 %1645 }
 0x403   : > { %v1660_v18 = vsub.f32 %v1586_v30, %v1646_v15  ;;  %v1398_v30 = vpop.f32.mrf.mxu3  ;;  %v1308_v15 = vld [vmem:[%s3777_s6 + $0x8] sm:$0xff] }
 0x404   : > { %v1399_v34 = vadd.f32 %v1398_v30, %v4255_v26  ;;  %1886 = vmatpush.msra.mxu2 %v1308_v15 }
 0x405   : > { %v1667_v21 = vmul.f32 1.442695, %v1660_v18 }
 0x406   : > { %v1417_v60 = vsel %vm1404_vm8, %v1399_v34, -inf }
 0x407   : > { %3483 = vpow2.f32 %v1667_v21 }
 0x40a   : > { %v1649_v24 = vpop.xlane.xlu2 %1648 }
 0x40b   : > { %v1661_v25 = vsub.f32 %v1589_v53, %v1649_v24  ;;  %v4315_v53 = vpop.f32.mrf.mxu2  ;;  %v1401_v57 = vpop.f32.mrf.mxu3 }
 0x40c   : > { %v1402_v61 = vadd.f32 %v1401_v57, %v4255_v26 }
 0x40d   : > { %v3484_v29 = vpop.eup %3483  ;;  %v1669_v31 = vmul.f32 1.442695, %v1661_v25  ;;  %v1307_v25 = vld [vmem:[%s3777_s6] sm:$0xff] }
 0x40e   : > { %v1680_v33 = vsel %vm1404_vm8, %v3484_v29, 0.0  ;;  %v1420_v62 = vsel %vm1404_vm8, %v1402_v61, -inf  ;;  %1887 = vmatpush.msra.mxu2 %v1307_v25 }
 0x40f   : > { %3485 = vpow2.f32 %v1669_v31  ;;  %1681 = vadd.xlane.f32.xlu0 %v1680_v33 }
 0x412   : > { %v1916_v48 = vpop.permute.xlu2 %1915 }
 0x413   : > { %v4321_v1 = vpop.f32.mrf.mxu2 }
 0x415   : > { %v3486_v37 = vpop.eup %3485  ;;  %v1918_v47 = vpop.permute.xlu0 %1917 }
 0x416   : > { %v1683_v40 = vsel %vm1404_vm8, %v3486_v37, 0.0 }
 0x417   : > { %1684 = vadd.xlane.f32.xlu1 %v1683_v40 }
 0x419   : > { %1415 = vmax.xlane.f32.xlu2 %v1414_v19 }
 0x423   : > { %1907 = vrot.lane.b32.xlu0 %v4178_v55, %s3626_s24 }
 0x427   : > { %v1443_v44 = vpop.xlane.xlu1 %1442 }
 0x428   : > { %3487 = vrcp.f32 %v1443_v44 }
 0x42b   : > { %1911 = vrot.lane.b32.xlu0 %v4150_v39, %s3626_s24  ;;  %v1638_v28 = vpop.f32.mrf.mxu2 }
 0x42e   : > { %v3488_v45 = vpop.eup %3487 }
 0x42f   : > { %v1446_v9 = vpop.xlane.xlu1 %1445  ;;  %v1465_v46 = vmul.f32 %v3488_v45, %v3478_v35  ;;  %v4330_v35 = vadd.f32 %v1638_v28, %v4255_v26 }
 0x430   : > { %1913 = vrot.lane.b32.xlu1 %v4116_v22, %s3626_s24  ;;  %3489 = vrcp.f32 %v1446_v9 }
 0x431   : > { %3272 = vmatmul.msk.f32.vlgmr.msrb.gmra.mxu3 %vm1404_vm8, %v1465_v46  ;;  %v1656_v4 = vsel %vm1404_vm8, %v4330_v35, -inf }
 0x432   : > { %3308 = vmatpush.xpose.msk.msrb.mxu3 %vm1315_vm6, %v1918_v47 }
 0x436   : > { %v3490_v43 = vpop.eup %3489  ;;  %3309 = vmatpush.xpose.msk.msrb.mxu3 %vm1315_vm6, %v1916_v48 }
 0x437   : > { %v1466_v51 = vmul.f32 %v3490_v43, %v3480_v5 }
 0x439   : > { %3273 = vmatmul.msk.f32.gmra.mxu3 %vm1404_vm8, %v1466_v51  ;;  %v1633_v51 = vadd.f32 %v4315_v53, %v4255_v26 }
 0x43b   : > { %v1650_v57 = vsel %vm1404_vm8, %v1633_v51, -inf }
 0x44b   : > { %v1449_v52 = vpop.xlane.xlu2 %1448 }
 0x44c   : > { %3491 = vrcp.f32 %v1449_v52 }
 0x452   : > { %v3492_v54 = vpop.eup %3491 }
 0x453   : > { %v1467_v58 = vmul.f32 %v3492_v54, %v3482_v11  ;;  %v1910_v50 = vpop.permute.xlu2 %1909 }
 0x455   : > { %3274 = vmatmul.msk.f32.gmra.mxu3 %vm1404_vm8, %v1467_v58  ;;  %1418 = vmax.xlane.f32.xlu0 %v1417_v60  ;;  %v1636_v58 = vadd.f32 %v4321_v1, %v4255_v26 }
 0x457   : > { %v1653_v60 = vsel %vm1404_vm8, %v1636_v58, -inf }
 0x45a   : > { %1421 = vmax.xlane.f32.xlu1 %v1420_v62 }
 0x462   : > { %1642 = vmax.xlane.f32.xlu1 %v1641_v3 }
 0x46a   : > { %1657 = vmax.xlane.f32.xlu1 %v1656_v4 }
 0x482   : > { %v1682_v5 = vpop.xlane.xlu0 %1681 }
 0x483   : > { %3493 = vrcp.f32 %v1682_v5  ;;  %3425 = vrot.lane.b32.xlu1 %v4239_v17, %s3624_s1 }
 0x489   : > { %v3494_v6 = vpop.eup %3493 }
 0x48a   : > { %v1702_v8 = vmul.f32 %v3494_v6, %v3484_v29  ;;  %v1685_v10 = vpop.xlane.xlu1 %1684 }
 0x48b   : > { %3495 = vrcp.f32 %v1685_v10  ;;  %1965 = vrot.lane.b32.xlu1 %v4208_v63, %s3626_s24 }
 0x48c   : > { %v1416_v11 = vpop.xlane.xlu2 %1415  ;;  %3291 = vmatmul.msk.f32.vlgmr.msra.gmra.mxu3 %vm1404_vm8, %v1702_v8 }
 0x48d   : > { %v1426_v14 = vsub.f32 %v1396_v36, %v1416_v11 }
 0x48f   : > { %v1435_v18 = vmul.f32 1.442695, %v1426_v14 }
 0x491   : > { %v3496_v21 = vpop.eup %3495  ;;  %3497 = vpow2.f32 %v1435_v18 }
 0x492   : > { %v1703_v24 = vmul.f32 %v3496_v21, %v3486_v37 }
 0x493   : > { %1957 = vrot.lane.b32.xlu1 %v4195_v59, %s3626_s24 }
 0x494   : > { %3292 = vmatmul.msk.f32.gmra.mxu3 %vm1404_vm8, %v1703_v24 }
 0x495   : > { %v1908_v32 = vpop.permute.xlu0 %1907 }
 0x497   : > { %v4344_v29 = vpop.eup %3497 }
 0x498   : > { %v1450_v31 = vsel %vm1404_vm8, %v4344_v29, 0.0 }
 0x499   : > { %1451 = vadd.xlane.f32.xlu2 %v1450_v31 }
 0x49b   : > { %2230 = vrot.lane.b32.xlu1 %v4147_v49, %s3627_s8 }
 0x49d   : > { %v1912_v37 = vpop.permute.xlu0 %1911 }
 0x4a2   : > { %v1914_v33 = vpop.permute.xlu1 %1913 }
 0x4a3   : > { %2220 = vrot.lane.b32.xlu1 %v4178_v55, %s3627_s8  ;;  %3310 = vmatpush.xpose.msk.msrb.mxu3 %vm1315_vm6, %v1914_v33 }
 0x4a6   : > { %3311 = vmatmul.msk.f32.vlgmr.msrb.gmra.mxu3 %vm1315_vm6, %v1908_v32 }
 0x4ae   : > { %3312 = vmatmul.msk.f32.gmra.mxu3 %vm1315_vm6, %v1910_v50 }
 0x4b4   : > { %v1497_v36 = vpop.f32.mrf.mxu3 }
 0x4b5   : > { %3302 = vmatmul.msk.f32.vlgmr.msra.gmra.mxu2 %vm1315_vm6, %v1497_v36 }
 0x4b6   : > { %3313 = vmatmul.msk.f32.gmra.mxu3 %vm1315_vm6, %v1912_v37 }
 0x4bc   : > { %v1500_v40 = vpop.f32.mrf.mxu3 }
 0x4bd   : > { %3303 = vmatmul.msk.f32.gmra.mxu2 %vm1315_vm6, %v1500_v40 }
 0x4c8   : > { %v1419_v49 = vpop.xlane.xlu0 %1418 }
 0x4c9   : > { %v1427_v19 = vsub.f32 %v1399_v34, %v1419_v49 }
 0x4cb   : > { %v1437_v44 = vmul.f32 1.442695, %v1427_v19 }
 0x4cd   : > { %3499 = vpow2.f32 %v1437_v44  ;;  %v1422_v55 = vpop.xlane.xlu1 %1421 }
 0x4ce   : > { %v1428_v45 = vsub.f32 %v1402_v61, %v1422_v55 }
 0x4d0   : > { %v1439_v9 = vmul.f32 1.442695, %v1428_v45 }
 0x4d2   : > { %3501 = vpow2.f32 %v1439_v9 }
 0x4d3   : > { %v4358_v46 = vpop.eup %3499 }
 0x4d4   : > { %v1453_v47 = vsel %vm1404_vm8, %v4358_v46, 0.0 }
 0x4d5   : > { %v1643_v48 = vpop.xlane.xlu1 %1642  ;;  %1454 = vadd.xlane.f32.xlu0 %v1453_v47 }
 0x4d6   : > { %v1659_v30 = vsub.f32 %v4325_v2, %v1643_v48 }
 0x4d8   : > { %v4362_v43 = vpop.eup %3501  ;;  %v1503_v52 = vpop.f32.mrf.mxu3  ;;  %v1665_v54 = vmul.f32 1.442695, %v1659_v30 }
 0x4d9   : > { %3304 = vmatmul.msk.f32.gmra.mxu2 %vm1315_vm6, %v1503_v52  ;;  %v1456_v34 = vsel %vm1404_vm8, %v4362_v43, 0.0 }
 0x4da   : > { %1457 = vadd.xlane.f32.xlu2 %v1456_v34  ;;  %3503 = vpow2.f32 %v1665_v54 }
 0x4dd   : > { %1651 = vmax.xlane.f32.xlu0 %v1650_v57  ;;  %v1658_v62 = vpop.xlane.xlu1 %1657 }
 0x4e0   : > { %v4374_v53 = vpop.eup %3503 }
 0x4e1   : > { %v1677_v61 = vsel %vm1404_vm8, %v4374_v53, 0.0 }
 0x4e2   : > { %1654 = vmax.xlane.f32.xlu2 %v1653_v60 }
 0x4ea   : > { %1678 = vadd.xlane.f32.xlu2 %v1677_v61 }
 0x4f1   : > { %1967 = vrot.lane.b32.xlu0 %v4221_v7, %s3626_s24 }
 0x4f5   : > { %v3426_v2 = vpop.permute.xlu1 %3425 }
 0x4f6   : > { %v3427_v6 = vunpack.i.l.bf16 %v3426_v2  ;;  %v3428_v8 = vunpack.i.h.bf16 %v3426_v2 }
 0x4f9   : > { %3430 = vrot.lane.b32.xlu0 %v4182_v56, %s3626_s24 }
 0x4fd   : > { %v4382_v1 = vpop.permute.xlu1 %1965 }
 0x501   : > { %1959 = vrot.lane.b32.xlu0 %v4210_v0, %s3626_s24 }
 0x502   : > { %1757 = vrot.lane.b32.xlu2 %v4244_v20, %s3624_s1  ;;  %s4938_s1 = scalar_lea.vmem %s4891_s13, %s3736_s20 }
 0x505   : > { %v4388_v3 = vpop.permute.xlu1 %1957 }
 0x509   : > { %2073 = vrot.lane.b32.xlu0 %v4252_v23, %s3626_s24 }
 0x50a   : > { %1963 = vrot.lane.b32.xlu2 %v4198_v27, %s3626_s24 }
 0x50c   : > { %v1452_v28 = vpop.xlane.xlu2 %1451 }
 0x50d   : > { %3505 = vrcp.f32 %v1452_v28  ;;  %v2231_v4 = vpop.permute.xlu1 %2230 }
 0x50e   : > { %3332 = vmatpush.xpose.msk.msrb.mxu2 %vm1315_vm6, %v2231_v4 }
 0x50f   : > { %v4401_v10 = vpop.f32.mrf.mxu3 }
 0x511   : > { %2228 = vrot.lane.b32.xlu0 %v4136_v38, %s3627_s8 }
 0x512   : > { %1961 = vrot.lane.b32.xlu2 %v4268_v42, %s3626_s24 }
 0x513   : > { %v3506_v5 = vpop.eup %3505 }
 0x514   : > { %v1468_v50 = vmul.f32 %v3506_v5, %v4344_v29 }
 0x515   : > { %v2221_v5 = vpop.permute.xlu1 %2220 }
 0x516   : > { %3275 = vmatmul.msk.f32.vlgmr.msra.gmra.mxu0 %vm1404_vm8, %v1468_v50 }
 0x517   : > { %1788 = vmatpush.msra.mxu0 %v3427_v6  ;;  %v4405_v11 = vpop.f32.mrf.mxu3 }
 0x519   : > { %1789 = vmatpush.msra.mxu0 %v3428_v8 }
 0x51a   : > { %2280 = vrot.lane.b32.xlu2 %v4221_v7, %s3627_s8 }
 0x522   : > { %2222 = vrot.lane.b32.xlu2 %v4138_v41, %s3627_s8 }
 0x529   : > { %v1948_v38 = vpop.f32.mrf.mxu3 }
 0x52a   : > { %v4446_v60 = vadd.f32 %v1948_v38, %v4255_v26 }
 0x52c   : > { %v2007_v61 = vsel %vm1404_vm8, %v4446_v60, -inf }
 0x531   : > { %v1951_v14 = vpop.f32.mrf.mxu3 }
 0x532   : > { %v4410_v15 = vadd.f32 %v1951_v14, %v4255_v26 }
 0x534   : > { %v2010_v18 = vsel %vm1404_vm8, %v4410_v15, -inf }
 0x535   : > { %2011 = vmax.xlane.f32.xlu1 %v2010_v18 }
 0x539   : > { %v1954_v21 = vpop.f32.mrf.mxu3 }
 0x53a   : > { %v4415_v24 = vadd.f32 %v1954_v21, %v4255_v26 }
 0x53c   : > { %v2013_v7 = vsel %vm1404_vm8, %v4415_v24, -inf }
 0x548   : > { %v1455_v25 = vpop.xlane.xlu0 %1454 }
 0x549   : > { %3507 = vrcp.f32 %v1455_v25 }
 0x54b   : > { %2014 = vmax.xlane.f32.xlu2 %v2013_v7  ;;  %v1310_v7 = vld [vmem:[%s3777_s6 + $0x18] sm:$0xff] }
 0x54c   : > { %1833 = vmatpush.msrb.mxu1 %v1310_v7 }
 0x54d   : > { %v1458_v41 = vpop.xlane.xlu2 %1457 }
 0x54e   : > { %2276 = vrot.lane.b32.xlu1 %v4198_v27, %s3627_s8  ;;  %3509 = vrcp.f32 %v1458_v41  ;;  %v1664_v27 = vsub.f32 %v4330_v35, %v1658_v62  ;;  %v1309_v41 = vld [vmem:[%s3777_s6 + $0x10] sm:$0xff] }
 0x54f   : > { %v3508_v29 = vpop.eup %3507  ;;  %1834 = vmatpush.msrb.mxu1 %v1309_v41 }
 0x550   : > { %v1652_v31 = vpop.xlane.xlu0 %1651  ;;  %v1469_v33 = vmul.f32 %v3508_v29, %v4358_v46  ;;  %v1675_v46 = vmul.f32 1.442695, %v1664_v27 }
 0x551   : > { %v1662_v32 = vsub.f32 %v1633_v51, %v1652_v31 }
 0x552   : > { %3276 = vmatmul.msk.f32.gmra.mxu0 %vm1404_vm8, %v1469_v33 }
 0x553   : > { %v1671_v36 = vmul.f32 1.442695, %v1662_v32 }
 0x554   : > { %v3510_v37 = vpop.eup %3509 }
 0x555   : > { %3511 = vpow2.f32 %v1671_v36  ;;  %v1655_v40 = vpop.xlane.xlu2 %1654  ;;  %v1470_v44 = vmul.f32 %v3510_v37, %v4362_v43 }
 0x556   : > { %v1663_v49 = vsub.f32 %v1636_v58, %v1655_v40 }
 0x558   : > { %v1673_v19 = vmul.f32 1.442695, %v1663_v49 }
 0x55a   : > { %3277 = vmatmul.msk.f32.gmra.mxu0 %vm1404_vm8, %v1470_v44  ;;  %3513 = vpow2.f32 %v1673_v19 }
 0x55b   : > { %v4425_v55 = vpop.eup %3511 }
 0x55c   : > { %v1686_v45 = vsel %vm1404_vm8, %v4425_v55, 0.0 }
 0x55d   : > { %v1679_v9 = vpop.xlane.xlu2 %1678  ;;  %1687 = vadd.xlane.f32.xlu0 %v1686_v45 }
 0x55e   : > { %3515 = vrcp.f32 %v1679_v9 }
 0x55f   : > { %3517 = vpow2.f32 %v1675_v46 }
 0x560   : > { %v4430_v47 = vpop.eup %3513 }
 0x561   : > { %v1689_v51 = vsel %vm1404_vm8, %v4430_v47, 0.0 }
 0x563   : > { %2278 = vrot.lane.b32.xlu2 %v4208_v63, %s3627_s8  ;;  %v1968_v48 = vpop.permute.xlu0 %1967 }
 0x564   : > { %v3516_v43 = vpop.eup %3515 }
 0x565   : > { %v1701_v35 = vmul.f32 %v3516_v43, %v4374_v53  ;;  %v1758_v30 = vpop.permute.xlu2 %1757  ;;  %1690 = vadd.xlane.f32.xlu0 %v1689_v51  ;;  %v4439_v52 = vpop.eup %3517 }
 0x566   : > { %1790 = vmatpush.msra.mxu0 %v1758_v30  ;;  %v1692_v54 = vsel %vm1404_vm8, %v4439_v52, 0.0 }
 0x567   : > { %3290 = vmatmul.msk.f32.vlgmr.msrb.gmra.mxu0 %vm1404_vm8, %v1701_v35 }
 0x568   : > { %3314 = vmatpush.xpose.msk.msrb.mxu0 %vm1315_vm6, %v1968_v48 }
 0x56b   : > { %v3431_v34 = vpop.permute.xlu0 %3430 }
 0x56c   : > { %3315 = vmatpush.xpose.msk.msrb.mxu0 %vm1315_vm6, %v4382_v1  ;;  %v3432_v63 = vunpack.i.l.bf16 %v3431_v34  ;;  %v3433_v58 = vunpack.i.h.bf16 %v3431_v34 }
 0x56d   : > { %v1964_v57 = vpop.permute.xlu2 %1963  ;;  %1693 = vadd.xlane.f32.xlu0 %v1692_v54 }
 0x56e   : > { %2104 = vmatpush.msra.mxu3 %v3432_v63 }
 0x570   : > { %3316 = vmatpush.xpose.msk.msrb.mxu0 %vm1315_vm6, %v1964_v57  ;;  %2105 = vmatpush.msra.mxu3 %v3433_v58 }
 0x573   : > { %v4449_v53 = vpop.permute.xlu0 %1959 }
 0x575   : > { %v4453_v62 = vpop.permute.xlu2 %1961  ;;  %2008 = vmax.xlane.f32.xlu0 %v2007_v61 }
 0x57b   : > { %v2074_v2 = vpop.permute.xlu0 %2073 }
 0x57c   : > { %2106 = vmatpush.msra.mxu3 %v2074_v2 }
 0x57d   : > { %v2281_v1 = vpop.permute.xlu2 %2280 }
 0x57e   : > { %3338 = vmatpush.xpose.msk.msrb.mxu3 %vm1315_vm6, %v2281_v1 }
 0x583   : > { %v2229_v28 = vpop.permute.xlu0 %2228 }
 0x584   : > { %3333 = vmatpush.xpose.msk.msrb.mxu2 %vm1315_vm6, %v2229_v28 }
 0x585   : > { %v2223_v18 = vpop.permute.xlu2 %2222 }
 0x589   : > { %2226 = vrot.lane.b32.xlu0 %v4116_v22, %s3627_s8 }
 0x593   : > { %v1532_v4 = vpop.f32.mrf.mxu0 }
 0x594   : > { %3305 = vmatmul.msk.f32.gmra.mxu2 %vm1315_vm6, %v1532_v4 }
 0x5a8   : > { %v2012_v50 = vpop.xlane.xlu1 %2011 }
 0x5a9   : > { %v2026_v6 = vsub.f32 %v4410_v15, %v2012_v50 }
 0x5ab   : > { %v2033_v8 = vmul.f32 1.442695, %v2026_v6 }
 0x5ad   : > { %3519 = vpow2.f32 %v2033_v8 }
 0x5b3   : > { %v4461_v38 = vpop.eup %3519 }
 0x5b4   : > { %v2046_v14 = vsel %vm1404_vm8, %v4461_v38, 0.0 }
 0x5b5   : > { %2047 = vadd.xlane.f32.xlu1 %v2046_v14 }
 0x5be   : > { %v2015_v21 = vpop.xlane.xlu2 %2014 }
 0x5bf   : > { %v2027_v22 = vsub.f32 %v4415_v24, %v2015_v21 }
 0x5c0   : > { %v2277_v31 = vpop.permute.xlu1 %2276 }
 0x5c1   : > { %v2035_v25 = vmul.f32 1.442695, %v2027_v22 }
 0x5c3   : > { %3521 = vpow2.f32 %v2035_v25 }
 0x5c6   : > { %v2279_v29 = vpop.permute.xlu2 %2278 }
 0x5c7   : > { %3339 = vmatpush.xpose.msk.msrb.mxu3 %vm1315_vm6, %v2279_v29 }
 0x5c9   : > { %v4469_v15 = vpop.eup %3521 }
 0x5ca   : > { %v2049_v33 = vsel %vm1404_vm8, %v4469_v15, 0.0 }
 0x5cb   : > { %2050 = vadd.xlane.f32.xlu0 %v2049_v33  ;;  %3340 = vmatpush.xpose.msk.msrb.mxu3 %vm1315_vm6, %v2277_v31  ;;  %v1312_v33 = vld [vmem:[%s3777_s6 + $0x28] sm:$0xff] }
 0x5cc   : > { %2193 = vmatpush.msra.mxu1 %v1312_v33 }
 0x5ce   : > { %2272 = vrot.lane.b32.xlu1 %v4210_v0, %s3627_s8 }
 0x5cf   : > { %v1535_v24 = vpop.f32.mrf.mxu0 }
 0x5d0   : > { %3306 = vmatmul.msk.f32.gmra.mxu2 %vm1315_vm6, %v1535_v24  ;;  %v1688_v32 = vpop.xlane.xlu0 %1687 }
 0x5d1   : > { %3523 = vrcp.f32 %v1688_v32  ;;  %v1311_v32 = vld [vmem:[%s3777_s6 + $0x20] sm:$0xff] }
 0x5d2   : > { %2194 = vmatpush.msra.mxu1 %v1311_v32 }
 0x5d7   : > { %v3524_v36 = vpop.eup %3523  ;;  %v1538_v37 = vpop.f32.mrf.mxu0 }
 0x5d8   : > { %v1704_v40 = vmul.f32 %v3524_v36, %v4425_v55  ;;  %3307 = vmatmul.msk.f32.gmra.mxu2 %vm1315_vm6, %v1538_v37  ;;  %v1691_v49 = vpop.xlane.xlu0 %1690 }
 0x5d9   : > { %3525 = vrcp.f32 %v1691_v49 }
 0x5da   : > { %3293 = vmatmul.msk.f32.vlgmr.msra.gmra.mxu0 %vm1404_vm8, %v1704_v40 }
 0x5df   : > { %v3526_v19 = vpop.eup %3525  ;;  %2224 = vrot.lane.b32.xlu0 %v4150_v39, %s3627_s8 }
 0x5e0   : > { %v1694_v0 = vpop.xlane.xlu0 %1693  ;;  %v1705_v44 = vmul.f32 %v3526_v19, %v4430_v47 }
 0x5e1   : > { %3527 = vrcp.f32 %v1694_v0 }
 0x5e2   : > { %3294 = vmatmul.msk.f32.gmra.mxu0 %vm1404_vm8, %v1705_v44 }
 0x5e4   : > { %v1745_v27 = vpop.f32.mrf.mxu0 }
 0x5e5   : > { %3296 = vmatmul.msk.f32.vlgmr.msrb.gmra.mxu1 %vm1315_vm6, %v1745_v27 }
 0x5e7   : > { %v3528_v55 = vpop.eup %3527 }
 0x5e8   : > { %v2009_v45 = vpop.xlane.xlu0 %2008  ;;  %v1706_v9 = vmul.f32 %v3528_v55, %v4439_v52 }
 0x5e9   : > { %v2025_v46 = vsub.f32 %v4446_v60, %v2009_v45 }
 0x5ea   : > { %3295 = vmatmul.msk.f32.gmra.mxu0 %vm1404_vm8, %v1706_v9 }
 0x5eb   : > { %v2031_v48 = vmul.f32 1.442695, %v2025_v46 }
 0x5ed   : > { %3529 = vpow2.f32 %v2031_v48  ;;  %3297 = vmatmul.msk.f32.gmra.mxu1 %vm1315_vm6, %v4401_v10  ;;  %v4506_v10 = vpop.f32.mrf.mxu2 }
 0x5f2   : > { %3317 = vmatmul.msk.f32.vlgmr.msrb.gmra.mxu0 %vm1315_vm6, %v4388_v3 }
 0x5f3   : > { %v3530_v39 = vpop.eup %3529 }
 0x5f4   : > { %v2043_v47 = vsel %vm1404_vm8, %v3530_v39, 0.0 }
 0x5f5   : > { %3298 = vmatmul.msk.f32.gmra.mxu1 %vm1315_vm6, %v4405_v11  ;;  %2044 = vadd.xlane.f32.xlu2 %v2043_v47  ;;  %v4509_v35 = vpop.f32.mrf.mxu2 }
 0x5fa   : > { %3318 = vmatmul.msk.f32.gmra.mxu0 %vm1315_vm6, %v4449_v53 }
 0x5fb   : > { %v2227_v43 = vpop.permute.xlu0 %2226 }
 0x5fc   : > { %3334 = vmatpush.xpose.msk.msrb.mxu2 %vm1315_vm6, %v2227_v43 }
 0x5fd   : > { %v4512_v52 = vpop.f32.mrf.mxu2 }
 0x5ff   : > { %3335 = vmatmul.msk.f32.vlgmr.msrb.gmra.mxu2 %vm1315_vm6, %v2221_v5 }
 0x602   : > { %3319 = vmatmul.msk.f32.gmra.mxu0 %vm1315_vm6, %v4453_v62 }
 0x607   : > { %3336 = vmatmul.msk.f32.gmra.mxu2 %vm1315_vm6, %v2223_v18 }
 0x60d   : > { %2270 = vrot.lane.b32.xlu2 %v4195_v59, %s3627_s8 }
 0x615   : > { %2274 = vrot.lane.b32.xlu2 %v4268_v42, %s3627_s8 }
 0x617   : > { %v4515_v34 = vpop.f32.mrf.mxu2 }
 0x628   : > { %v2048_v63 = vpop.xlane.xlu1 %2047 }
 0x63e   : > { %v2051_v3 = vpop.xlane.xlu0 %2050 }
 0x651   : > { %v2225_v11 = vpop.permute.xlu0 %2224 }
 0x652   : > { %3337 = vmatmul.msk.f32.gmra.mxu2 %vm1315_vm6, %v2225_v11 }
 0x653   : > { %v4518_v58 = vpop.f32.mrf.mxu2 }
 0x657   : > { %v1792_v51 = vpop.f32.mrf.mxu0 }
 0x658   : > { %3299 = vmatmul.msk.f32.gmra.mxu1 %vm1315_vm6, %v1792_v51 }
 0x65b   : > { %v4525_v4 = vpop.f32.mrf.mxu2 }
 0x65f   : > { %v1795_v30 = vpop.f32.mrf.mxu0 }
 0x660   : > { %3300 = vmatmul.msk.f32.gmra.mxu1 %vm1315_vm6, %v1795_v30 }
 0x667   : > { %v1798_v59 = vpop.f32.mrf.mxu0 }
 0x668   : > { %3301 = vmatmul.msk.f32.gmra.mxu1 %vm1315_vm6, %v1798_v59  ;;  %v2045_v42 = vpop.xlane.xlu2 %2044 }
 0x669   : > { %3531 = vrcp.f32 %v2045_v42 }
 0x66a   : > { %3533 = vrcp.f32 %v2048_v63 }
 0x66b   : > { %3535 = vrcp.f32 %v2051_v3 }
 0x66f   : > { %v3532_v54 = vpop.eup %3531  ;;  %v1998_v57 = vpop.f32.mrf.mxu0 }
 0x670   : > { %v2067_v60 = vmul.f32 %v3532_v54, %v3530_v39  ;;  %v1999_v53 = vadd.f32 %v1998_v57, %v4255_v26  ;;  %v3534_v62 = vpop.eup %3533  ;;  %v2271_v25 = vpop.permute.xlu2 %2270 }
 0x671   : > { %v2068_v28 = vmul.f32 %v3534_v62, %v4461_v38  ;;  %v3536_v50 = vpop.eup %3535 }
 0x672   : > { %3320 = vmatmul.msk.f32.vlgmr.msra.gmra.mxu3 %vm1404_vm8, %v2067_v60  ;;  %v2016_v61 = vsel %vm1404_vm8, %v1999_v53, -inf  ;;  %v2069_v14 = vmul.f32 %v3536_v50, %v4469_v15  ;;  %v2273_v15 = vpop.permute.xlu1 %2272 }
 0x673   : > { %2017 = vmax.xlane.f32.xlu1 %v2016_v61 }
 0x677   : > { %v2001_v2 = vpop.f32.mrf.mxu0 }
 0x678   : > { %v2002_v1 = vadd.f32 %v2001_v2, %v4255_v26  ;;  %v2275_v31 = vpop.permute.xlu2 %2274 }
 0x67a   : > { %3321 = vmatmul.msk.f32.gmra.mxu3 %vm1404_vm8, %v2068_v28  ;;  %v2019_v5 = vsel %vm1404_vm8, %v2002_v1, -inf }
 0x67b   : > { %2020 = vmax.xlane.f32.xlu0 %v2019_v5 }
 0x67f   : > { %v2004_v6 = vpop.f32.mrf.mxu0 }
 0x680   : > { %v2005_v8 = vadd.f32 %v2004_v6, %v4255_v26 }
 0x682   : > { %3322 = vmatmul.msk.f32.gmra.mxu3 %vm1404_vm8, %v2069_v14  ;;  %v2261_v18 = vpop.f32.mrf.mxu2  ;;  %v2022_v21 = vsel %vm1404_vm8, %v2005_v8, -inf }
 0x683   : > { %v2262_v38 = vadd.f32 %v2261_v18, %v4255_v26  ;;  %2023 = vmax.xlane.f32.xlu2 %v2022_v21 }
 0x685   : > { %v2320_v22 = vsel %vm1404_vm8, %v2262_v38, -inf }
 0x686   : > { %2321 = vmax.xlane.f32.xlu1 %v2320_v22 }
 0x68a   : > { %v2264_v7 = vpop.f32.mrf.mxu2  ;;  %3341 = vmatmul.msk.f32.vlgmr.msrb.gmra.mxu3 %vm1315_vm6, %v2271_v25  ;;  %v3444_v25 = vpack.i.bf16 %v4234_v13, %v4252_v23 }
 0x68b   : > { %v2265_v41 = vadd.f32 %v2264_v7, %v4255_v26  ;;  %v3449_v7 = vpack.i.bf16 %v4244_v20, %v4231_v12 }
 0x68d   : > { %v2323_v29 = vsel %vm1404_vm8, %v2265_v41, -inf }
 0x68e   : > { %2324 = vmax.xlane.f32.xlu2 %v2323_v29 }
 0x692   : > { %3342 = vmatmul.msk.f32.gmra.mxu3 %vm1315_vm6, %v2273_v15 }
 0x69a   : > { %3343 = vmatmul.msk.f32.gmra.mxu3 %vm1315_vm6, %v2275_v31 }
 0x69f   : > { %3435 = vrot.lane.b32.xlu1 %v4239_v17, %s3626_s24 }
 0x6d5   : > { %v2267_v24 = vpop.f32.mrf.mxu2 }
 0x6d6   : > { %v4545_v36 = vadd.f32 %v2267_v24, %v4255_v26 }
 0x6d8   : > { %v2326_v37 = vsel %vm1404_vm8, %v4545_v36, -inf }
 0x6d9   : > { %2327 = vmax.xlane.f32.xlu0 %v2326_v37 }
 0x6e6   : > { %v2018_v40 = vpop.xlane.xlu1 %2017 }
 0x6e7   : > { %v2028_v49 = vsub.f32 %v1999_v53, %v2018_v40 }
 0x6e9   : > { %v2037_v19 = vmul.f32 1.442695, %v2028_v49 }
 0x6eb   : > { %3537 = vpow2.f32 %v2037_v19 }
 0x6ee   : > { %v2021_v0 = vpop.xlane.xlu0 %2020 }
 0x6ef   : > { %v2029_v44 = vsub.f32 %v2002_v1, %v2021_v0 }
 0x6f1   : > { %v4549_v27 = vpop.eup %3537  ;;  %v2039_v17 = vmul.f32 1.442695, %v2029_v44 }
 0x6f2   : > { %v2052_v55 = vsel %vm1404_vm8, %v4549_v27, 0.0 }
 0x6f3   : > { %3539 = vpow2.f32 %v2039_v17  ;;  %2053 = vadd.xlane.f32.xlu0 %v2052_v55 }
 0x6f5   : > { %v2108_v45 = vpop.f32.mrf.mxu3 }
 0x6f6   : > { %v2024_v9 = vpop.xlane.xlu2 %2023  ;;  %3326 = vmatmul.msk.f32.vlgmr.msra.gmra.mxu1 %vm1315_vm6, %v2108_v45 }
 0x6f7   : > { %v2030_v46 = vsub.f32 %v2005_v8, %v2024_v9 }
 0x6f9   : > { %v4554_v48 = vpop.eup %3539  ;;  %v2041_v39 = vmul.f32 1.442695, %v2030_v46  ;;  %v2322_v47 = vpop.xlane.xlu1 %2321 }
 0x6fa   : > { %v2338_v43 = vsub.f32 %v2262_v38, %v2322_v47  ;;  %v2055_v3 = vsel %vm1404_vm8, %v4554_v48, 0.0 }
 0x6fb   : > { %3541 = vpow2.f32 %v2041_v39  ;;  %2056 = vadd.xlane.f32.xlu0 %v2055_v3 }
 0x6fc   : > { %v2344_v11 = vmul.f32 1.442695, %v2338_v43 }
 0x6fd   : > { %v2111_v51 = vpop.f32.mrf.mxu3 }
 0x6fe   : > { %3327 = vmatmul.msk.f32.gmra.mxu1 %vm1315_vm6, %v2111_v51  ;;  %3543 = vpow2.f32 %v2344_v11 }
 0x701   : > { %v4559_v30 = vpop.eup %3541  ;;  %v2325_v59 = vpop.xlane.xlu2 %2324 }
 0x702   : > { %v2339_v42 = vsub.f32 %v2265_v41, %v2325_v59  ;;  %v2058_v63 = vsel %vm1404_vm8, %v4559_v30, 0.0 }
 0x703   : > { %2059 = vadd.xlane.f32.xlu0 %v2058_v63 }
 0x704   : > { %v2346_v54 = vmul.f32 1.442695, %v2339_v42  ;;  %v4564_v60 = vpop.eup %3543 }
 0x705   : > { %v2114_v57 = vpop.f32.mrf.mxu3  ;;  %v2356_v53 = vsel %vm1404_vm8, %v4564_v60, 0.0 }
 0x706   : > { %3328 = vmatmul.msk.f32.gmra.mxu1 %vm1315_vm6, %v2114_v57  ;;  %3545 = vpow2.f32 %v2346_v54 }
 0x70b   : > { %2357 = vadd.xlane.f32.xlu0 %v2356_v53 }
 0x70c   : > { %v4569_v2 = vpop.eup %3545 }
 0x70d   : > { %v2311_v61 = vpop.f32.mrf.mxu3  ;;  %v2359_v50 = vsel %vm1404_vm8, %v4569_v2, 0.0 }
 0x70e   : > { %v2312_v62 = vadd.f32 %v2311_v61, %v4255_v26 }
 0x710   : > { %v2329_v1 = vsel %vm1404_vm8, %v2312_v62, -inf }
 0x711   : > { %v3436_v28 = vpop.permute.xlu1 %3435  ;;  %2330 = vmax.xlane.f32.xlu1 %v2329_v1 }
 0x712   : > { %v3437_v5 = vunpack.i.l.bf16 %v3436_v28  ;;  %v3438_v6 = vunpack.i.h.bf16 %v3436_v28 }
 0x713   : > { %2360 = vadd.xlane.f32.xlu0 %v2359_v50 }
 0x714   : > { %2148 = vmatpush.msra.mxu0 %v3437_v5 }
 0x715   : > { %v2314_v8 = vpop.f32.mrf.mxu3 }
 0x716   : > { %v2315_v14 = vadd.f32 %v2314_v8, %v4255_v26  ;;  %2149 = vmatpush.msra.mxu0 %v3438_v6 }
 0x718   : > { %v2332_v18 = vsel %vm1404_vm8, %v2315_v14, -inf }
 0x719   : > { %2333 = vmax.xlane.f32.xlu2 %v2332_v18 }
 0x71d   : > { %v2317_v21 = vpop.f32.mrf.mxu3 }
 0x71e   : > { %v2318_v38 = vadd.f32 %v2317_v21, %v4255_v26 }
 0x720   : > { %v2335_v22 = vsel %vm1404_vm8, %v2318_v38, -inf }
 0x721   : > { %2336 = vmax.xlane.f32.xlu2 %v2335_v22  ;;  %v1313_v22 = vld [vmem:[%s3777_s6 + $0x30] sm:$0xff] }
 0x72a   : > { %3440 = vrot.lane.b32.xlu1 %v4182_v56, %s3627_s8 }
 0x732   : > { %3445 = vrot.lane.b32.xlu1 %v3444_v25, %s3627_s8 }
 0x739   : > { %2117 = vrot.lane.b32.xlu2 %v4244_v20, %s3626_s24 }
 0x73a   : > { %3450 = vrot.lane.b32.xlu1 %v3449_v7, %s3627_s8 }
 0x74c   : > { %v2328_v26 = vpop.xlane.xlu0 %2327 }
 0x74d   : > { %v2340_v41 = vsub.f32 %v4545_v36, %v2328_v26 }
 0x74f   : > { %v2348_v29 = vmul.f32 1.442695, %v2340_v41 }
 0x751   : > { %3547 = vpow2.f32 %v2348_v29 }
 0x757   : > { %v4589_v15 = vpop.eup %3547 }
 0x758   : > { %v2362_v56 = vsel %vm1404_vm8, %v4589_v15, 0.0 }
 0x762   : > { %2363 = vadd.xlane.f32.xlu2 %v2362_v56 }
 0x766   : > { %v2054_v31 = vpop.xlane.xlu0 %2053 }
 0x76e   : > { %v2057_v37 = vpop.xlane.xlu0 %2056 }
 0x776   : > { %v2060_v55 = vpop.xlane.xlu0 %2059 }
 0x77e   : > { %v2358_v63 = vpop.xlane.xlu0 %2357 }
 0x784   : > { %v2331_v13 = vpop.xlane.xlu1 %2330 }
 0x785   : > { %v2341_v23 = vsub.f32 %v2312_v62, %v2331_v13 }
 0x786   : > { %v2361_v1 = vpop.xlane.xlu0 %2360 }
 0x787   : > { %v2350_v12 = vmul.f32 1.442695, %v2341_v23 }
 0x789   : > { %3549 = vpow2.f32 %v2350_v12  ;;  %v1836_v12 = vpop.f32.mrf.mxu1 }
 0x78c   : > { %v2334_v33 = vpop.xlane.xlu2 %2333 }
 0x78d   : > { %v2342_v20 = vsub.f32 %v2315_v14, %v2334_v33 }
 0x78f   : > { %v4593_v24 = vpop.eup %3549  ;;  %v2352_v32 = vmul.f32 1.442695, %v2342_v20 }
 0x790   : > { %v2365_v36 = vsel %vm1404_vm8, %v4593_v24, 0.0 }
 0x791   : > { %3551 = vpow2.f32 %v2352_v32  ;;  %2366 = vadd.xlane.f32.xlu0 %v2365_v36  ;;  %v1839_v33 = vpop.f32.mrf.mxu1 }
 0x792   : > { %3553 = vrcp.f32 %v2054_v31 }
 0x794   : > { %v2337_v40 = vpop.xlane.xlu2 %2336 }
 0x795   : > { %v2343_v49 = vsub.f32 %v2318_v38, %v2337_v40  ;;  %v1314_v38 = vld [vmem:[%s3777_s6 + $0x38] sm:$0xff] }
 0x796   : > { %2506 = vmatpush.msra.mxu3 %v1314_v38 }
 0x797   : > { %v4597_v19 = vpop.eup %3551  ;;  %v2354_v0 = vmul.f32 1.442695, %v2343_v49 }
 0x798   : > { %v2368_v44 = vsel %vm1404_vm8, %v4597_v19, 0.0  ;;  %v3554_v17 = vpop.eup %3553  ;;  %2507 = vmatpush.msra.mxu3 %v1313_v22 }
 0x799   : > { %3555 = vpow2.f32 %v2354_v0  ;;  %2369 = vadd.xlane.f32.xlu0 %v2368_v44  ;;  %v2070_v45 = vmul.f32 %v3554_v17, %v4549_v27  ;;  %v1842_v20 = vpop.f32.mrf.mxu1  ;;  %v1890_v0 = vadd.f32 %v4506_v10, %v1836_v12 }
 0x79a   : > { %3557 = vrcp.f32 %v2057_v37 }
 0x79b   : > { %3559 = vrcp.f32 %v2060_v55 }
 0x79c   : > { %v2118_v9 = vpop.permute.xlu2 %2117  ;;  %v3441_v46 = vpop.permute.xlu1 %3440  ;;  %3561 = vrcp.f32 %v2358_v63 }
 0x79d   : > { %v3442_v39 = vunpack.i.l.bf16 %v3441_v46  ;;  %2150 = vmatpush.msra.mxu0 %v2118_v9  ;;  %v3443_v43 = vunpack.i.h.bf16 %v3441_v46  ;;  %3563 = vrcp.f32 %v2361_v1  ;;  %v3609_v9 = vld [vmem:[%s4927_s3] sm:$0xff] }
 0x79e   : > { %3323 = vmatmul.msk.f32.vlgmr.msra.gmra.mxu0 %vm1404_vm8, %v2070_v45  ;;  %v3459_v45 = vld [vmem:[%s4937_s5] ss:$0 sm:$0xff] }
 0x79f   : > { %v3556_v47 = vpop.eup %3555  ;;  %2417 = vmatpush.msrb.mxu0 %v3442_v39 }
 0x7a0   : > { %v2371_v3 = vsel %vm1404_vm8, %v3556_v47, 0.0  ;;  %v3558_v11 = vpop.eup %3557 }
 0x7a1   : > { %2372 = vadd.xlane.f32.xlu1 %v2371_v3  ;;  %2418 = vmatpush.msrb.mxu0 %v3443_v43  ;;  %v2071_v59 = vmul.f32 %v3558_v11, %v4554_v48  ;;  %v3560_v54 = vpop.eup %3559  ;;  %v1845_v32 = vpop.f32.mrf.mxu1 }
 0x7a2   : > { %v2072_v53 = vmul.f32 %v3560_v54, %v4559_v30  ;;  %v3562_v28 = vpop.eup %3561  ;;  %v1896_v54 = vadd.f32 %v4512_v52, %v1842_v20 }
 0x7a3   : > { %v2380_v48 = vmul.f32 %v3562_v28, %v4564_v60  ;;  %v3564_v5 = vpop.eup %3563 }
 0x7a4   : > { %v3446_v51 = vpop.permute.xlu1 %3445  ;;  %v2381_v50 = vmul.f32 %v3564_v5, %v4569_v2 }
 0x7a5   : > { %v3448_v42 = vunpack.i.h.bf16 %v3446_v51  ;;  %v3447_v27 = vunpack.i.l.bf16 %v3446_v51 }
 0x7a6   : > { %3324 = vmatmul.msk.f32.gmra.mxu0 %vm1404_vm8, %v2071_v59  ;;  %v3610_v59 = vld [vmem:[%s4927_s3 + $0x8] sm:$0xff] }
 0x7a7   : > { %2419 = vmatpush.msrb.mxu0 %v3447_v27  ;;  %2461 = vmatpush.msra.mxu2 %v3448_v42 }
 0x7a9   : > { %v1848_v37 = vpop.f32.mrf.mxu1 }
 0x7ac   : > { %v3451_v57 = vpop.permute.xlu1 %3450 }
 0x7ad   : > { %v3452_v61 = vunpack.i.l.bf16 %v3451_v57  ;;  %v3453_v62 = vunpack.i.h.bf16 %v3451_v57 }
 0x7ae   : > { %3325 = vmatmul.msk.f32.gmra.mxu0 %vm1404_vm8, %v2072_v53 }
 0x7af   : > { %2462 = vmatpush.msra.mxu2 %v3452_v61 }
 0x7b1   : > { %2463 = vmatpush.msra.mxu2 %v3453_v62  ;;  %v1851_v49 = vpop.f32.mrf.mxu1  ;;  %v3611_v62 = vld [vmem:[%s4927_s3 + $0x10] sm:$0xff] }
 0x7b6   : > { %3344 = vmatmul.msk.f32.vlgmr.msrb.gmra.mxu0 %vm1404_vm8, %v2380_v48 }
 0x7be   : > { %3345 = vmatmul.msk.f32.gmra.mxu0 %vm1404_vm8, %v2381_v50  ;;  %v1899_v50 = vadd.f32 %v4515_v34, %v1845_v32 }
 0x7d5   : > { %v2364_v30 = vpop.xlane.xlu2 %2363 }
 0x7d6   : > { %3565 = vrcp.f32 %v2364_v30 }
 0x7dc   : > { %v3566_v6 = vpop.eup %3565 }
 0x7dd   : > { %v2382_v8 = vmul.f32 %v3566_v6, %v4589_v15 }
 0x7df   : > { %3346 = vmatmul.msk.f32.gmra.mxu0 %vm1404_vm8, %v2382_v8 }
 0x804   : > { %v2367_v14 = vpop.xlane.xlu0 %2366 }
 0x805   : > { %3567 = vrcp.f32 %v2367_v14  ;;  %v3612_v14 = vld [vmem:[%s4927_s3 + $0x18] sm:$0xff] }
 0x80b   : > { %v3568_v18 = vpop.eup %3567 }
 0x80c   : > { %v2383_v60 = vmul.f32 %v3568_v18, %v4593_v24  ;;  %v2370_v21 = vpop.xlane.xlu0 %2369 }
 0x80d   : > { %3569 = vrcp.f32 %v2370_v21 }
 0x80e   : > { %3347 = vmatmul.msk.f32.vlgmr.msra.gmra.mxu2 %vm1404_vm8, %v2383_v60  ;;  %v1902_v60 = vadd.f32 %v4518_v58, %v1848_v37 }
 0x813   : > { %v3570_v2 = vpop.eup %3569 }
 0x814   : > { %v2373_v25 = vpop.xlane.xlu1 %2372  ;;  %v2384_v7 = vmul.f32 %v3570_v2, %v4597_v19  ;;  %v2196_v19 = vpop.f32.mrf.mxu1 }
 0x815   : > { %3571 = vrcp.f32 %v2373_v25  ;;  %v2214_v44 = vadd.f32 %v2196_v19, %v1890_v0  ;;  %v3613_v25 = vld [vmem:[%s4927_s3 + $0x20] sm:$0xff] }
 0x816   : > { %3348 = vmatmul.msk.f32.gmra.mxu2 %vm1404_vm8, %v2384_v7 }
 0x81b   : > { %v3572_v26 = vpop.eup %3571  ;;  %v2152_v41 = vpop.f32.mrf.mxu0 }
 0x81c   : > { %3329 = vmatmul.msk.f32.gmra.mxu1 %vm1315_vm6, %v2152_v41  ;;  %v2385_v29 = vmul.f32 %v3572_v26, %v3556_v47  ;;  %v2199_v39 = vpop.f32.mrf.mxu1  ;;  %v1893_v47 = vadd.f32 %v4509_v35, %v1839_v33  ;;  %v1905_v41 = vadd.f32 %v4525_v4, %v1851_v49 }
 0x81e   : > { %3349 = vmatmul.msk.f32.gmra.mxu2 %vm1404_vm8, %v2385_v29  ;;  %v2215_v3 = vadd.f32 %v2199_v39, %v1893_v47 }
 0x823   : > { %v2155_v15 = vpop.f32.mrf.mxu0 }
 0x824   : > { %3330 = vmatmul.msk.f32.gmra.mxu1 %vm1315_vm6, %v2155_v15  ;;  %v2202_v35 = vpop.f32.mrf.mxu1 }
 0x825   : > { %v2216_v57 = vadd.f32 %v2202_v35, %v1896_v54  ;;  %v2713_v54 = vld [vmem:[%s3795_s29 + $0x60] sm:$0xff] }
 0x82b   : > { %v2158_v56 = vpop.f32.mrf.mxu0 }
 0x82c   : > { %3331 = vmatmul.msk.f32.gmra.mxu1 %vm1315_vm6, %v2158_v56 }
 0x833   : > { %v2421_v13 = vpop.f32.mrf.mxu0 }
 0x834   : > { %3350 = vmatmul.msk.f32.vlgmr.msra.gmra.mxu3 %vm1315_vm6, %v2421_v13 }
 0x83b   : > { %v2424_v23 = vpop.f32.mrf.mxu0 }
 0x83c   : > { %3351 = vmatmul.msk.f32.gmra.mxu3 %vm1315_vm6, %v2424_v23  ;;  %v3614_v23 = vld [vmem:[%s4927_s3 + $0x28] sm:$0xff] }
 0x85c   : > { %v2427_v31 = vpop.f32.mrf.mxu0 }
 0x85d   : > { %3352 = vmatmul.msk.f32.gmra.mxu3 %vm1315_vm6, %v2427_v31 }
 0x891   : > { %v2465_v24 = vpop.f32.mrf.mxu2 }
 0x892   : > { %3353 = vmatmul.msk.f32.gmra.mxu3 %vm1315_vm6, %v2465_v24 }
 0x899   : > { %v2468_v36 = vpop.f32.mrf.mxu2  ;;  %v2205_v5 = vpop.f32.mrf.mxu1 }
 0x89a   : > { %3354 = vmatmul.msk.f32.gmra.mxu3 %vm1315_vm6, %v2468_v36  ;;  %v2217_v30 = vadd.f32 %v2205_v5, %v1899_v50  ;;  %v2709_v5 = vld [vmem:[%s3795_s29 + $0x40] sm:$0xff]  ;;  %v2710_v50 = vld [vmem:[%s3795_s29 + $0x48] sm:$0xff] }
 0x8a1   : > { %v2471_v40 = vpop.f32.mrf.mxu2  ;;  %v2208_v8 = vpop.f32.mrf.mxu1 }
 0x8a2   : > { %3355 = vmatmul.msk.f32.gmra.mxu3 %vm1315_vm6, %v2471_v40  ;;  %v2218_v38 = vadd.f32 %v2208_v8, %v1902_v60 }
 0x8a9   : > { %v2211_v26 = vpop.f32.mrf.mxu1 }
 0x8aa   : > { %v2219_v58 = vadd.f32 %v2211_v26, %v1905_v41 }
 0x8b7   : > { %v2509_v17 = vpop.f32.mrf.mxu3 }
 0x8b8   : > { %v2527_v55 = vadd.f32 %v2509_v17, %v2214_v44 }
 0x8ba   : > { %v2533_v46 = vadd.f32 %v3609_v9, %v2527_v55 }
 0x8bc   : > { %v4640_v43 = vadd.f32 %v3459_v45, %v2533_v46 }
 0x8be   : > { %v2549_v10 = vsel %vm978_vm1, %v4640_v43, 0.0 }
 0x8bf   : > { %2550 = vadd.xlane.f32.xlu0 %v2549_v10  ;;  %v2512_v11 = vpop.f32.mrf.mxu3 }
 0x8c0   : > { %v2528_v51 = vadd.f32 %v2512_v11, %v2215_v3 }
 0x8c2   : > { %v2534_v42 = vadd.f32 %v3610_v59, %v2528_v51 }
 0x8c4   : > { %v4647_v27 = vadd.f32 %v3459_v45, %v2534_v42  ;;  %v2715_v42 = vld [vmem:[%s3795_s29 + $0x70] sm:$0xff] }
 0x8c5   : > { %2749 = vmatpush.msra.mxu0 %v2715_v42 }
 0x8c6   : > { %v2552_v63 = vsel %vm978_vm1, %v4647_v27, 0.0 }
 0x8c7   : > { %2553 = vadd.xlane.f32.xlu0 %v2552_v63  ;;  %v2716_v63 = vld [vmem:[%s3795_s29 + $0x78] sm:$0xff]  ;;  %2750 = vmatpush.msra.mxu0 %v2713_v54 }
 0x8c8   : > { %2784 = vmatpush.msrb.mxu1 %v2716_v63 }
 0x8e0   : > { %v2515_v53 = vpop.f32.mrf.mxu3 }
 0x8e1   : > { %v2529_v61 = vadd.f32 %v2515_v53, %v2216_v57  ;;  %v2714_v57 = vld [vmem:[%s3795_s29 + $0x68] sm:$0xff] }
 0x8e2   : > { %2785 = vmatpush.msrb.mxu1 %v2714_v57 }
 0x8e3   : > { %v2535_v1 = vadd.f32 %v3611_v62, %v2529_v61  ;;  %v2711_v61 = vld [vmem:[%s3795_s29 + $0x50] sm:$0xff]  ;;  %v2712_v62 = vld [vmem:[%s3795_s29 + $0x58] sm:$0xff] }
 0x8e4   : > { %2751 = vmatpush.msra.mxu0 %v2711_v61  ;;  %2786 = vmatpush.msrb.mxu1 %v2712_v62 }
 0x8e5   : > { %v4655_v28 = vadd.f32 %v3459_v45, %v2535_v1 }
 0x8e6   : > { %2752 = vmatpush.msra.mxu0 %v2709_v5  ;;  %2787 = vmatpush.msrb.mxu1 %v2710_v50 }
 0x8e7   : > { %v2555_v48 = vsel %vm978_vm1, %v4655_v28, 0.0 }
 0x8e8   : > { %2556 = vadd.xlane.f32.xlu0 %v2555_v48 }
 0x915   : > { %v2518_v6 = vpop.f32.mrf.mxu3 }
 0x916   : > { %v2530_v52 = vadd.f32 %v2518_v6, %v2217_v30  ;;  %v2707_v6 = vld [vmem:[%s3795_s29 + $0x30] sm:$0xff] }
 0x917   : > { %2753 = vmatpush.msra.mxu0 %v2707_v6 }
 0x918   : > { %v2536_v18 = vadd.f32 %v3612_v14, %v2530_v52  ;;  %v2708_v52 = vld [vmem:[%s3795_s29 + $0x38] sm:$0xff]  ;;  %v2705_v14 = vld [vmem:[%s3795_s29 + $0x20] sm:$0xff] }
 0x919   : > { %2788 = vmatpush.msrb.mxu1 %v2708_v52  ;;  %2754 = vmatpush.msra.mxu0 %v2705_v14 }
 0x91a   : > { %v4664_v21 = vadd.f32 %v3459_v45, %v2536_v18  ;;  %v2706_v18 = vld [vmem:[%s3795_s29 + $0x28] sm:$0xff] }
 0x91b   : > { %2789 = vmatpush.msrb.mxu1 %v2706_v18 }
 0x91c   : > { %v2558_v2 = vsel %vm978_vm1, %v4664_v21, 0.0 }
 0x91d   : > { %v2521_v22 = vpop.f32.mrf.mxu3  ;;  %2559 = vadd.xlane.f32.xlu0 %v2558_v2  ;;  %v2704_v2 = vld [vmem:[%s3795_s29 + $0x18] sm:$0xff] }
 0x91e   : > { %v2531_v34 = vadd.f32 %v2521_v22, %v2218_v38  ;;  %v2703_v38 = vld [vmem:[%s3795_s29 + $0x10] sm:$0xff]  ;;  %2790 = vmatpush.msrb.mxu1 %v2704_v2  ;;  %v2701_v22 = vld [vmem:[%s3795_s29] sm:$0xff] }
 0x91f   : > { %2755 = vmatpush.msra.mxu0 %v2703_v38  ;;  %v2950_v38 = vld [vmem:[%s3807_s23 + $0xf8] sm:$0xff] }
 0x920   : > { %v2537_v7 = vadd.f32 %v3613_v25, %v2531_v34  ;;  %v2702_v34 = vld [vmem:[%s3795_s29 + $0x8] sm:$0xff]  ;;  %2990 = vmatpush.msrb.mxu3 %v2950_v38  ;;  %v2937_v38 = vld [vmem:[%s3807_s23 + $0x90] sm:$0xff] }
 0x921   : > { %2756 = vmatpush.msra.mxu0 %v2701_v22  ;;  %2791 = vmatpush.msrb.mxu1 %v2702_v34  ;;  %v2933_v22 = vld [vmem:[%s3807_s23 + $0x70] sm:$0xff] }
 0x922   : > { %v4672_v29 = vadd.f32 %v3459_v45, %v2537_v7  ;;  %v2949_v34 = vld [vmem:[%s3807_s23 + $0xf0] sm:$0xff] }
 0x923   : > { %2991 = vmatpush.msrb.mxu3 %v2949_v34  ;;  %v2919_v34 = vld [vmem:[%s3807_s23] sm:$0xff] }
 0x924   : > { %v2561_v15 = vsel %vm978_vm1, %v4672_v29, 0.0 }
 0x925   : > { %v2524_v56 = vpop.f32.mrf.mxu3  ;;  %2562 = vadd.xlane.f32.xlu2 %v2561_v15 }
 0x926   : > { %v2532_v13 = vadd.f32 %v2524_v56, %v2219_v58 }
 0x928   : > { %v2538_v31 = vadd.f32 %v3614_v23, %v2532_v13 }
 0x92a   : > { %v4679_v12 = vadd.f32 %v3459_v45, %v2538_v31 }
 0x92c   : > { %v2564_v33 = vsel %vm978_vm1, %v4679_v12, 0.0 }
 0x92d   : > { %2565 = vadd.xlane.f32.xlu0 %v2564_v33 }
 0x932   : > { %v2551_v4 = vpop.xlane.xlu0 %2550 }
 0x933   : > { %v2567_v20 = vmul.f32 %v2551_v4, %v3985_v16 }
 0x935   : > { %v4685_v24 = vsub.f32 %v4640_v43, %v2567_v20 }
 0x937   : > { %v2579_v32 = vmul.f32 %v4685_v24, %v4685_v24 }
 0x939   : > { %v2585_v36 = vsel %vm978_vm1, %v2579_v32, 0.0 }
 0x93a   : > { %v2554_v37 = vpop.xlane.xlu0 %2553  ;;  %2586 = vadd.xlane.f32.xlu2 %v2585_v36  ;;  %v4748_v36 = vld [vmem:[%s4938_s1] ss:$0 sm:$0xff] }
 0x93b   : > { %v2568_v40 = vmul.f32 %v2554_v37, %v3985_v16 }
 0x93d   : > { %v4692_v49 = vsub.f32 %v4647_v27, %v2568_v40 }
 0x93f   : > { %v2580_v19 = vmul.f32 %v4692_v49, %v4692_v49 }
 0x941   : > { %v2588_v0 = vsel %vm978_vm1, %v2580_v19, 0.0 }
 0x942   : > { %2589 = vadd.xlane.f32.xlu1 %v2588_v0  ;;  %v4756_v0 = vld [vmem:[%s4939_s7] ss:$0 sm:$0xff] }
 0x95b   : > { %v2557_v44 = vpop.xlane.xlu0 %2556 }
 0x95c   : > { %v2569_v17 = vmul.f32 %v2557_v44, %v3985_v16 }
 0x95e   : > { %v4699_v55 = vsub.f32 %v4655_v28, %v2569_v17 }
 0x960   : > { %v2581_v45 = vmul.f32 %v4699_v55, %v4699_v55 }
 0x962   : > { %v2591_v9 = vsel %vm978_vm1, %v2581_v45, 0.0 }
 0x963   : > { %2592 = vadd.xlane.f32.xlu0 %v2591_v9 }
 0x990   : > { %v2560_v46 = vpop.xlane.xlu0 %2559 }
 0x991   : > { %v2570_v39 = vmul.f32 %v2560_v46, %v3985_v16 }
 0x993   : > { %v4706_v47 = vsub.f32 %v4664_v21, %v2570_v39 }
 0x995   : > { %v2582_v3 = vmul.f32 %v4706_v47, %v4706_v47 }
 0x997   : > { %v2594_v10 = vsel %vm978_vm1, %v2582_v3, 0.0 }
 0x998   : > { %2595 = vadd.xlane.f32.xlu2 %v2594_v10  ;;  %v2563_v11 = vpop.xlane.xlu2 %2562 }
 0x999   : > { %v2571_v51 = vmul.f32 %v2563_v11, %v3985_v16 }
 0x99b   : > { %v4713_v59 = vsub.f32 %v4672_v29, %v2571_v51 }
 0x99d   : > { %v2583_v35 = vmul.f32 %v4713_v59, %v4713_v59 }
 0x99f   : > { %v2597_v53 = vsel %vm978_vm1, %v2583_v35, 0.0 }
 0x9a0   : > { %2598 = vadd.xlane.f32.xlu1 %v2597_v53  ;;  %v2566_v1 = vpop.xlane.xlu0 %2565 }
 0x9a1   : > { %v2572_v48 = vmul.f32 %v2566_v1, %v3985_v16 }
 0x9a3   : > { %v4728_v30 = vsub.f32 %v4679_v12, %v2572_v48 }
 0x9a5   : > { %v2584_v8 = vmul.f32 %v4728_v30, %v4728_v30 }
 0x9a7   : > { %v2600_v60 = vsel %vm978_vm1, %v2584_v8, 0.0 }
 0x9a8   : > { %2601 = vadd.xlane.f32.xlu0 %v2600_v60  ;;  %v2934_v60 = vld [vmem:[%s3807_s23 + $0x78] sm:$0xff] }
 0x9a9   : > { %2955 = vmatpush.msrb.mxu2 %v2934_v60  ;;  %v2938_v60 = vld [vmem:[%s3807_s23 + $0x98] sm:$0xff] }
 0x9ab   : > { %2956 = vmatpush.msrb.mxu2 %v2933_v22  ;;  %v2936_v22 = vld [vmem:[%s3807_s23 + $0x88] sm:$0xff] }
 0x9ad   : > { %v2587_v25 = vpop.xlane.xlu2 %2586 }
 0x9ae   : > { %v2603_v7 = vmul.f32 %v2587_v25, %v3985_v16  ;;  %v2932_v25 = vld [vmem:[%s3807_s23 + $0x68] sm:$0xff] }
 0x9af   : > { %2957 = vmatpush.msrb.mxu2 %v2932_v25  ;;  %v2717_v25 = vld [vmem:[%s3801_s19] sm:$0x3] }
 0x9b0   : > { %v2609_v26 = vadd.f32 1e-06, %v2603_v7  ;;  %v2948_v7 = vld [vmem:[%s3807_s23 + $0xe8] sm:$0xff] }
 0x9b1   : > { %2992 = vmatpush.msrb.mxu3 %v2948_v7  ;;  %v4824_v7 = vperm.slane %v2717_v25, 0 }
 0x9b2   : > { %3573 = vrsqrt.f32 %v2609_v26  ;;  %vm2621_vm10 = vweird.f32 %v2609_v26 }
 0x9b5   : > { %v2590_v41 = vpop.xlane.xlu1 %2589 }
 0x9b6   : > { %v2604_v58 = vmul.f32 %v2590_v41, %v3985_v16 }
 0x9b8   : > { %v3574_v15 = vpop.eup %3573  ;;  %v2610_v56 = vadd.f32 1e-06, %v2604_v58 }
 0x9b9   : > { %v2616_v13 = vmul.f32 %v3574_v15, %v2609_v26  ;;  %vm2622_vm9 = vweird.f32 %v3574_v15 }
 0x9ba   : > { %3575 = vrsqrt.f32 %v2610_v56  ;;  %vm2623_vm11 = vmor %vm2621_vm10, %vm2622_vm9  ;;  %vm2631_vm13 = vweird.f32 %v2610_v56 }
 0x9bb   : > { %v2617_v23 = vmul.f32 %v3574_v15, %v2616_v13 }
 0x9bd   : > { %v2618_v31 = vmul.f32 0.5, %v2617_v23 }
 0x9bf   : > { %v2619_v33 = vsub.f32 1.5, %v2618_v31 }
 0x9c0   : > { %v3576_v4 = vpop.eup %3575 }
 0x9c1   : > { %v2620_v20 = vmul.f32 %v3574_v15, %v2619_v33  ;;  %v2626_v32 = vmul.f32 %v3576_v4, %v2610_v56  ;;  %vm2632_vm12 = vweird.f32 %v3576_v4  ;;  %v2947_v56 = vld [vmem:[%s3807_s23 + $0xe0] sm:$0xff] }
 0x9c2   : > { %vm2633_vm14 = vmor %vm2631_vm13, %vm2632_vm12  ;;  %2993 = vmatpush.msrb.mxu3 %v2947_v56 }
 0x9c3   : > { %v2624_v37 = vsel %vm2623_vm11, %v3574_v15, %v2620_v20  ;;  %v2627_v40 = vmul.f32 %v3576_v4, %v2626_v32  ;;  %v2931_v15 = vld [vmem:[%s3807_s23 + $0x60] sm:$0xff] }
 0x9c4   : > { %v2675_v19 = vmul.f32 %v2624_v37, %v4685_v24  ;;  %2958 = vmatpush.msrb.mxu2 %v2931_v15 }
 0x9c5   : > { %v2628_v44 = vmul.f32 0.5, %v2627_v40 }
 0x9c6   : > { %v2685_v17 = vmul.f32 %v4748_v36, %v2675_v19 }
 0x9c7   : > { %v2629_v45 = vsub.f32 1.5, %v2628_v44 }
 0x9c8   : > { %v2695_v9 = vadd.f32 %v4756_v0, %v2685_v17 }
 0x9c9   : > { %v2630_v46 = vmul.f32 %v3576_v4, %v2629_v45 }
 0x9ca   : > { %3356 = vmatmul.msk.f32.vlgmr.msra.gmra.mxu0 %vm978_vm1, %v2695_v9  ;;  %3362 = vmatmul.msk.f32.vlgmr.msrb.gmra.mxu1 %vm978_vm1, %v2695_v9 }
 0x9cb   : > { %v2634_v24 = vsel %vm2633_vm14, %v3576_v4, %v2630_v46  ;;  %v2946_v46 = vld [vmem:[%s3807_s23 + $0xd8] sm:$0xff] }
 0x9cc   : > { %v2676_v39 = vmul.f32 %v2634_v24, %v4692_v49  ;;  %2994 = vmatpush.msrb.mxu3 %v2946_v46 }
 0x9ce   : > { %v2686_v3 = vmul.f32 %v4748_v36, %v2676_v39 }
 0x9d0   : > { %v2696_v10 = vadd.f32 %v4756_v0, %v2686_v3 }
 0x9d2   : > { %3357 = vmatmul.msk.f32.gmra.mxu0 %vm978_vm1, %v2696_v10  ;;  %3363 = vmatmul.msk.f32.gmra.mxu1 %vm978_vm1, %v2696_v10  ;;  %v2929_v10 = vld [vmem:[%s3807_s23 + $0x50] sm:$0xff] }
 0x9d6   : > { %v2593_v11 = vpop.xlane.xlu0 %2592 }
 0x9d7   : > { %v2605_v51 = vmul.f32 %v2593_v11, %v3985_v16  ;;  %v2945_v11 = vld [vmem:[%s3807_s23 + $0xd0] sm:$0xff] }
 0x9d8   : > { %2995 = vmatpush.msrb.mxu3 %v2945_v11 }
 0x9d9   : > { %v2611_v42 = vadd.f32 1e-06, %v2605_v51 }
 0x9db   : > { %3577 = vrsqrt.f32 %v2611_v42  ;;  %vm2641_vm0 = vweird.f32 %v2611_v42 }
 0x9e1   : > { %v3578_v63 = vpop.eup %3577 }
 0x9e2   : > { %v2636_v35 = vmul.f32 %v3578_v63, %v2611_v42  ;;  %vm2642_vm15 = vweird.f32 %v3578_v63 }
 0x9e3   : > { %vm2643_vm2 = vmor %vm2641_vm0, %vm2642_vm15 }
 0x9e4   : > { %v2637_v54 = vmul.f32 %v3578_v63, %v2636_v35  ;;  %v2944_v35 = vld [vmem:[%s3807_s23 + $0xc8] sm:$0xff] }
 0x9e5   : > { %2996 = vmatpush.msrb.mxu3 %v2944_v35 }
 0x9e6   : > { %v2638_v57 = vmul.f32 0.5, %v2637_v54 }
 0x9e8   : > { %v2639_v53 = vsub.f32 1.5, %v2638_v57 }
 0x9ea   : > { %v2640_v49 = vmul.f32 %v3578_v63, %v2639_v53  ;;  %v2927_v53 = vld [vmem:[%s3807_s23 + $0x40] sm:$0xff] }
 0x9ec   : > { %v2644_v61 = vsel %vm2643_vm2, %v3578_v63, %v2640_v49  ;;  %v2928_v63 = vld [vmem:[%s3807_s23 + $0x48] sm:$0xff] }
 0x9ed   : > { %v2677_v62 = vmul.f32 %v2644_v61, %v4699_v55  ;;  %v2926_v61 = vld [vmem:[%s3807_s23 + $0x38] sm:$0xff] }
 0x9ef   : > { %v2687_v1 = vmul.f32 %v4748_v36, %v2677_v62  ;;  %v2942_v62 = vld [vmem:[%s3807_s23 + $0xb8] sm:$0xff] }
 0x9f1   : > { %v2697_v48 = vadd.f32 %v4756_v0, %v2687_v1 }
 0x9f3   : > { %3358 = vmatmul.msk.f32.gmra.mxu0 %vm978_vm1, %v2697_v48  ;;  %3364 = vmatmul.msk.f32.gmra.mxu1 %vm978_vm1, %v2697_v48 }
 0xa0b   : > { %v2596_v5 = vpop.xlane.xlu2 %2595 }
 0xa0c   : > { %v2606_v50 = vmul.f32 %v2596_v5, %v3985_v16  ;;  %v2925_v5 = vld [vmem:[%s3807_s23 + $0x30] sm:$0xff] }
 0xa0e   : > { %v2612_v6 = vadd.f32 1e-06, %v2606_v50  ;;  %v2941_v50 = vld [vmem:[%s3807_s23 + $0xb0] sm:$0xff] }
 0xa10   : > { %3579 = vrsqrt.f32 %v2612_v6  ;;  %vm2651_vm4 = vweird.f32 %v2612_v6 }
 0xa13   : > { %v2599_v52 = vpop.xlane.xlu1 %2598 }
 0xa14   : > { %v2607_v55 = vmul.f32 %v2599_v52, %v3985_v16  ;;  %v2940_v52 = vld [vmem:[%s3807_s23 + $0xa8] sm:$0xff] }
 0xa16   : > { %v3580_v8 = vpop.eup %3579  ;;  %v2613_v14 = vadd.f32 1e-06, %v2607_v55 }
 0xa17   : > { %v2646_v18 = vmul.f32 %v3580_v8, %v2612_v6  ;;  %vm2652_vm3 = vweird.f32 %v3580_v8  ;;  %v2924_v6 = vld [vmem:[%s3807_s23 + $0x28] sm:$0xff] }
 0xa18   : > { %3581 = vrsqrt.f32 %v2613_v14  ;;  %vm2653_vm5 = vmor %vm2651_vm4, %vm2652_vm3  ;;  %vm2661_vm7 = vweird.f32 %v2613_v14 }
 0xa19   : > { %v2647_v2 = vmul.f32 %v3580_v8, %v2646_v18 }
 0xa1b   : > { %v2648_v26 = vmul.f32 0.5, %v2647_v2  ;;  %v2602_v41 = vpop.xlane.xlu0 %2601  ;;  %v2920_v2 = vld [vmem:[%s3807_s23 + $0x8] sm:$0xff] }
 0xa1c   : > { %v2608_v58 = vmul.f32 %v2602_v41, %v3985_v16 }
 0xa1d   : > { %v2649_v13 = vsub.f32 1.5, %v2648_v26  ;;  %v4826_v26 = vperm.slane %v2717_v25, 1 }
 0xa1e   : > { %v3582_v23 = vpop.eup %3581  ;;  %v2614_v31 = vadd.f32 1e-06, %v2608_v58 }
 0xa1f   : > { %v2650_v33 = vmul.f32 %v3580_v8, %v2649_v13  ;;  %v2656_v4 = vmul.f32 %v3582_v23, %v2613_v14  ;;  %vm2662_vm6 = vweird.f32 %v3582_v23  ;;  %v2939_v14 = vld [vmem:[%s3807_s23 + $0xa0] sm:$0xff] }
 0xa20   : > { %3583 = vrsqrt.f32 %v2614_v31  ;;  %vm2663_vm8 = vmor %vm2661_vm7, %vm2662_vm6  ;;  %vm2671_vm10 = vweird.f32 %v2614_v31 }
 0xa21   : > { %v2654_v20 = vsel %vm2653_vm5, %v3580_v8, %v2650_v33  ;;  %v2657_v32 = vmul.f32 %v3582_v23, %v2656_v4  ;;  %v2923_v8 = vld [vmem:[%s3807_s23 + $0x20] sm:$0xff] }
 0xa22   : > { %v2678_v16 = vmul.f32 %v2654_v20, %v4706_v47  ;;  %v2930_v47 = vld [vmem:[%s3807_s23 + $0x58] sm:$0xff] }
 0xa23   : > { %v2658_v37 = vmul.f32 0.5, %v2657_v32  ;;  %2959 = vmatpush.msrb.mxu2 %v2930_v47 }
 0xa24   : > { %v2688_v40 = vmul.f32 %v4748_v36, %v2678_v16 }
 0xa25   : > { %v2659_v19 = vsub.f32 1.5, %v2658_v37  ;;  %2960 = vmatpush.msrb.mxu2 %v2929_v10 }
 0xa26   : > { %v3584_v44 = vpop.eup %3583  ;;  %v2698_v17 = vadd.f32 %v4756_v0, %v2688_v40 }
 0xa27   : > { %v2660_v45 = vmul.f32 %v3582_v23, %v2659_v19  ;;  %v2666_v9 = vmul.f32 %v3584_v44, %v2614_v31  ;;  %vm2672_vm9 = vweird.f32 %v3584_v44  ;;  %2961 = vmatpush.msrb.mxu2 %v2928_v63 }
 0xa28   : > { %3359 = vmatmul.msk.f32.gmra.mxu0 %vm978_vm1, %v2698_v17  ;;  %3365 = vmatmul.msk.f32.gmra.mxu1 %vm978_vm1, %v2698_v17  ;;  %vm2673_vm11 = vmor %vm2671_vm10, %vm2672_vm9 }
 0xa29   : > { %v2664_v24 = vsel %vm2663_vm8, %v3582_v23, %v2660_v45  ;;  %v2667_v39 = vmul.f32 %v3584_v44, %v2666_v9  ;;  %2962 = vmatpush.msrb.mxu2 %v2927_v53 }
 0xa2a   : > { %v2679_v3 = vmul.f32 %v2664_v24, %v4713_v59  ;;  %v2943_v59 = vld [vmem:[%s3807_s23 + $0xc0] sm:$0xff] }
 0xa2b   : > { %v2668_v51 = vmul.f32 0.5, %v2667_v39  ;;  %2997 = vmatpush.msrb.mxu3 %v2943_v59  ;;  %2963 = vmatpush.msrb.mxu2 %v2926_v61 }
 0xa2c   : > { %v2689_v42 = vmul.f32 %v4748_v36, %v2679_v3 }
 0xa2d   : > { %v2669_v54 = vsub.f32 1.5, %v2668_v51  ;;  %2998 = vmatpush.msrb.mxu3 %v2942_v62  ;;  %2964 = vmatpush.msrb.mxu2 %v2925_v5 }
 0xa2e   : > { %v2699_v57 = vadd.f32 %v4756_v0, %v2689_v42 }
 0xa2f   : > { %v2670_v49 = vmul.f32 %v3584_v44, %v2669_v54  ;;  %2999 = vmatpush.msrb.mxu3 %v2941_v50  ;;  %2965 = vmatpush.msrb.mxu2 %v2924_v6 }
 0xa30   : > { %3360 = vmatmul.msk.f32.gmra.mxu0 %vm978_vm1, %v2699_v57  ;;  %3366 = vmatmul.msk.f32.gmra.mxu1 %vm978_vm1, %v2699_v57 }
 0xa31   : > { %v2674_v1 = vsel %vm2673_vm11, %v3584_v44, %v2670_v49  ;;  %3000 = vmatpush.msrb.mxu3 %v2940_v52  ;;  %2966 = vmatpush.msrb.mxu2 %v2923_v8 }
 0xa32   : > { %v2680_v48 = vmul.f32 %v2674_v1, %v4728_v30  ;;  %v2922_v30 = vld [vmem:[%s3807_s23 + $0x18] sm:$0xff] }
 0xa33   : > { %3001 = vmatpush.msrb.mxu3 %v2939_v14  ;;  %2967 = vmatpush.msrb.mxu2 %v2922_v30 }
 0xa34   : > { %v2690_v55 = vmul.f32 %v4748_v36, %v2680_v48  ;;  %v2921_v36 = vld [vmem:[%s3807_s23 + $0x10] sm:$0xff] }
 0xa35   : > { %3002 = vmatpush.msrb.mxu3 %v2938_v60  ;;  %2968 = vmatpush.msrb.mxu2 %v2921_v36 }
 0xa36   : > { %v2700_v18 = vadd.f32 %v4756_v0, %v2690_v55  ;;  %v2935_v0 = vld [vmem:[%s3807_s23 + $0x80] sm:$0xff] }
 0xa37   : > { %3003 = vmatpush.msrb.mxu3 %v2937_v38  ;;  %2969 = vmatpush.msrb.mxu2 %v2920_v2 }
 0xa38   : > { %3361 = vmatmul.msk.f32.gmra.mxu0 %vm978_vm1, %v2700_v18  ;;  %3367 = vmatmul.msk.f32.gmra.mxu1 %vm978_vm1, %v2700_v18 }
 0xa39   : > { %3004 = vmatpush.msrb.mxu3 %v2936_v22  ;;  %2970 = vmatpush.msrb.mxu2 %v2919_v34 }
 0xa3b   : > { %3005 = vmatpush.msrb.mxu3 %v2935_v0 }
 0xa47   : > { %v2758_v41 = vpop.f32.mrf.mxu0  ;;  %v2793_v58 = vpop.f32.mrf.mxu1 }
 0xa48   : > { %v2759_v15 = vadd.f32 %v2758_v41, %v4824_v7  ;;  %v2794_v56 = vadd.f32 %v2793_v58, %v4826_v26 }
 0xa4a   : > { %v2823_v13 = vmul.f32 0.044715, %v2759_v15  ;;  %v2824_v23 = vmul.f32 0.044715, %v2794_v56  ;;  %v2811_v35 = vmul.f32 0.5, %v2759_v15  ;;  %v2812_v53 = vmul.f32 0.5, %v2794_v56 }
 0xa4c   : > { %v2835_v31 = vmul.f32 %v2823_v13, %v2759_v15  ;;  %v2836_v33 = vmul.f32 %v2824_v23, %v2794_v56 }
 0xa4e   : > { %v2847_v4 = vmul.f32 %v2835_v31, %v2759_v15  ;;  %v2848_v20 = vmul.f32 %v2836_v33, %v2794_v56 }
 0xa4f   : > { %v2761_v32 = vpop.f32.mrf.mxu0  ;;  %v2796_v16 = vpop.f32.mrf.mxu1 }
 0xa50   : > { %v2762_v37 = vadd.f32 %v2761_v32, %v4824_v7  ;;  %v2797_v40 = vadd.f32 %v2796_v16, %v4826_v26  ;;  %v2859_v19 = vadd.f32 %v2847_v4, %v2759_v15  ;;  %v2860_v44 = vadd.f32 %v2848_v20, %v2794_v56 }
 0xa52   : > { %v2826_v17 = vmul.f32 0.044715, %v2797_v40  ;;  %v2871_v45 = vmul.f32 0.7978846, %v2859_v19  ;;  %v2872_v9 = vmul.f32 0.7978846, %v2860_v44 }
 0xa53   : > { %v2825_v47 = vmul.f32 0.044715, %v2762_v37  ;;  %v2814_v48 = vmul.f32 0.5, %v2797_v40  ;;  %v2813_v50 = vmul.f32 0.5, %v2762_v37 }
 0xa54   : > { %3585 = vtanh.f32 %v2871_v45  ;;  %v2838_v46 = vmul.f32 %v2826_v17, %v2797_v40 }
 0xa55   : > { %3587 = vtanh.f32 %v2872_v9  ;;  %v2837_v24 = vmul.f32 %v2825_v47, %v2762_v37 }
 0xa56   : > { %v2850_v39 = vmul.f32 %v2838_v46, %v2797_v40 }
 0xa57   : > { %v2849_v3 = vmul.f32 %v2837_v24, %v2762_v37 }
 0xa58   : > { %v2862_v10 = vadd.f32 %v2850_v39, %v2797_v40 }
 0xa59   : > { %v2861_v11 = vadd.f32 %v2849_v3, %v2762_v37 }
 0xa5a   : > { %v3586_v51 = vpop.eup %3585  ;;  %v2874_v42 = vmul.f32 0.7978846, %v2862_v10 }
 0xa5b   : > { %v3588_v63 = vpop.eup %3587  ;;  %v2895_v54 = vadd.f32 1.0, %v3586_v51  ;;  %v2873_v57 = vmul.f32 0.7978846, %v2861_v11 }
 0xa5c   : > { %v2896_v59 = vadd.f32 1.0, %v3588_v63  ;;  %3589 = vtanh.f32 %v2874_v42 }
 0xa5d   : > { %v2907_v49 = vmul.f32 %v2895_v54, %v2811_v35  ;;  %3591 = vtanh.f32 %v2873_v57 }
 0xa5e   : > { %v2908_v61 = vmul.f32 %v2896_v59, %v2812_v53 }
 0xa5f   : > { %2971 = vmatmul.f32.vlgmr.msrb.gmra.mxu2 %v2907_v49 }
 0xa60   : > { %3006 = vmatmul.f32.vlgmr.msrb.gmra.mxu3 %v2908_v61 }
 0xa62   : > { %v3590_v62 = vpop.eup %3589 }
 0xa63   : > { %v3592_v1 = vpop.eup %3591  ;;  %v2898_v5 = vadd.f32 1.0, %v3590_v62 }
 0xa64   : > { %v2897_v6 = vadd.f32 1.0, %v3592_v1 }
 0xa65   : > { %v2910_v52 = vmul.f32 %v2898_v5, %v2814_v48 }
 0xa66   : > { %v2909_v55 = vmul.f32 %v2897_v6, %v2813_v50 }
 0xa68   : > { %2974 = vmatmul.f32.gmra.mxu2 %v2909_v55  ;;  %3009 = vmatmul.f32.gmra.mxu3 %v2910_v52 }
 0xa70   : > { %v2764_v8 = vpop.f32.mrf.mxu0  ;;  %v2799_v14 = vpop.f32.mrf.mxu1 }
 0xa71   : > { %v2765_v18 = vadd.f32 %v2764_v8, %v4824_v7  ;;  %v2800_v30 = vadd.f32 %v2799_v14, %v4826_v26 }
 0xa73   : > { %v2828_v60 = vmul.f32 0.044715, %v2800_v30  ;;  %v2827_v36 = vmul.f32 0.044715, %v2765_v18  ;;  %v2815_v13 = vmul.f32 0.5, %v2765_v18  ;;  %v2816_v31 = vmul.f32 0.5, %v2800_v30 }
 0xa75   : > { %v2839_v38 = vmul.f32 %v2827_v36, %v2765_v18  ;;  %v2840_v2 = vmul.f32 %v2828_v60, %v2800_v30 }
 0xa77   : > { %v2851_v22 = vmul.f32 %v2839_v38, %v2765_v18  ;;  %v2852_v34 = vmul.f32 %v2840_v2, %v2800_v30 }
 0xa79   : > { %v2863_v0 = vadd.f32 %v2851_v22, %v2765_v18  ;;  %v2864_v25 = vadd.f32 %v2852_v34, %v2800_v30 }
 0xa7b   : > { %v2875_v41 = vmul.f32 0.7978846, %v2863_v0  ;;  %v2876_v58 = vmul.f32 0.7978846, %v2864_v25 }
 0xa7d   : > { %3593 = vtanh.f32 %v2875_v41 }
 0xa7e   : > { %3595 = vtanh.f32 %v2876_v58 }
 0xa83   : > { %v3594_v15 = vpop.eup %3593 }
 0xa84   : > { %v3596_v56 = vpop.eup %3595  ;;  %v2899_v23 = vadd.f32 1.0, %v3594_v15 }
 0xa85   : > { %v2900_v33 = vadd.f32 1.0, %v3596_v56 }
 0xa86   : > { %v2911_v4 = vmul.f32 %v2899_v23, %v2815_v13 }
 0xa87   : > { %v2912_v20 = vmul.f32 %v2900_v33, %v2816_v31 }
 0xa88   : > { %2977 = vmatmul.f32.gmra.mxu2 %v2911_v4 }
 0xa89   : > { %3012 = vmatmul.f32.gmra.mxu3 %v2912_v20 }
 0xaa5   : > { %v2767_v32 = vpop.f32.mrf.mxu0  ;;  %v2802_v16 = vpop.f32.mrf.mxu1 }
 0xaa6   : > { %v2768_v37 = vadd.f32 %v2767_v32, %v4824_v7  ;;  %v2803_v40 = vadd.f32 %v2802_v16, %v4826_v26 }
 0xaa8   : > { %v2829_v19 = vmul.f32 0.044715, %v2768_v37  ;;  %v2830_v44 = vmul.f32 0.044715, %v2803_v40  ;;  %v2817_v14 = vmul.f32 0.5, %v2768_v37  ;;  %v2818_v30 = vmul.f32 0.5, %v2803_v40 }
 0xaaa   : > { %v2841_v17 = vmul.f32 %v2829_v19, %v2768_v37  ;;  %v2842_v45 = vmul.f32 %v2830_v44, %v2803_v40 }
 0xaac   : > { %v2853_v9 = vmul.f32 %v2841_v17, %v2768_v37  ;;  %v2854_v47 = vmul.f32 %v2842_v45, %v2803_v40 }
 0xaad   : > { %v2770_v46 = vpop.f32.mrf.mxu0  ;;  %v2805_v24 = vpop.f32.mrf.mxu1 }
 0xaae   : > { %v2771_v39 = vadd.f32 %v2770_v46, %v4824_v7  ;;  %v2806_v3 = vadd.f32 %v2805_v24, %v4826_v26  ;;  %v2865_v10 = vadd.f32 %v2853_v9, %v2768_v37  ;;  %v2866_v11 = vadd.f32 %v2854_v47, %v2803_v40  ;;  %v3462_v9 = vld [vmem:[%s830_s9] ss:$0 sm:$0xff] }
 0xab0   : > { %v2831_v51 = vmul.f32 0.044715, %v2771_v39  ;;  %v2832_v42 = vmul.f32 0.044715, %v2806_v3  ;;  %v2877_v63 = vmul.f32 0.7978846, %v2865_v10 }
 0xab1   : > { %v2878_v35 = vmul.f32 0.7978846, %v2866_v11  ;;  %v2819_v13 = vmul.f32 0.5, %v2771_v39  ;;  %v2820_v31 = vmul.f32 0.5, %v2806_v3 }
 0xab2   : > { %3597 = vtanh.f32 %v2877_v63  ;;  %v2843_v54 = vmul.f32 %v2831_v51, %v2771_v39  ;;  %v2844_v57 = vmul.f32 %v2832_v42, %v2806_v3 }
 0xab3   : > { %3599 = vtanh.f32 %v2878_v35 }
 0xab4   : > { %v2855_v53 = vmul.f32 %v2843_v54, %v2771_v39  ;;  %v2856_v59 = vmul.f32 %v2844_v57, %v2806_v3 }
 0xab5   : > { %v2773_v49 = vpop.f32.mrf.mxu0  ;;  %v2808_v61 = vpop.f32.mrf.mxu1 }
 0xab6   : > { %v2774_v62 = vadd.f32 %v2773_v49, %v4824_v7  ;;  %v2809_v1 = vadd.f32 %v2808_v61, %v4826_v26  ;;  %v2867_v48 = vadd.f32 %v2855_v53, %v2771_v39  ;;  %v2868_v5 = vadd.f32 %v2856_v59, %v2806_v3 }
 0xab8   : > { %v3598_v50 = vpop.eup %3597  ;;  %v2833_v6 = vmul.f32 0.044715, %v2774_v62  ;;  %v2834_v52 = vmul.f32 0.044715, %v2809_v1  ;;  %v2879_v55 = vmul.f32 0.7978846, %v2867_v48 }
 0xab9   : > { %v3600_v8 = vpop.eup %3599  ;;  %v2901_v18 = vadd.f32 1.0, %v3598_v50  ;;  %v2880_v60 = vmul.f32 0.7978846, %v2868_v5  ;;  %v2821_v37 = vmul.f32 0.5, %v2774_v62  ;;  %v2822_v19 = vmul.f32 0.5, %v2809_v1 }
 0xaba   : > { %v2902_v36 = vadd.f32 1.0, %v3600_v8  ;;  %3601 = vtanh.f32 %v2879_v55  ;;  %v2845_v38 = vmul.f32 %v2833_v6, %v2774_v62  ;;  %v2846_v2 = vmul.f32 %v2834_v52, %v2809_v1 }
 0xabb   : > { %v2913_v22 = vmul.f32 %v2901_v18, %v2817_v14  ;;  %3603 = vtanh.f32 %v2880_v60 }
 0xabc   : > { %v2914_v7 = vmul.f32 %v2902_v36, %v2818_v30  ;;  %v2857_v34 = vmul.f32 %v2845_v38, %v2774_v62  ;;  %v2858_v26 = vmul.f32 %v2846_v2, %v2809_v1 }
 0xabd   : > { %2980 = vmatmul.f32.gmra.mxu2 %v2913_v22 }
 0xabe   : > { %3015 = vmatmul.f32.gmra.mxu3 %v2914_v7  ;;  %v2869_v0 = vadd.f32 %v2857_v34, %v2774_v62  ;;  %v2870_v25 = vadd.f32 %v2858_v26, %v2809_v1 }
 0xac0   : > { %v3602_v41 = vpop.eup %3601  ;;  %v2881_v58 = vmul.f32 0.7978846, %v2869_v0  ;;  %v2882_v15 = vmul.f32 0.7978846, %v2870_v25 }
 0xac1   : > { %v3604_v56 = vpop.eup %3603  ;;  %v2903_v23 = vadd.f32 1.0, %v3602_v41 }
 0xac2   : > { %v2904_v33 = vadd.f32 1.0, %v3604_v56  ;;  %3605 = vtanh.f32 %v2881_v58 }
 0xac3   : > { %v2915_v4 = vmul.f32 %v2903_v23, %v2819_v13  ;;  %3607 = vtanh.f32 %v2882_v15 }
 0xac4   : > { %v2916_v20 = vmul.f32 %v2904_v33, %v2820_v31 }
 0xac5   : > { %2983 = vmatmul.f32.gmra.mxu2 %v2915_v4 }
 0xac6   : > { %3018 = vmatmul.f32.gmra.mxu3 %v2916_v20 }
 0xac8   : > { %v3606_v32 = vpop.eup %3605 }
 0xac9   : > { %v3608_v16 = vpop.eup %3607  ;;  %v2905_v40 = vadd.f32 1.0, %v3606_v32 }
 0xaca   : > { %v2906_v44 = vadd.f32 1.0, %v3608_v16 }
 0xacb   : > { %v2917_v17 = vmul.f32 %v2905_v40, %v2821_v37 }
 0xacc   : > { %v2918_v45 = vmul.f32 %v2906_v44, %v2822_v19 }
 0xacd   : > { %2986 = vmatmul.f32.gmra.mxu2 %v2917_v17 }
 0xace   : > { %3021 = vmatmul.f32.gmra.mxu3 %v2918_v45 }
 0xae2   : > { %v2972_v47 = vpop.f32.mrf.mxu2 }
 0xae3   : > { %v2973_v46 = vadd.f32 %v3462_v9, %v2972_v47  ;;  %v3007_v24 = vpop.f32.mrf.mxu3 }
 0xae5   : > { %v3008_v39 = vadd.f32 %v3007_v24, %v2973_v46 }
 0xae7   : > { %v3025_v3 = vadd.f32 %v3008_v39, %v4640_v43 }
 0xae9   : > { %3031 = vst.msk [vmem:[%s4927_s3] sm:$0xff] %vm978_vm1, %v3025_v3 }
 0xaeb   : > { %v2975_v10 = vpop.f32.mrf.mxu2  ;;  %v3010_v51 = vpop.f32.mrf.mxu3 }
 0xaec   : > { %v2976_v11 = vadd.f32 %v3462_v9, %v2975_v10 }
 0xaee   : > { %v3011_v42 = vadd.f32 %v3010_v51, %v2976_v11 }
 0xaf0   : > { %v3026_v63 = vadd.f32 %v3011_v42, %v4647_v27 }
 0xaf2   : > { %3032 = vst.msk [vmem:[%s4927_s3 + $0x8] sm:$0xff] %vm978_vm1, %v3026_v63 }
 0xb0b   : > { %v2978_v35 = vpop.f32.mrf.mxu2 }
 0xb0c   : > { %v2979_v54 = vadd.f32 %v3462_v9, %v2978_v35  ;;  %v3013_v57 = vpop.f32.mrf.mxu3 }
 0xb0e   : > { %v3014_v43 = vadd.f32 %v3013_v57, %v2979_v54 }
 0xb10   : > { %v3027_v53 = vadd.f32 %v3014_v43, %v4655_v28 }
 0xb12   : > { %3033 = vst.msk [vmem:[%s4927_s3 + $0x10] sm:$0xff] %vm978_vm1, %v3027_v53 }
 0xb40   : > { %v2981_v59 = vpop.f32.mrf.mxu2 }
 0xb41   : > { %v2982_v49 = vadd.f32 %v3462_v9, %v2981_v59  ;;  %v3016_v61 = vpop.f32.mrf.mxu3 }
 0xb43   : > { %v3017_v27 = vadd.f32 %v3016_v61, %v2982_v49 }
 0xb45   : > { %v3028_v62 = vadd.f32 %v3017_v27, %v4664_v21 }
 0xb47   : > { %3034 = vst.msk [vmem:[%s4927_s3 + $0x18] sm:$0xff] %vm978_vm1, %v3028_v62 }
 0xb48   : > { %v2984_v1 = vpop.f32.mrf.mxu2 }
 0xb49   : > { %v2985_v48 = vadd.f32 %v3462_v9, %v2984_v1  ;;  %v3019_v5 = vpop.f32.mrf.mxu3 }
 0xb4b   : > { %v3020_v28 = vadd.f32 %v3019_v5, %v2985_v48 }
 0xb4d   : > { %v3029_v50 = vadd.f32 %v3020_v28, %v4672_v29 }
 0xb4f   : > { %3035 = vst.msk [vmem:[%s4927_s3 + $0x20] sm:$0xff] %vm978_vm1, %v3029_v50 }
 0xb50   : > { %v2987_v6 = vpop.f32.mrf.mxu2 }
 0xb51   : > { %v2988_v52 = vadd.f32 %v3462_v9, %v2987_v6  ;;  %v3022_v55 = vpop.f32.mrf.mxu3 }
 0xb53   : > { %v3023_v21 = vadd.f32 %v3022_v55, %v2988_v52 }
 0xb55   : > { %v3030_v8 = vadd.f32 %v3023_v21, %v4679_v12 }
 0xb57   : > { %3036 = vst.msk [vmem:[%s4927_s3 + $0x28] sm:$0xff] %vm978_vm1, %v3030_v8 }
 0xb58 PF: > { %s4940_s1 = sld [smem:[#allocation2_spill]] }
 0xb5e   : > { %s29_s0 = sadd.s32 1, %s4940_s1  }
 0xb5f   : > { %p26_p5 = scmp.ge.s32.totalorder %s29_s0, 4  }
 0xb61   :  { %28 = sbr.rel (!%p26_p5) target bundleno = 12 (0xc), region = 171 }

</bundles_post_ra>
